<compile_context>
chip_gen: v7x
topology: tpu7x:2x2x1
jax: 0.10.0
libtpu: 0.0.40
codegen_flags: <defaults>
</compile_context>

<pallas_src>
import jax
import jax.numpy as jnp
import numpy as np
from jax.experimental import pallas as pl
from jax.experimental.pallas import tpu as pltpu


def _sigmoid(x):
    # sigmoid(x) = 0.5 * tanh(0.5*x) + 0.5 : single EUP op, no exp/reciprocal.
    return 0.5 * jnp.tanh(0.5 * x) + 0.5


def cnn_lstm_kernel(xe_ref, xo_ref, w1_ref, b1_ref, w2_ref, b2_ref,
                    wih_ref, whh_ref, bl_ref,
                    wc1_ref, bc1_ref, wc2r_ref, bc2_ref,
                    out_ref, y_scr, seq_scr, gx_scr):
    f32 = jnp.float32
    # ---- static sizes (derived from ref shapes) ----
    K = w1_ref.shape[0]              # conv kernel size (5)
    C1 = w1_ref.shape[1]             # 32
    C2 = w2_ref.shape[1]             # 64
    H = whh_ref.shape[0]             # 64
    Bb = out_ref.shape[0]            # samples in this block (multiple of 8)
    R2 = y_scr.shape[0]              # Lout2 * Bb  (conv2 output rows)
    T2 = seq_scr.shape[0] // Bb      # LSTM sequence length after pool2

    # ---- Conv1d(1->32, k=5) + ReLU + MaxPool1d(2), time-major ---------------
    # xe/xo rows are (t, b) per block for conv positions 2t / 2t+1, so pool1 is
    # a max of two whole tensors (no strided sublane reads).
    w1 = w1_ref[...]
    he = jnp.dot(xe_ref[...], w1, preferred_element_type=f32)
    ho = jnp.dot(xo_ref[...], w1, preferred_element_type=f32)
    p1 = jnp.maximum(jnp.maximum(he, ho) + b1_ref[...], 0.0)    # (T1*Bb, C1)

    # ---- Conv1d(32->64, k=5) + ReLU: K accumulating shifted matmuls ---------
    # Time-major rows => tap k is a contiguous slice offset by k*Bb rows
    # (sublane-aligned, no cross-sample mixing).
    w2 = w2_ref[...]
    acc = jnp.dot(p1[0:R2, :], w2[0:C1, :], preferred_element_type=f32)
    for k in range(1, K):
        acc = acc + jnp.dot(p1[k * Bb:k * Bb + R2, :],
                            w2[k * C1:(k + 1) * C1, :],
                            preferred_element_type=f32)
    y_scr[...] = jnp.maximum(acc + b2_ref[...], 0.0)            # (Lout2*Bb, C2)

    # ---- MaxPool1d(2): contiguous aligned Bb-row slabs, already LSTM order --
    for t in range(T2):
        ev = y_scr[pl.ds(2 * t * Bb, Bb), :]
        od = y_scr[pl.ds((2 * t + 1) * Bb, Bb), :]
        seq_scr[pl.ds(t * Bb, Bb), :] = jnp.maximum(ev, od)

    # ---- LSTM(64->64): hoisted input-to-hidden matmul kept in VMEM scratch --
    gx_scr[...] = (jnp.dot(seq_scr[...], wih_ref[...],
                           preferred_element_type=f32) + bl_ref[...])

    whh = whh_ref[...]
    h = jnp.zeros((Bb, H), f32)
    c = jnp.zeros((Bb, H), f32)
    for t in range(T2):                                          # static -> unrolled
        gates = gx_scr[pl.ds(t * Bb, Bb), :] + jnp.dot(
            h, whh, preferred_element_type=f32)                  # (Bb, 4H)
        i_g = _sigmoid(gates[:, 0:H])
        f_g = _sigmoid(gates[:, H:2 * H])
        g_g = jnp.tanh(gates[:, 2 * H:3 * H])
        o_g = _sigmoid(gates[:, 3 * H:4 * H])
        c = f_g * c + i_g * g_g
        h = o_g * jnp.tanh(c)

    # ---- classifier: Linear(64,64)+ReLU + Dropout(0.3) + Linear(64,1)+Sigmoid
    # TODO(synk): Dropout(0.3) is the identity here (eval/inference semantics).
    z = jnp.maximum(jnp.dot(h, wc1_ref[...], preferred_element_type=f32)
                    + bc1_ref[...], 0.0)
    # N=1 head on the VPU/XLU (multiply + lane reduce) instead of a 1-lane MXU op.
    logit = jnp.sum(z * wc2r_ref[...], axis=-1, keepdims=True) + bc2_ref[...]
    out_ref[...] = _sigmoid(logit)                               # (Bb, 1)


def _round_up(x, m):
    return ((x + m - 1) // m) * m


def _auto_block_b(B):
    """Topology-aware block size: grid=1 on single-TC chips (v5e/v6e),
    2 parallel blocks on dual-TC v7x; multiple of 8, capped at 128."""
    n_cores = 1
    try:
        kind = jax.devices()[0].device_kind.lower()
        if "v7" in kind:
            n_cores = 2
    except Exception:
        pass
    bb = _round_up(max(1, pl.cdiv(B, n_cores)), 8)
    return min(bb, 128)


def cnn_lstm_forward(x_nlc, params, block_b=None):
    """x_nlc: (B, L, 1) float32 (channels-last). Returns (B, 1) probabilities.

    block_b: samples per grid step; None -> topology-aware default.
    """
    (w1, b1, w2, b2, wih, whh, bl, wc1, bc1, wc2, bc2) = params
    B, L, _ = x_nlc.shape
    K, C1 = w1.shape
    C2 = w2.shape[1]
    H = whh.shape[0]
    Lout1 = L - (K - 1)
    T1 = Lout1 // 2                  # after pool1
    Lout2 = T1 - (K - 1)
    T2 = Lout2 // 2                  # LSTM sequence length
    assert T1 >= K and T2 >= 1, "input too short for this CNN stack"

    if block_b is None:
        Bb = _auto_block_b(B)
    else:
        Bb = _round_up(max(1, min(block_b, B)), 8)
    nb = pl.cdiv(B, Bb)
    Bpad = nb * Bb

    x2d = x_nlc[..., 0].astype(jnp.float32)                      # (B, L)
    if Bpad != B:
        x2d = jnp.concatenate(
            [x2d, jnp.zeros((Bpad - B, L), jnp.float32)], axis=0)

    # Wrapper-side im2col for conv1, time-major per block, even/odd conv
    # positions as two inputs (layout plumbing only).
    xc = jnp.stack([x2d[:, k:k + Lout1] for k in range(K)], axis=-1)  # (Bpad, Lout1, K)

    def block_time_major(a):                                     # (Bpad, T1, K) -> (nb*T1*Bb, K)
        a = a.reshape(nb, Bb, T1, K)
        a = jnp.transpose(a, (0, 2, 1, 3))
        return a.reshape(nb * T1 * Bb, K)

    xce = block_time_major(xc[:, 0:2 * T1:2, :])                 # conv positions 2t
    xco = block_time_major(xc[:, 1:2 * T1:2, :])                 # conv positions 2t+1

    wc2_row = wc2.reshape(1, H)                                  # head weight as a lane row

    full2d = lambda a: pl.BlockSpec(a.shape, lambda i: (0, 0))   # weights: one block

    out = pl.pallas_call(
        cnn_lstm_kernel,
        out_shape=jax.ShapeDtypeStruct((Bpad, 1), jnp.float32),
        grid=(nb,),
        in_specs=[
            pl.BlockSpec((T1 * Bb, K), lambda i: (i, 0)),        # even-position im2col
            pl.BlockSpec((T1 * Bb, K), lambda i: (i, 0)),        # odd-position im2col
            full2d(w1), full2d(b1), full2d(w2), full2d(b2),
            full2d(wih), full2d(whh), full2d(bl),
            full2d(wc1), full2d(bc1), full2d(wc2_row), full2d(bc2),
        ],
        out_specs=pl.BlockSpec((Bb, 1), lambda i: (i, 0)),
        scratch_shapes=[
            pltpu.VMEM((Lout2 * Bb, C2), jnp.float32),           # conv2 output
            pltpu.VMEM((T2 * Bb, C2), jnp.float32),              # pooled LSTM input
            pltpu.VMEM((T2 * Bb, 4 * H), jnp.float32),           # hoisted gate matmul
        ],
        compiler_params=pltpu.CompilerParams(
            dimension_semantics=("parallel",)),
    )(xce, xco, w1, b1, w2, b2, wih, whh, bl, wc1, bc1, wc2_row, bc2)
    return out[:B]


def reference_forward(x_nlc, params):
    """Pure-JAX reference with identical math (eval mode)."""
    (w1, b1, w2, b2, wih, whh, bl, wc1, bc1, wc2, bc2) = params
    B, L, _ = x_nlc.shape
    K, C1 = w1.shape
    H = whh.shape[0]
    x = x_nlc[..., 0]                                            # (B, L)
    Lout1 = L - (K - 1)
    h1 = jnp.stack([x[:, k:k + Lout1] for k in range(K)], axis=-1) @ w1 + b1
    h1 = jnp.maximum(h1, 0.0)
    T1 = Lout1 // 2
    p1 = jnp.maximum(h1[:, 0:2 * T1:2], h1[:, 1:2 * T1:2])       # (B, T1, C1)
    Lout2 = T1 - (K - 1)
    cols = jnp.concatenate([p1[:, k:k + Lout2, :] for k in range(K)], axis=-1)
    h2 = jnp.maximum(cols @ w2 + b2, 0.0)                        # (B, Lout2, 64)
    T2 = Lout2 // 2
    p2 = jnp.maximum(h2[:, 0:2 * T2:2], h2[:, 1:2 * T2:2])       # (B, T2, 64)
    h = jnp.zeros((B, H), jnp.float32)
    c = jnp.zeros((B, H), jnp.float32)
    for t in range(T2):
        gates = p2[:, t] @ wih + h @ whh + bl
        i_g = jax.nn.sigmoid(gates[:, 0:H])
        f_g = jax.nn.sigmoid(gates[:, H:2 * H])
        g_g = jnp.tanh(gates[:, 2 * H:3 * H])
        o_g = jax.nn.sigmoid(gates[:, 3 * H:4 * H])
        c = f_g * c + i_g * g_g
        h = o_g * jnp.tanh(c)
    z = jnp.maximum(h @ wc1 + bc1, 0.0)
    return jax.nn.sigmoid(z @ wc2 + bc2)                         # (B, 1)


def init_params(key):
    K, C1, C2, H = 5, 32, 64, 64
    ks = jax.random.split(key, 12)
    s = 0.05
    w1 = jax.random.normal(ks[0], (K, C1), jnp.float32) * s          # conv1 weight (k, c_out), c_in=1
    b1 = jax.random.normal(ks[1], (1, C1), jnp.float32) * s
    w2 = jax.random.normal(ks[2], (K * C1, C2), jnp.float32) * s     # conv2 weight, rows = (k, c_in)
    b2 = jax.random.normal(ks[3], (1, C2), jnp.float32) * s
    wih = jax.random.normal(ks[4], (H, 4 * H), jnp.float32) * s      # LSTM W_ih^T, gates (i,f,g,o)
    whh = jax.random.normal(ks[5], (H, 4 * H), jnp.float32) * s      # LSTM W_hh^T
    bl = jax.random.normal(ks[6], (1, 4 * H), jnp.float32) * s       # b_ih + b_hh
    wc1 = jax.random.normal(ks[7], (H, H), jnp.float32) * s
    bc1 = jax.random.normal(ks[8], (1, H), jnp.float32) * s
    wc2 = jax.random.normal(ks[9], (H, 1), jnp.float32) * s
    bc2 = jax.random.normal(ks[10], (1, 1), jnp.float32) * s
    return (w1, b1, w2, b2, wih, whh, bl, wc1, bc1, wc2, bc2)


if __name__ == "__main__":
    key = jax.random.PRNGKey(0)
    k_x, k_p = jax.random.split(key)

    B, L = 16, 64                              # PyTorch input: (B, 1, L)
    x_pt = jax.random.normal(k_x, (B, 1, L), jnp.float32)        # NCW, as the nn.Module expects
    x_nlc = jnp.transpose(x_pt, (0, 2, 1))                       # kernel layout (B, L, 1)

    params = init_params(k_p)

    out = cnn_lstm_forward(x_nlc, params)                        # topology-aware block_b
    out = jax.block_until_ready(out)

    ref = jax.block_until_ready(reference_forward(x_nlc, params))
    np.testing.assert_allclose(np.asarray(out), np.asarray(ref), atol=1e-2, rtol=1e-2)
    assert out.shape == (B, 1)
    assert bool(jnp.all(jnp.isfinite(out))) and bool(jnp.all((out >= 0) & (out <= 1)))

    print("KERNEL_OK")
</pallas_src>

<mosaic_0001>
module attributes {stable_mosaic.version = 11 : i64} {
  func.func @cnn_lstm_kernel(%arg0: i32, %arg1: memref<480x5xf32, #tpu.memory_space<vmem>>, %arg2: memref<480x5xf32, #tpu.memory_space<vmem>>, %arg3: memref<5x32xf32, #tpu.memory_space<vmem>>, %arg4: memref<1x32xf32, #tpu.memory_space<vmem>>, %arg5: memref<160x64xf32, #tpu.memory_space<vmem>>, %arg6: memref<1x64xf32, #tpu.memory_space<vmem>>, %arg7: memref<64x256xf32, #tpu.memory_space<vmem>>, %arg8: memref<64x256xf32, #tpu.memory_space<vmem>>, %arg9: memref<1x256xf32, #tpu.memory_space<vmem>>, %arg10: memref<64x64xf32, #tpu.memory_space<vmem>>, %arg11: memref<1x64xf32, #tpu.memory_space<vmem>>, %arg12: memref<1x64xf32, #tpu.memory_space<vmem>>, %arg13: memref<1x1xf32, #tpu.memory_space<vmem>>, %arg14: memref<16x1xf32, #tpu.memory_space<vmem>>, %arg15: memref<416x64xf32, #tpu.memory_space<vmem>>, %arg16: memref<208x64xf32, #tpu.memory_space<vmem>>, %arg17: memref<208x256xf32, #tpu.memory_space<vmem>>) attributes {dimension_semantics = [#tpu.dimension_semantics<parallel>], iteration_bounds = array<i64: 1>, scalar_prefetch = 0 : i64, scratch_operands = 3 : i64, tpu.core_type = #tpu.core_type<tc>, window_params = [{transform_indices = @transform_0, window_bounds = array<i64: 480, 5>}, {transform_indices = @transform_1, window_bounds = array<i64: 480, 5>}, {pipeline_mode = #tpu.pipeline_mode<synchronous>, transform_indices = @transform_2, window_bounds = array<i64: 5, 32>}, {pipeline_mode = #tpu.pipeline_mode<synchronous>, transform_indices = @transform_3, window_bounds = array<i64: 1, 32>}, {pipeline_mode = #tpu.pipeline_mode<synchronous>, transform_indices = @transform_4, window_bounds = array<i64: 160, 64>}, {pipeline_mode = #tpu.pipeline_mode<synchronous>, transform_indices = @transform_5, window_bounds = array<i64: 1, 64>}, {pipeline_mode = #tpu.pipeline_mode<synchronous>, transform_indices = @transform_6, window_bounds = array<i64: 64, 256>}, {pipeline_mode = #tpu.pipeline_mode<synchronous>, transform_indices = @transform_7, window_bounds = array<i64: 64, 256>}, {pipeline_mode = #tpu.pipeline_mode<synchronous>, transform_indices = @transform_8, window_bounds = array<i64: 1, 256>}, {pipeline_mode = #tpu.pipeline_mode<synchronous>, transform_indices = @transform_9, window_bounds = array<i64: 64, 64>}, {pipeline_mode = #tpu.pipeline_mode<synchronous>, transform_indices = @transform_10, window_bounds = array<i64: 1, 64>}, {pipeline_mode = #tpu.pipeline_mode<synchronous>, transform_indices = @transform_11, window_bounds = array<i64: 1, 64>}, {pipeline_mode = #tpu.pipeline_mode<synchronous>, transform_indices = @transform_12, window_bounds = array<i64: 1, 1>}, {transform_indices = @transform_13, window_bounds = array<i64: 16, 1>}]} {
    %c0 = arith.constant 0 : index
    %c0_0 = arith.constant 0 : index
    %0 = vector.load %arg3[%c0, %c0_0] : memref<5x32xf32, #tpu.memory_space<vmem>>, vector<5x32xf32>
    %c0_1 = arith.constant 0 : index
    %c0_2 = arith.constant 0 : index
    %1 = vector.load %arg1[%c0_1, %c0_2] : memref<480x5xf32, #tpu.memory_space<vmem>>, vector<480x5xf32>
    %cst = arith.constant dense<0.000000e+00> : vector<480x32xf32>
    %2 = tpu.matmul %1, %0, %cst {dimension_numbers = #tpu.dot_dimension_numbers<[1], [0], [0], [1], [0, 0, 1, 1], [], []>} : vector<480x5xf32>, vector<5x32xf32>, vector<480x32xf32> -> vector<480x32xf32>
    %c0_3 = arith.constant 0 : index
    %c0_4 = arith.constant 0 : index
    %3 = vector.load %arg2[%c0_3, %c0_4] : memref<480x5xf32, #tpu.memory_space<vmem>>, vector<480x5xf32>
    %cst_5 = arith.constant dense<0.000000e+00> : vector<480x32xf32>
    %4 = tpu.matmul %3, %0, %cst_5 {dimension_numbers = #tpu.dot_dimension_numbers<[1], [0], [0], [1], [0, 0, 1, 1], [], []>} : vector<480x5xf32>, vector<5x32xf32>, vector<480x32xf32> -> vector<480x32xf32>
    %5 = arith.maximumf %2, %4 : vector<480x32xf32>
    %c0_6 = arith.constant 0 : index
    %c0_7 = arith.constant 0 : index
    %6 = vector.load %arg4[%c0_6, %c0_7] : memref<1x32xf32, #tpu.memory_space<vmem>>, vector<1x32xf32>
    %7 = vector.broadcast %6 : vector<1x32xf32> to vector<480x32xf32>
    %8 = arith.addf %5, %7 : vector<480x32xf32>
    %cst_8 = arith.constant 0.000000e+00 : f32
    %9 = vector.broadcast %cst_8 : f32 to vector<480x32xf32>
    %10 = arith.maximumf %8, %9 : vector<480x32xf32>
    %c0_9 = arith.constant 0 : index
    %c0_10 = arith.constant 0 : index
    %11 = vector.load %arg5[%c0_9, %c0_10] : memref<160x64xf32, #tpu.memory_space<vmem>>, vector<160x64xf32>
    %12 = vector.extract_strided_slice %10 {offsets = [0, 0], sizes = [416, 32], strides = [1, 1]} : vector<480x32xf32> to vector<416x32xf32>
    %13 = vector.extract_strided_slice %11 {offsets = [0, 0], sizes = [32, 64], strides = [1, 1]} : vector<160x64xf32> to vector<32x64xf32>
    %cst_11 = arith.constant dense<0.000000e+00> : vector<416x64xf32>
    %14 = tpu.matmul %12, %13, %cst_11 {dimension_numbers = #tpu.dot_dimension_numbers<[1], [0], [0], [1], [0, 0, 1, 1], [], []>} : vector<416x32xf32>, vector<32x64xf32>, vector<416x64xf32> -> vector<416x64xf32>
    %15 = vector.extract_strided_slice %10 {offsets = [16, 0], sizes = [416, 32], strides = [1, 1]} : vector<480x32xf32> to vector<416x32xf32>
    %16 = vector.extract_strided_slice %11 {offsets = [32, 0], sizes = [32, 64], strides = [1, 1]} : vector<160x64xf32> to vector<32x64xf32>
    %cst_12 = arith.constant dense<0.000000e+00> : vector<416x64xf32>
    %17 = tpu.matmul %15, %16, %cst_12 {dimension_numbers = #tpu.dot_dimension_numbers<[1], [0], [0], [1], [0, 0, 1, 1], [], []>} : vector<416x32xf32>, vector<32x64xf32>, vector<416x64xf32> -> vector<416x64xf32>
    %18 = arith.addf %14, %17 : vector<416x64xf32>
    %19 = vector.extract_strided_slice %10 {offsets = [32, 0], sizes = [416, 32], strides = [1, 1]} : vector<480x32xf32> to vector<416x32xf32>
    %20 = vector.extract_strided_slice %11 {offsets = [64, 0], sizes = [32, 64], strides = [1, 1]} : vector<160x64xf32> to vector<32x64xf32>
    %cst_13 = arith.constant dense<0.000000e+00> : vector<416x64xf32>
    %21 = tpu.matmul %19, %20, %cst_13 {dimension_numbers = #tpu.dot_dimension_numbers<[1], [0], [0], [1], [0, 0, 1, 1], [], []>} : vector<416x32xf32>, vector<32x64xf32>, vector<416x64xf32> -> vector<416x64xf32>
    %22 = arith.addf %18, %21 : vector<416x64xf32>
    %23 = vector.extract_strided_slice %10 {offsets = [48, 0], sizes = [416, 32], strides = [1, 1]} : vector<480x32xf32> to vector<416x32xf32>
    %24 = vector.extract_strided_slice %11 {offsets = [96, 0], sizes = [32, 64], strides = [1, 1]} : vector<160x64xf32> to vector<32x64xf32>
    %cst_14 = arith.constant dense<0.000000e+00> : vector<416x64xf32>
    %25 = tpu.matmul %23, %24, %cst_14 {dimension_numbers = #tpu.dot_dimension_numbers<[1], [0], [0], [1], [0, 0, 1, 1], [], []>} : vector<416x32xf32>, vector<32x64xf32>, vector<416x64xf32> -> vector<416x64xf32>
    %26 = arith.addf %22, %25 : vector<416x64xf32>
    %27 = vector.extract_strided_slice %10 {offsets = [64, 0], sizes = [416, 32], strides = [1, 1]} : vector<480x32xf32> to vector<416x32xf32>
    %28 = vector.extract_strided_slice %11 {offsets = [128, 0], sizes = [32, 64], strides = [1, 1]} : vector<160x64xf32> to vector<32x64xf32>
    %cst_15 = arith.constant dense<0.000000e+00> : vector<416x64xf32>
    %29 = tpu.matmul %27, %28, %cst_15 {dimension_numbers = #tpu.dot_dimension_numbers<[1], [0], [0], [1], [0, 0, 1, 1], [], []>} : vector<416x32xf32>, vector<32x64xf32>, vector<416x64xf32> -> vector<416x64xf32>
    %30 = arith.addf %26, %29 : vector<416x64xf32>
    %c0_16 = arith.constant 0 : index
    %c0_17 = arith.constant 0 : index
    %31 = vector.load %arg6[%c0_16, %c0_17] : memref<1x64xf32, #tpu.memory_space<vmem>>, vector<1x64xf32>
    %32 = vector.broadcast %31 : vector<1x64xf32> to vector<416x64xf32>
    %33 = arith.addf %30, %32 : vector<416x64xf32>
    %cst_18 = arith.constant 0.000000e+00 : f32
    %34 = vector.broadcast %cst_18 : f32 to vector<416x64xf32>
    %35 = arith.maximumf %33, %34 : vector<416x64xf32>
    %c0_19 = arith.constant 0 : index
    %c0_20 = arith.constant 0 : index
    %36 = vector.load %arg15[%c0_19, %c0_20] : memref<416x64xf32, #tpu.memory_space<vmem>>, vector<416x64xf32>
    tpu.vector_store %arg15[%c0_19, %c0_20], %35 {strides = array<i32>} : memref<416x64xf32, #tpu.memory_space<vmem>>, vector<416x64xf32>,
    %c0_21 = arith.constant 0 : index
    %c0_22 = arith.constant 0 : index
    %37 = vector.load %arg15[%c0_21, %c0_22] : memref<416x64xf32, #tpu.memory_space<vmem>>, vector<16x64xf32>
    %c16 = arith.constant 16 : index
    %c0_23 = arith.constant 0 : index
    %38 = vector.load %arg15[%c16, %c0_23] : memref<416x64xf32, #tpu.memory_space<vmem>>, vector<16x64xf32>
    %39 = arith.maximumf %37, %38 : vector<16x64xf32>
    %c0_24 = arith.constant 0 : index
    %c0_25 = arith.constant 0 : index
    %40 = vector.load %arg16[%c0_24, %c0_25] : memref<208x64xf32, #tpu.memory_space<vmem>>, vector<16x64xf32>
    tpu.vector_store %arg16[%c0_24, %c0_25], %39 {strides = array<i32>} : memref<208x64xf32, #tpu.memory_space<vmem>>, vector<16x64xf32>,
    %c32 = arith.constant 32 : index
    %c0_26 = arith.constant 0 : index
    %41 = vector.load %arg15[%c32, %c0_26] : memref<416x64xf32, #tpu.memory_space<vmem>>, vector<16x64xf32>
    %c48 = arith.constant 48 : index
    %c0_27 = arith.constant 0 : index
    %42 = vector.load %arg15[%c48, %c0_27] : memref<416x64xf32, #tpu.memory_space<vmem>>, vector<16x64xf32>
    %43 = arith.maximumf %41, %42 : vector<16x64xf32>
    %c16_28 = arith.constant 16 : index
    %c0_29 = arith.constant 0 : index
    %44 = vector.load %arg16[%c16_28, %c0_29] : memref<208x64xf32, #tpu.memory_space<vmem>>, vector<16x64xf32>
    tpu.vector_store %arg16[%c16_28, %c0_29], %43 {strides = array<i32>} : memref<208x64xf32, #tpu.memory_space<vmem>>, vector<16x64xf32>,
    %c64 = arith.constant 64 : index
    %c0_30 = arith.constant 0 : index
    %45 = vector.load %arg15[%c64, %c0_30] : memref<416x64xf32, #tpu.memory_space<vmem>>, vector<16x64xf32>
    %c80 = arith.constant 80 : index
    %c0_31 = arith.constant 0 : index
    %46 = vector.load %arg15[%c80, %c0_31] : memref<416x64xf32, #tpu.memory_space<vmem>>, vector<16x64xf32>
    %47 = arith.maximumf %45, %46 : vector<16x64xf32>
    %c32_32 = arith.constant 32 : index
    %c0_33 = arith.constant 0 : index
    %48 = vector.load %arg16[%c32_32, %c0_33] : memref<208x64xf32, #tpu.memory_space<vmem>>, vector<16x64xf32>
    tpu.vector_store %arg16[%c32_32, %c0_33], %47 {strides = array<i32>} : memref<208x64xf32, #tpu.memory_space<vmem>>, vector<16x64xf32>,
    %c96 = arith.constant 96 : index
    %c0_34 = arith.constant 0 : index
    %49 = vector.load %arg15[%c96, %c0_34] : memref<416x64xf32, #tpu.memory_space<vmem>>, vector<16x64xf32>
    %c112 = arith.constant 112 : index
    %c0_35 = arith.constant 0 : index
    %50 = vector.load %arg15[%c112, %c0_35] : memref<416x64xf32, #tpu.memory_space<vmem>>, vector<16x64xf32>
    %51 = arith.maximumf %49, %50 : vector<16x64xf32>
    %c48_36 = arith.constant 48 : index
    %c0_37 = arith.constant 0 : index
    %52 = vector.load %arg16[%c48_36, %c0_37] : memref<208x64xf32, #tpu.memory_space<vmem>>, vector<16x64xf32>
    tpu.vector_store %arg16[%c48_36, %c0_37], %51 {strides = array<i32>} : memref<208x64xf32, #tpu.memory_space<vmem>>, vector<16x64xf32>,
    %c128 = arith.constant 128 : index
    %c0_38 = arith.constant 0 : index
    %53 = vector.load %arg15[%c128, %c0_38] : memref<416x64xf32, #tpu.memory_space<vmem>>, vector<16x64xf32>
    %c144 = arith.constant 144 : index
    %c0_39 = arith.constant 0 : index
    %54 = vector.load %arg15[%c144, %c0_39] : memref<416x64xf32, #tpu.memory_space<vmem>>, vector<16x64xf32>
    %55 = arith.maximumf %53, %54 : vector<16x64xf32>
    %c64_40 = arith.constant 64 : index
    %c0_41 = arith.constant 0 : index
    %56 = vector.load %arg16[%c64_40, %c0_41] : memref<208x64xf32, #tpu.memory_space<vmem>>, vector<16x64xf32>
    tpu.vector_store %arg16[%c64_40, %c0_41], %55 {strides = array<i32>} : memref<208x64xf32, #tpu.memory_space<vmem>>, vector<16x64xf32>,
    %c160 = arith.constant 160 : index
    %c0_42 = arith.constant 0 : index
    %57 = vector.load %arg15[%c160, %c0_42] : memref<416x64xf32, #tpu.memory_space<vmem>>, vector<16x64xf32>
    %c176 = arith.constant 176 : index
    %c0_43 = arith.constant 0 : index
    %58 = vector.load %arg15[%c176, %c0_43] : memref<416x64xf32, #tpu.memory_space<vmem>>, vector<16x64xf32>
    %59 = arith.maximumf %57, %58 : vector<16x64xf32>
    %c80_44 = arith.constant 80 : index
    %c0_45 = arith.constant 0 : index
    %60 = vector.load %arg16[%c80_44, %c0_45] : memref<208x64xf32, #tpu.memory_space<vmem>>, vector<16x64xf32>
    tpu.vector_store %arg16[%c80_44, %c0_45], %59 {strides = array<i32>} : memref<208x64xf32, #tpu.memory_space<vmem>>, vector<16x64xf32>,
    %c192 = arith.constant 192 : index
    %c0_46 = arith.constant 0 : index
    %61 = vector.load %arg15[%c192, %c0_46] : memref<416x64xf32, #tpu.memory_space<vmem>>, vector<16x64xf32>
    %c208 = arith.constant 208 : index
    %c0_47 = arith.constant 0 : index
    %62 = vector.load %arg15[%c208, %c0_47] : memref<416x64xf32, #tpu.memory_space<vmem>>, vector<16x64xf32>
    %63 = arith.maximumf %61, %62 : vector<16x64xf32>
    %c96_48 = arith.constant 96 : index
    %c0_49 = arith.constant 0 : index
    %64 = vector.load %arg16[%c96_48, %c0_49] : memref<208x64xf32, #tpu.memory_space<vmem>>, vector<16x64xf32>
    tpu.vector_store %arg16[%c96_48, %c0_49], %63 {strides = array<i32>} : memref<208x64xf32, #tpu.memory_space<vmem>>, vector<16x64xf32>,
    %c224 = arith.constant 224 : index
    %c0_50 = arith.constant 0 : index
    %65 = vector.load %arg15[%c224, %c0_50] : memref<416x64xf32, #tpu.memory_space<vmem>>, vector<16x64xf32>
    %c240 = arith.constant 240 : index
    %c0_51 = arith.constant 0 : index
    %66 = vector.load %arg15[%c240, %c0_51] : memref<416x64xf32, #tpu.memory_space<vmem>>, vector<16x64xf32>
    %67 = arith.maximumf %65, %66 : vector<16x64xf32>
    %c112_52 = arith.constant 112 : index
    %c0_53 = arith.constant 0 : index
    %68 = vector.load %arg16[%c112_52, %c0_53] : memref<208x64xf32, #tpu.memory_space<vmem>>, vector<16x64xf32>
    tpu.vector_store %arg16[%c112_52, %c0_53], %67 {strides = array<i32>} : memref<208x64xf32, #tpu.memory_space<vmem>>, vector<16x64xf32>,
    %c256 = arith.constant 256 : index
    %c0_54 = arith.constant 0 : index
    %69 = vector.load %arg15[%c256, %c0_54] : memref<416x64xf32, #tpu.memory_space<vmem>>, vector<16x64xf32>
    %c272 = arith.constant 272 : index
    %c0_55 = arith.constant 0 : index
    %70 = vector.load %arg15[%c272, %c0_55] : memref<416x64xf32, #tpu.memory_space<vmem>>, vector<16x64xf32>
    %71 = arith.maximumf %69, %70 : vector<16x64xf32>
    %c128_56 = arith.constant 128 : index
    %c0_57 = arith.constant 0 : index
    %72 = vector.load %arg16[%c128_56, %c0_57] : memref<208x64xf32, #tpu.memory_space<vmem>>, vector<16x64xf32>
    tpu.vector_store %arg16[%c128_56, %c0_57], %71 {strides = array<i32>} : memref<208x64xf32, #tpu.memory_space<vmem>>, vector<16x64xf32>,
    %c288 = arith.constant 288 : index
    %c0_58 = arith.constant 0 : index
    %73 = vector.load %arg15[%c288, %c0_58] : memref<416x64xf32, #tpu.memory_space<vmem>>, vector<16x64xf32>
    %c304 = arith.constant 304 : index
    %c0_59 = arith.constant 0 : index
    %74 = vector.load %arg15[%c304, %c0_59] : memref<416x64xf32, #tpu.memory_space<vmem>>, vector<16x64xf32>
    %75 = arith.maximumf %73, %74 : vector<16x64xf32>
    %c144_60 = arith.constant 144 : index
    %c0_61 = arith.constant 0 : index
    %76 = vector.load %arg16[%c144_60, %c0_61] : memref<208x64xf32, #tpu.memory_space<vmem>>, vector<16x64xf32>
    tpu.vector_store %arg16[%c144_60, %c0_61], %75 {strides = array<i32>} : memref<208x64xf32, #tpu.memory_space<vmem>>, vector<16x64xf32>,
    %c320 = arith.constant 320 : index
    %c0_62 = arith.constant 0 : index
    %77 = vector.load %arg15[%c320, %c0_62] : memref<416x64xf32, #tpu.memory_space<vmem>>, vector<16x64xf32>
    %c336 = arith.constant 336 : index
    %c0_63 = arith.constant 0 : index
    %78 = vector.load %arg15[%c336, %c0_63] : memref<416x64xf32, #tpu.memory_space<vmem>>, vector<16x64xf32>
    %79 = arith.maximumf %77, %78 : vector<16x64xf32>
    %c160_64 = arith.constant 160 : index
    %c0_65 = arith.constant 0 : index
    %80 = vector.load %arg16[%c160_64, %c0_65] : memref<208x64xf32, #tpu.memory_space<vmem>>, vector<16x64xf32>
    tpu.vector_store %arg16[%c160_64, %c0_65], %79 {strides = array<i32>} : memref<208x64xf32, #tpu.memory_space<vmem>>, vector<16x64xf32>,
    %c352 = arith.constant 352 : index
    %c0_66 = arith.constant 0 : index
    %81 = vector.load %arg15[%c352, %c0_66] : memref<416x64xf32, #tpu.memory_space<vmem>>, vector<16x64xf32>
    %c368 = arith.constant 368 : index
    %c0_67 = arith.constant 0 : index
    %82 = vector.load %arg15[%c368, %c0_67] : memref<416x64xf32, #tpu.memory_space<vmem>>, vector<16x64xf32>
    %83 = arith.maximumf %81, %82 : vector<16x64xf32>
    %c176_68 = arith.constant 176 : index
    %c0_69 = arith.constant 0 : index
    %84 = vector.load %arg16[%c176_68, %c0_69] : memref<208x64xf32, #tpu.memory_space<vmem>>, vector<16x64xf32>
    tpu.vector_store %arg16[%c176_68, %c0_69], %83 {strides = array<i32>} : memref<208x64xf32, #tpu.memory_space<vmem>>, vector<16x64xf32>,
    %c384 = arith.constant 384 : index
    %c0_70 = arith.constant 0 : index
    %85 = vector.load %arg15[%c384, %c0_70] : memref<416x64xf32, #tpu.memory_space<vmem>>, vector<16x64xf32>
    %c400 = arith.constant 400 : index
    %c0_71 = arith.constant 0 : index
    %86 = vector.load %arg15[%c400, %c0_71] : memref<416x64xf32, #tpu.memory_space<vmem>>, vector<16x64xf32>
    %87 = arith.maximumf %85, %86 : vector<16x64xf32>
    %c192_72 = arith.constant 192 : index
    %c0_73 = arith.constant 0 : index
    %88 = vector.load %arg16[%c192_72, %c0_73] : memref<208x64xf32, #tpu.memory_space<vmem>>, vector<16x64xf32>
    tpu.vector_store %arg16[%c192_72, %c0_73], %87 {strides = array<i32>} : memref<208x64xf32, #tpu.memory_space<vmem>>, vector<16x64xf32>,
    %c0_74 = arith.constant 0 : index
    %c0_75 = arith.constant 0 : index
    %89 = vector.load %arg16[%c0_74, %c0_75] : memref<208x64xf32, #tpu.memory_space<vmem>>, vector<208x64xf32>
    %c0_76 = arith.constant 0 : index
    %c0_77 = arith.constant 0 : index
    %90 = vector.load %arg7[%c0_76, %c0_77] : memref<64x256xf32, #tpu.memory_space<vmem>>, vector<64x256xf32>
    %cst_78 = arith.constant dense<0.000000e+00> : vector<208x256xf32>
    %91 = tpu.matmul %89, %90, %cst_78 {dimension_numbers = #tpu.dot_dimension_numbers<[1], [0], [0], [1], [0, 0, 1, 1], [], []>} : vector<208x64xf32>, vector<64x256xf32>, vector<208x256xf32> -> vector<208x256xf32>
    %c0_79 = arith.constant 0 : index
    %c0_80 = arith.constant 0 : index
    %92 = vector.load %arg9[%c0_79, %c0_80] : memref<1x256xf32, #tpu.memory_space<vmem>>, vector<1x256xf32>
    %93 = vector.broadcast %92 : vector<1x256xf32> to vector<208x256xf32>
    %94 = arith.addf %91, %93 : vector<208x256xf32>
    %c0_81 = arith.constant 0 : index
    %c0_82 = arith.constant 0 : index
    %95 = vector.load %arg17[%c0_81, %c0_82] : memref<208x256xf32, #tpu.memory_space<vmem>>, vector<208x256xf32>
    tpu.vector_store %arg17[%c0_81, %c0_82], %94 {strides = array<i32>} : memref<208x256xf32, #tpu.memory_space<vmem>>, vector<208x256xf32>,
    %c0_83 = arith.constant 0 : index
    %c0_84 = arith.constant 0 : index
    %96 = vector.load %arg8[%c0_83, %c0_84] : memref<64x256xf32, #tpu.memory_space<vmem>>, vector<64x256xf32>
    %cst_85 = arith.constant 0.000000e+00 : f32
    %97 = vector.broadcast %cst_85 : f32 to vector<16x64xf32>
    %cst_86 = arith.constant 0.000000e+00 : f32
    %98 = vector.broadcast %cst_86 : f32 to vector<16x64xf32>
    %c0_87 = arith.constant 0 : index
    %c0_88 = arith.constant 0 : index
    %99 = vector.load %arg17[%c0_87, %c0_88] : memref<208x256xf32, #tpu.memory_space<vmem>>, vector<16x256xf32>
    %cst_89 = arith.constant dense<0.000000e+00> : vector<16x256xf32>
    %100 = tpu.matmul %97, %96, %cst_89 {dimension_numbers = #tpu.dot_dimension_numbers<[1], [0], [0], [1], [0, 0, 1, 1], [], []>} : vector<16x64xf32>, vector<64x256xf32>, vector<16x256xf32> -> vector<16x256xf32>
    %101 = arith.addf %99, %100 : vector<16x256xf32>
    %102 = vector.extract_strided_slice %101 {offsets = [0, 0], sizes = [16, 64], strides = [1, 1]} : vector<16x256xf32> to vector<16x64xf32>
    %cst_90 = arith.constant 5.000000e-01 : f32
    %103 = vector.broadcast %cst_90 : f32 to vector<16x64xf32>
    %104 = arith.mulf %103, %102 : vector<16x64xf32>
    %105 = math.tanh %104 : vector<16x64xf32>
    %cst_91 = arith.constant 5.000000e-01 : f32
    %106 = vector.broadcast %cst_91 : f32 to vector<16x64xf32>
    %107 = arith.mulf %106, %105 : vector<16x64xf32>
    %cst_92 = arith.constant 5.000000e-01 : f32
    %108 = vector.broadcast %cst_92 : f32 to vector<16x64xf32>
    %109 = arith.addf %107, %108 : vector<16x64xf32>
    %110 = vector.extract_strided_slice %101 {offsets = [0, 64], sizes = [16, 64], strides = [1, 1]} : vector<16x256xf32> to vector<16x64xf32>
    %cst_93 = arith.constant 5.000000e-01 : f32
    %111 = vector.broadcast %cst_93 : f32 to vector<16x64xf32>
    %112 = arith.mulf %111, %110 : vector<16x64xf32>
    %113 = math.tanh %112 : vector<16x64xf32>
    %cst_94 = arith.constant 5.000000e-01 : f32
    %114 = vector.broadcast %cst_94 : f32 to vector<16x64xf32>
    %115 = arith.mulf %114, %113 : vector<16x64xf32>
    %cst_95 = arith.constant 5.000000e-01 : f32
    %116 = vector.broadcast %cst_95 : f32 to vector<16x64xf32>
    %117 = arith.addf %115, %116 : vector<16x64xf32>
    %118 = vector.extract_strided_slice %101 {offsets = [0, 128], sizes = [16, 64], strides = [1, 1]} : vector<16x256xf32> to vector<16x64xf32>
    %119 = math.tanh %118 : vector<16x64xf32>
    %120 = vector.extract_strided_slice %101 {offsets = [0, 192], sizes = [16, 64], strides = [1, 1]} : vector<16x256xf32> to vector<16x64xf32>
    %cst_96 = arith.constant 5.000000e-01 : f32
    %121 = vector.broadcast %cst_96 : f32 to vector<16x64xf32>
    %122 = arith.mulf %121, %120 : vector<16x64xf32>
    %123 = math.tanh %122 : vector<16x64xf32>
    %cst_97 = arith.constant 5.000000e-01 : f32
    %124 = vector.broadcast %cst_97 : f32 to vector<16x64xf32>
    %125 = arith.mulf %124, %123 : vector<16x64xf32>
    %cst_98 = arith.constant 5.000000e-01 : f32
    %126 = vector.broadcast %cst_98 : f32 to vector<16x64xf32>
    %127 = arith.addf %125, %126 : vector<16x64xf32>
    %128 = arith.mulf %117, %98 : vector<16x64xf32>
    %129 = arith.mulf %109, %119 : vector<16x64xf32>
    %130 = arith.addf %128, %129 : vector<16x64xf32>
    %131 = math.tanh %130 : vector<16x64xf32>
    %132 = arith.mulf %127, %131 : vector<16x64xf32>
    %c16_99 = arith.constant 16 : index
    %c0_100 = arith.constant 0 : index
    %133 = vector.load %arg17[%c16_99, %c0_100] : memref<208x256xf32, #tpu.memory_space<vmem>>, vector<16x256xf32>
    %cst_101 = arith.constant dense<0.000000e+00> : vector<16x256xf32>
    %134 = tpu.matmul %132, %96, %cst_101 {dimension_numbers = #tpu.dot_dimension_numbers<[1], [0], [0], [1], [0, 0, 1, 1], [], []>} : vector<16x64xf32>, vector<64x256xf32>, vector<16x256xf32> -> vector<16x256xf32>
    %135 = arith.addf %133, %134 : vector<16x256xf32>
    %136 = vector.extract_strided_slice %135 {offsets = [0, 0], sizes = [16, 64], strides = [1, 1]} : vector<16x256xf32> to vector<16x64xf32>
    %cst_102 = arith.constant 5.000000e-01 : f32
    %137 = vector.broadcast %cst_102 : f32 to vector<16x64xf32>
    %138 = arith.mulf %137, %136 : vector<16x64xf32>
    %139 = math.tanh %138 : vector<16x64xf32>
    %cst_103 = arith.constant 5.000000e-01 : f32
    %140 = vector.broadcast %cst_103 : f32 to vector<16x64xf32>
    %141 = arith.mulf %140, %139 : vector<16x64xf32>
    %cst_104 = arith.constant 5.000000e-01 : f32
    %142 = vector.broadcast %cst_104 : f32 to vector<16x64xf32>
    %143 = arith.addf %141, %142 : vector<16x64xf32>
    %144 = vector.extract_strided_slice %135 {offsets = [0, 64], sizes = [16, 64], strides = [1, 1]} : vector<16x256xf32> to vector<16x64xf32>
    %cst_105 = arith.constant 5.000000e-01 : f32
    %145 = vector.broadcast %cst_105 : f32 to vector<16x64xf32>
    %146 = arith.mulf %145, %144 : vector<16x64xf32>
    %147 = math.tanh %146 : vector<16x64xf32>
    %cst_106 = arith.constant 5.000000e-01 : f32
    %148 = vector.broadcast %cst_106 : f32 to vector<16x64xf32>
    %149 = arith.mulf %148, %147 : vector<16x64xf32>
    %cst_107 = arith.constant 5.000000e-01 : f32
    %150 = vector.broadcast %cst_107 : f32 to vector<16x64xf32>
    %151 = arith.addf %149, %150 : vector<16x64xf32>
    %152 = vector.extract_strided_slice %135 {offsets = [0, 128], sizes = [16, 64], strides = [1, 1]} : vector<16x256xf32> to vector<16x64xf32>
    %153 = math.tanh %152 : vector<16x64xf32>
    %154 = vector.extract_strided_slice %135 {offsets = [0, 192], sizes = [16, 64], strides = [1, 1]} : vector<16x256xf32> to vector<16x64xf32>
    %cst_108 = arith.constant 5.000000e-01 : f32
    %155 = vector.broadcast %cst_108 : f32 to vector<16x64xf32>
    %156 = arith.mulf %155, %154 : vector<16x64xf32>
    %157 = math.tanh %156 : vector<16x64xf32>
    %cst_109 = arith.constant 5.000000e-01 : f32
    %158 = vector.broadcast %cst_109 : f32 to vector<16x64xf32>
    %159 = arith.mulf %158, %157 : vector<16x64xf32>
    %cst_110 = arith.constant 5.000000e-01 : f32
    %160 = vector.broadcast %cst_110 : f32 to vector<16x64xf32>
    %161 = arith.addf %159, %160 : vector<16x64xf32>
    %162 = arith.mulf %151, %130 : vector<16x64xf32>
    %163 = arith.mulf %143, %153 : vector<16x64xf32>
    %164 = arith.addf %162, %163 : vector<16x64xf32>
    %165 = math.tanh %164 : vector<16x64xf32>
    %166 = arith.mulf %161, %165 : vector<16x64xf32>
    %c32_111 = arith.constant 32 : index
    %c0_112 = arith.constant 0 : index
    %167 = vector.load %arg17[%c32_111, %c0_112] : memref<208x256xf32, #tpu.memory_space<vmem>>, vector<16x256xf32>
    %cst_113 = arith.constant dense<0.000000e+00> : vector<16x256xf32>
    %168 = tpu.matmul %166, %96, %cst_113 {dimension_numbers = #tpu.dot_dimension_numbers<[1], [0], [0], [1], [0, 0, 1, 1], [], []>} : vector<16x64xf32>, vector<64x256xf32>, vector<16x256xf32> -> vector<16x256xf32>
    %169 = arith.addf %167, %168 : vector<16x256xf32>
    %170 = vector.extract_strided_slice %169 {offsets = [0, 0], sizes = [16, 64], strides = [1, 1]} : vector<16x256xf32> to vector<16x64xf32>
    %cst_114 = arith.constant 5.000000e-01 : f32
    %171 = vector.broadcast %cst_114 : f32 to vector<16x64xf32>
    %172 = arith.mulf %171, %170 : vector<16x64xf32>
    %173 = math.tanh %172 : vector<16x64xf32>
    %cst_115 = arith.constant 5.000000e-01 : f32
    %174 = vector.broadcast %cst_115 : f32 to vector<16x64xf32>
    %175 = arith.mulf %174, %173 : vector<16x64xf32>
    %cst_116 = arith.constant 5.000000e-01 : f32
    %176 = vector.broadcast %cst_116 : f32 to vector<16x64xf32>
    %177 = arith.addf %175, %176 : vector<16x64xf32>
    %178 = vector.extract_strided_slice %169 {offsets = [0, 64], sizes = [16, 64], strides = [1, 1]} : vector<16x256xf32> to vector<16x64xf32>
    %cst_117 = arith.constant 5.000000e-01 : f32
    %179 = vector.broadcast %cst_117 : f32 to vector<16x64xf32>
    %180 = arith.mulf %179, %178 : vector<16x64xf32>
    %181 = math.tanh %180 : vector<16x64xf32>
    %cst_118 = arith.constant 5.000000e-01 : f32
    %182 = vector.broadcast %cst_118 : f32 to vector<16x64xf32>
    %183 = arith.mulf %182, %181 : vector<16x64xf32>
    %cst_119 = arith.constant 5.000000e-01 : f32
    %184 = vector.broadcast %cst_119 : f32 to vector<16x64xf32>
    %185 = arith.addf %183, %184 : vector<16x64xf32>
    %186 = vector.extract_strided_slice %169 {offsets = [0, 128], sizes = [16, 64], strides = [1, 1]} : vector<16x256xf32> to vector<16x64xf32>
    %187 = math.tanh %186 : vector<16x64xf32>
    %188 = vector.extract_strided_slice %169 {offsets = [0, 192], sizes = [16, 64], strides = [1, 1]} : vector<16x256xf32> to vector<16x64xf32>
    %cst_120 = arith.constant 5.000000e-01 : f32
    %189 = vector.broadcast %cst_120 : f32 to vector<16x64xf32>
    %190 = arith.mulf %189, %188 : vector<16x64xf32>
    %191 = math.tanh %190 : vector<16x64xf32>
    %cst_121 = arith.constant 5.000000e-01 : f32
    %192 = vector.broadcast %cst_121 : f32 to vector<16x64xf32>
    %193 = arith.mulf %192, %191 : vector<16x64xf32>
    %cst_122 = arith.constant 5.000000e-01 : f32
    %194 = vector.broadcast %cst_122 : f32 to vector<16x64xf32>
    %195 = arith.addf %193, %194 : vector<16x64xf32>
    %196 = arith.mulf %185, %164 : vector<16x64xf32>
    %197 = arith.mulf %177, %187 : vector<16x64xf32>
    %198 = arith.addf %196, %197 : vector<16x64xf32>
    %199 = math.tanh %198 : vector<16x64xf32>
    %200 = arith.mulf %195, %199 : vector<16x64xf32>
    %c48_123 = arith.constant 48 : index
    %c0_124 = arith.constant 0 : index
    %201 = vector.load %arg17[%c48_123, %c0_124] : memref<208x256xf32, #tpu.memory_space<vmem>>, vector<16x256xf32>
    %cst_125 = arith.constant dense<0.000000e+00> : vector<16x256xf32>
    %202 = tpu.matmul %200, %96, %cst_125 {dimension_numbers = #tpu.dot_dimension_numbers<[1], [0], [0], [1], [0, 0, 1, 1], [], []>} : vector<16x64xf32>, vector<64x256xf32>, vector<16x256xf32> -> vector<16x256xf32>
    %203 = arith.addf %201, %202 : vector<16x256xf32>
    %204 = vector.extract_strided_slice %203 {offsets = [0, 0], sizes = [16, 64], strides = [1, 1]} : vector<16x256xf32> to vector<16x64xf32>
    %cst_126 = arith.constant 5.000000e-01 : f32
    %205 = vector.broadcast %cst_126 : f32 to vector<16x64xf32>
    %206 = arith.mulf %205, %204 : vector<16x64xf32>
    %207 = math.tanh %206 : vector<16x64xf32>
    %cst_127 = arith.constant 5.000000e-01 : f32
    %208 = vector.broadcast %cst_127 : f32 to vector<16x64xf32>
    %209 = arith.mulf %208, %207 : vector<16x64xf32>
    %cst_128 = arith.constant 5.000000e-01 : f32
    %210 = vector.broadcast %cst_128 : f32 to vector<16x64xf32>
    %211 = arith.addf %209, %210 : vector<16x64xf32>
    %212 = vector.extract_strided_slice %203 {offsets = [0, 64], sizes = [16, 64], strides = [1, 1]} : vector<16x256xf32> to vector<16x64xf32>
    %cst_129 = arith.constant 5.000000e-01 : f32
    %213 = vector.broadcast %cst_129 : f32 to vector<16x64xf32>
    %214 = arith.mulf %213, %212 : vector<16x64xf32>
    %215 = math.tanh %214 : vector<16x64xf32>
    %cst_130 = arith.constant 5.000000e-01 : f32
    %216 = vector.broadcast %cst_130 : f32 to vector<16x64xf32>
    %217 = arith.mulf %216, %215 : vector<16x64xf32>
    %cst_131 = arith.constant 5.000000e-01 : f32
    %218 = vector.broadcast %cst_131 : f32 to vector<16x64xf32>
    %219 = arith.addf %217, %218 : vector<16x64xf32>
    %220 = vector.extract_strided_slice %203 {offsets = [0, 128], sizes = [16, 64], strides = [1, 1]} : vector<16x256xf32> to vector<16x64xf32>
    %221 = math.tanh %220 : vector<16x64xf32>
    %222 = vector.extract_strided_slice %203 {offsets = [0, 192], sizes = [16, 64], strides = [1, 1]} : vector<16x256xf32> to vector<16x64xf32>
    %cst_132 = arith.constant 5.000000e-01 : f32
    %223 = vector.broadcast %cst_132 : f32 to vector<16x64xf32>
    %224 = arith.mulf %223, %222 : vector<16x64xf32>
    %225 = math.tanh %224 : vector<16x64xf32>
    %cst_133 = arith.constant 5.000000e-01 : f32
    %226 = vector.broadcast %cst_133 : f32 to vector<16x64xf32>
    %227 = arith.mulf %226, %225 : vector<16x64xf32>
    %cst_134 = arith.constant 5.000000e-01 : f32
    %228 = vector.broadcast %cst_134 : f32 to vector<16x64xf32>
    %229 = arith.addf %227, %228 : vector<16x64xf32>
    %230 = arith.mulf %219, %198 : vector<16x64xf32>
    %231 = arith.mulf %211, %221 : vector<16x64xf32>
    %232 = arith.addf %230, %231 : vector<16x64xf32>
    %233 = math.tanh %232 : vector<16x64xf32>
    %234 = arith.mulf %229, %233 : vector<16x64xf32>
    %c64_135 = arith.constant 64 : index
    %c0_136 = arith.constant 0 : index
    %235 = vector.load %arg17[%c64_135, %c0_136] : memref<208x256xf32, #tpu.memory_space<vmem>>, vector<16x256xf32>
    %cst_137 = arith.constant dense<0.000000e+00> : vector<16x256xf32>
    %236 = tpu.matmul %234, %96, %cst_137 {dimension_numbers = #tpu.dot_dimension_numbers<[1], [0], [0], [1], [0, 0, 1, 1], [], []>} : vector<16x64xf32>, vector<64x256xf32>, vector<16x256xf32> -> vector<16x256xf32>
    %237 = arith.addf %235, %236 : vector<16x256xf32>
    %238 = vector.extract_strided_slice %237 {offsets = [0, 0], sizes = [16, 64], strides = [1, 1]} : vector<16x256xf32> to vector<16x64xf32>
    %cst_138 = arith.constant 5.000000e-01 : f32
    %239 = vector.broadcast %cst_138 : f32 to vector<16x64xf32>
    %240 = arith.mulf %239, %238 : vector<16x64xf32>
    %241 = math.tanh %240 : vector<16x64xf32>
    %cst_139 = arith.constant 5.000000e-01 : f32
    %242 = vector.broadcast %cst_139 : f32 to vector<16x64xf32>
    %243 = arith.mulf %242, %241 : vector<16x64xf32>
    %cst_140 = arith.constant 5.000000e-01 : f32
    %244 = vector.broadcast %cst_140 : f32 to vector<16x64xf32>
    %245 = arith.addf %243, %244 : vector<16x64xf32>
    %246 = vector.extract_strided_slice %237 {offsets = [0, 64], sizes = [16, 64], strides = [1, 1]} : vector<16x256xf32> to vector<16x64xf32>
    %cst_141 = arith.constant 5.000000e-01 : f32
    %247 = vector.broadcast %cst_141 : f32 to vector<16x64xf32>
    %248 = arith.mulf %247, %246 : vector<16x64xf32>
    %249 = math.tanh %248 : vector<16x64xf32>
    %cst_142 = arith.constant 5.000000e-01 : f32
    %250 = vector.broadcast %cst_142 : f32 to vector<16x64xf32>
    %251 = arith.mulf %250, %249 : vector<16x64xf32>
    %cst_143 = arith.constant 5.000000e-01 : f32
    %252 = vector.broadcast %cst_143 : f32 to vector<16x64xf32>
    %253 = arith.addf %251, %252 : vector<16x64xf32>
    %254 = vector.extract_strided_slice %237 {offsets = [0, 128], sizes = [16, 64], strides = [1, 1]} : vector<16x256xf32> to vector<16x64xf32>
    %255 = math.tanh %254 : vector<16x64xf32>
    %256 = vector.extract_strided_slice %237 {offsets = [0, 192], sizes = [16, 64], strides = [1, 1]} : vector<16x256xf32> to vector<16x64xf32>
    %cst_144 = arith.constant 5.000000e-01 : f32
    %257 = vector.broadcast %cst_144 : f32 to vector<16x64xf32>
    %258 = arith.mulf %257, %256 : vector<16x64xf32>
    %259 = math.tanh %258 : vector<16x64xf32>
    %cst_145 = arith.constant 5.000000e-01 : f32
    %260 = vector.broadcast %cst_145 : f32 to vector<16x64xf32>
    %261 = arith.mulf %260, %259 : vector<16x64xf32>
    %cst_146 = arith.constant 5.000000e-01 : f32
    %262 = vector.broadcast %cst_146 : f32 to vector<16x64xf32>
    %263 = arith.addf %261, %262 : vector<16x64xf32>
    %264 = arith.mulf %253, %232 : vector<16x64xf32>
    %265 = arith.mulf %245, %255 : vector<16x64xf32>
    %266 = arith.addf %264, %265 : vector<16x64xf32>
    %267 = math.tanh %266 : vector<16x64xf32>
    %268 = arith.mulf %263, %267 : vector<16x64xf32>
    %c80_147 = arith.constant 80 : index
    %c0_148 = arith.constant 0 : index
    %269 = vector.load %arg17[%c80_147, %c0_148] : memref<208x256xf32, #tpu.memory_space<vmem>>, vector<16x256xf32>
    %cst_149 = arith.constant dense<0.000000e+00> : vector<16x256xf32>
    %270 = tpu.matmul %268, %96, %cst_149 {dimension_numbers = #tpu.dot_dimension_numbers<[1], [0], [0], [1], [0, 0, 1, 1], [], []>} : vector<16x64xf32>, vector<64x256xf32>, vector<16x256xf32> -> vector<16x256xf32>
    %271 = arith.addf %269, %270 : vector<16x256xf32>
    %272 = vector.extract_strided_slice %271 {offsets = [0, 0], sizes = [16, 64], strides = [1, 1]} : vector<16x256xf32> to vector<16x64xf32>
    %cst_150 = arith.constant 5.000000e-01 : f32
    %273 = vector.broadcast %cst_150 : f32 to vector<16x64xf32>
    %274 = arith.mulf %273, %272 : vector<16x64xf32>
    %275 = math.tanh %274 : vector<16x64xf32>
    %cst_151 = arith.constant 5.000000e-01 : f32
    %276 = vector.broadcast %cst_151 : f32 to vector<16x64xf32>
    %277 = arith.mulf %276, %275 : vector<16x64xf32>
    %cst_152 = arith.constant 5.000000e-01 : f32
    %278 = vector.broadcast %cst_152 : f32 to vector<16x64xf32>
    %279 = arith.addf %277, %278 : vector<16x64xf32>
    %280 = vector.extract_strided_slice %271 {offsets = [0, 64], sizes = [16, 64], strides = [1, 1]} : vector<16x256xf32> to vector<16x64xf32>
    %cst_153 = arith.constant 5.000000e-01 : f32
    %281 = vector.broadcast %cst_153 : f32 to vector<16x64xf32>
    %282 = arith.mulf %281, %280 : vector<16x64xf32>
    %283 = math.tanh %282 : vector<16x64xf32>
    %cst_154 = arith.constant 5.000000e-01 : f32
    %284 = vector.broadcast %cst_154 : f32 to vector<16x64xf32>
    %285 = arith.mulf %284, %283 : vector<16x64xf32>
    %cst_155 = arith.constant 5.000000e-01 : f32
    %286 = vector.broadcast %cst_155 : f32 to vector<16x64xf32>
    %287 = arith.addf %285, %286 : vector<16x64xf32>
    %288 = vector.extract_strided_slice %271 {offsets = [0, 128], sizes = [16, 64], strides = [1, 1]} : vector<16x256xf32> to vector<16x64xf32>
    %289 = math.tanh %288 : vector<16x64xf32>
    %290 = vector.extract_strided_slice %271 {offsets = [0, 192], sizes = [16, 64], strides = [1, 1]} : vector<16x256xf32> to vector<16x64xf32>
    %cst_156 = arith.constant 5.000000e-01 : f32
    %291 = vector.broadcast %cst_156 : f32 to vector<16x64xf32>
    %292 = arith.mulf %291, %290 : vector<16x64xf32>
    %293 = math.tanh %292 : vector<16x64xf32>
    %cst_157 = arith.constant 5.000000e-01 : f32
    %294 = vector.broadcast %cst_157 : f32 to vector<16x64xf32>
    %295 = arith.mulf %294, %293 : vector<16x64xf32>
    %cst_158 = arith.constant 5.000000e-01 : f32
    %296 = vector.broadcast %cst_158 : f32 to vector<16x64xf32>
    %297 = arith.addf %295, %296 : vector<16x64xf32>
    %298 = arith.mulf %287, %266 : vector<16x64xf32>
    %299 = arith.mulf %279, %289 : vector<16x64xf32>
    %300 = arith.addf %298, %299 : vector<16x64xf32>
    %301 = math.tanh %300 : vector<16x64xf32>
    %302 = arith.mulf %297, %301 : vector<16x64xf32>
    %c96_159 = arith.constant 96 : index
    %c0_160 = arith.constant 0 : index
    %303 = vector.load %arg17[%c96_159, %c0_160] : memref<208x256xf32, #tpu.memory_space<vmem>>, vector<16x256xf32>
    %cst_161 = arith.constant dense<0.000000e+00> : vector<16x256xf32>
    %304 = tpu.matmul %302, %96, %cst_161 {dimension_numbers = #tpu.dot_dimension_numbers<[1], [0], [0], [1], [0, 0, 1, 1], [], []>} : vector<16x64xf32>, vector<64x256xf32>, vector<16x256xf32> -> vector<16x256xf32>
    %305 = arith.addf %303, %304 : vector<16x256xf32>
    %306 = vector.extract_strided_slice %305 {offsets = [0, 0], sizes = [16, 64], strides = [1, 1]} : vector<16x256xf32> to vector<16x64xf32>
    %cst_162 = arith.constant 5.000000e-01 : f32
    %307 = vector.broadcast %cst_162 : f32 to vector<16x64xf32>
    %308 = arith.mulf %307, %306 : vector<16x64xf32>
    %309 = math.tanh %308 : vector<16x64xf32>
    %cst_163 = arith.constant 5.000000e-01 : f32
    %310 = vector.broadcast %cst_163 : f32 to vector<16x64xf32>
    %311 = arith.mulf %310, %309 : vector<16x64xf32>
    %cst_164 = arith.constant 5.000000e-01 : f32
    %312 = vector.broadcast %cst_164 : f32 to vector<16x64xf32>
    %313 = arith.addf %311, %312 : vector<16x64xf32>
    %314 = vector.extract_strided_slice %305 {offsets = [0, 64], sizes = [16, 64], strides = [1, 1]} : vector<16x256xf32> to vector<16x64xf32>
    %cst_165 = arith.constant 5.000000e-01 : f32
    %315 = vector.broadcast %cst_165 : f32 to vector<16x64xf32>
    %316 = arith.mulf %315, %314 : vector<16x64xf32>
    %317 = math.tanh %316 : vector<16x64xf32>
    %cst_166 = arith.constant 5.000000e-01 : f32
    %318 = vector.broadcast %cst_166 : f32 to vector<16x64xf32>
    %319 = arith.mulf %318, %317 : vector<16x64xf32>
    %cst_167 = arith.constant 5.000000e-01 : f32
    %320 = vector.broadcast %cst_167 : f32 to vector<16x64xf32>
    %321 = arith.addf %319, %320 : vector<16x64xf32>
    %322 = vector.extract_strided_slice %305 {offsets = [0, 128], sizes = [16, 64], strides = [1, 1]} : vector<16x256xf32> to vector<16x64xf32>
    %323 = math.tanh %322 : vector<16x64xf32>
    %324 = vector.extract_strided_slice %305 {offsets = [0, 192], sizes = [16, 64], strides = [1, 1]} : vector<16x256xf32> to vector<16x64xf32>
    %cst_168 = arith.constant 5.000000e-01 : f32
    %325 = vector.broadcast %cst_168 : f32 to vector<16x64xf32>
    %326 = arith.mulf %325, %324 : vector<16x64xf32>
    %327 = math.tanh %326 : vector<16x64xf32>
    %cst_169 = arith.constant 5.000000e-01 : f32
    %328 = vector.broadcast %cst_169 : f32 to vector<16x64xf32>
    %329 = arith.mulf %328, %327 : vector<16x64xf32>
    %cst_170 = arith.constant 5.000000e-01 : f32
    %330 = vector.broadcast %cst_170 : f32 to vector<16x64xf32>
    %331 = arith.addf %329, %330 : vector<16x64xf32>
    %332 = arith.mulf %321, %300 : vector<16x64xf32>
    %333 = arith.mulf %313, %323 : vector<16x64xf32>
    %334 = arith.addf %332, %333 : vector<16x64xf32>
    %335 = math.tanh %334 : vector<16x64xf32>
    %336 = arith.mulf %331, %335 : vector<16x64xf32>
    %c112_171 = arith.constant 112 : index
    %c0_172 = arith.constant 0 : index
    %337 = vector.load %arg17[%c112_171, %c0_172] : memref<208x256xf32, #tpu.memory_space<vmem>>, vector<16x256xf32>
    %cst_173 = arith.constant dense<0.000000e+00> : vector<16x256xf32>
    %338 = tpu.matmul %336, %96, %cst_173 {dimension_numbers = #tpu.dot_dimension_numbers<[1], [0], [0], [1], [0, 0, 1, 1], [], []>} : vector<16x64xf32>, vector<64x256xf32>, vector<16x256xf32> -> vector<16x256xf32>
    %339 = arith.addf %337, %338 : vector<16x256xf32>
    %340 = vector.extract_strided_slice %339 {offsets = [0, 0], sizes = [16, 64], strides = [1, 1]} : vector<16x256xf32> to vector<16x64xf32>
    %cst_174 = arith.constant 5.000000e-01 : f32
    %341 = vector.broadcast %cst_174 : f32 to vector<16x64xf32>
    %342 = arith.mulf %341, %340 : vector<16x64xf32>
    %343 = math.tanh %342 : vector<16x64xf32>
    %cst_175 = arith.constant 5.000000e-01 : f32
    %344 = vector.broadcast %cst_175 : f32 to vector<16x64xf32>
    %345 = arith.mulf %344, %343 : vector<16x64xf32>
    %cst_176 = arith.constant 5.000000e-01 : f32
    %346 = vector.broadcast %cst_176 : f32 to vector<16x64xf32>
    %347 = arith.addf %345, %346 : vector<16x64xf32>
    %348 = vector.extract_strided_slice %339 {offsets = [0, 64], sizes = [16, 64], strides = [1, 1]} : vector<16x256xf32> to vector<16x64xf32>
    %cst_177 = arith.constant 5.000000e-01 : f32
    %349 = vector.broadcast %cst_177 : f32 to vector<16x64xf32>
    %350 = arith.mulf %349, %348 : vector<16x64xf32>
    %351 = math.tanh %350 : vector<16x64xf32>
    %cst_178 = arith.constant 5.000000e-01 : f32
    %352 = vector.broadcast %cst_178 : f32 to vector<16x64xf32>
    %353 = arith.mulf %352, %351 : vector<16x64xf32>
    %cst_179 = arith.constant 5.000000e-01 : f32
    %354 = vector.broadcast %cst_179 : f32 to vector<16x64xf32>
    %355 = arith.addf %353, %354 : vector<16x64xf32>
    %356 = vector.extract_strided_slice %339 {offsets = [0, 128], sizes = [16, 64], strides = [1, 1]} : vector<16x256xf32> to vector<16x64xf32>
    %357 = math.tanh %356 : vector<16x64xf32>
    %358 = vector.extract_strided_slice %339 {offsets = [0, 192], sizes = [16, 64], strides = [1, 1]} : vector<16x256xf32> to vector<16x64xf32>
    %cst_180 = arith.constant 5.000000e-01 : f32
    %359 = vector.broadcast %cst_180 : f32 to vector<16x64xf32>
    %360 = arith.mulf %359, %358 : vector<16x64xf32>
    %361 = math.tanh %360 : vector<16x64xf32>
    %cst_181 = arith.constant 5.000000e-01 : f32
    %362 = vector.broadcast %cst_181 : f32 to vector<16x64xf32>
    %363 = arith.mulf %362, %361 : vector<16x64xf32>
    %cst_182 = arith.constant 5.000000e-01 : f32
    %364 = vector.broadcast %cst_182 : f32 to vector<16x64xf32>
    %365 = arith.addf %363, %364 : vector<16x64xf32>
    %366 = arith.mulf %355, %334 : vector<16x64xf32>
    %367 = arith.mulf %347, %357 : vector<16x64xf32>
    %368 = arith.addf %366, %367 : vector<16x64xf32>
    %369 = math.tanh %368 : vector<16x64xf32>
    %370 = arith.mulf %365, %369 : vector<16x64xf32>
    %c128_183 = arith.constant 128 : index
    %c0_184 = arith.constant 0 : index
    %371 = vector.load %arg17[%c128_183, %c0_184] : memref<208x256xf32, #tpu.memory_space<vmem>>, vector<16x256xf32>
    %cst_185 = arith.constant dense<0.000000e+00> : vector<16x256xf32>
    %372 = tpu.matmul %370, %96, %cst_185 {dimension_numbers = #tpu.dot_dimension_numbers<[1], [0], [0], [1], [0, 0, 1, 1], [], []>} : vector<16x64xf32>, vector<64x256xf32>, vector<16x256xf32> -> vector<16x256xf32>
    %373 = arith.addf %371, %372 : vector<16x256xf32>
    %374 = vector.extract_strided_slice %373 {offsets = [0, 0], sizes = [16, 64], strides = [1, 1]} : vector<16x256xf32> to vector<16x64xf32>
    %cst_186 = arith.constant 5.000000e-01 : f32
    %375 = vector.broadcast %cst_186 : f32 to vector<16x64xf32>
    %376 = arith.mulf %375, %374 : vector<16x64xf32>
    %377 = math.tanh %376 : vector<16x64xf32>
    %cst_187 = arith.constant 5.000000e-01 : f32
    %378 = vector.broadcast %cst_187 : f32 to vector<16x64xf32>
    %379 = arith.mulf %378, %377 : vector<16x64xf32>
    %cst_188 = arith.constant 5.000000e-01 : f32
    %380 = vector.broadcast %cst_188 : f32 to vector<16x64xf32>
    %381 = arith.addf %379, %380 : vector<16x64xf32>
    %382 = vector.extract_strided_slice %373 {offsets = [0, 64], sizes = [16, 64], strides = [1, 1]} : vector<16x256xf32> to vector<16x64xf32>
    %cst_189 = arith.constant 5.000000e-01 : f32
    %383 = vector.broadcast %cst_189 : f32 to vector<16x64xf32>
    %384 = arith.mulf %383, %382 : vector<16x64xf32>
    %385 = math.tanh %384 : vector<16x64xf32>
    %cst_190 = arith.constant 5.000000e-01 : f32
    %386 = vector.broadcast %cst_190 : f32 to vector<16x64xf32>
    %387 = arith.mulf %386, %385 : vector<16x64xf32>
    %cst_191 = arith.constant 5.000000e-01 : f32
    %388 = vector.broadcast %cst_191 : f32 to vector<16x64xf32>
    %389 = arith.addf %387, %388 : vector<16x64xf32>
    %390 = vector.extract_strided_slice %373 {offsets = [0, 128], sizes = [16, 64], strides = [1, 1]} : vector<16x256xf32> to vector<16x64xf32>
    %391 = math.tanh %390 : vector<16x64xf32>
    %392 = vector.extract_strided_slice %373 {offsets = [0, 192], sizes = [16, 64], strides = [1, 1]} : vector<16x256xf32> to vector<16x64xf32>
    %cst_192 = arith.constant 5.000000e-01 : f32
    %393 = vector.broadcast %cst_192 : f32 to vector<16x64xf32>
    %394 = arith.mulf %393, %392 : vector<16x64xf32>
    %395 = math.tanh %394 : vector<16x64xf32>
    %cst_193 = arith.constant 5.000000e-01 : f32
    %396 = vector.broadcast %cst_193 : f32 to vector<16x64xf32>
    %397 = arith.mulf %396, %395 : vector<16x64xf32>
    %cst_194 = arith.constant 5.000000e-01 : f32
    %398 = vector.broadcast %cst_194 : f32 to vector<16x64xf32>
    %399 = arith.addf %397, %398 : vector<16x64xf32>
    %400 = arith.mulf %389, %368 : vector<16x64xf32>
    %401 = arith.mulf %381, %391 : vector<16x64xf32>
    %402 = arith.addf %400, %401 : vector<16x64xf32>
    %403 = math.tanh %402 : vector<16x64xf32>
    %404 = arith.mulf %399, %403 : vector<16x64xf32>
    %c144_195 = arith.constant 144 : index
    %c0_196 = arith.constant 0 : index
    %405 = vector.load %arg17[%c144_195, %c0_196] : memref<208x256xf32, #tpu.memory_space<vmem>>, vector<16x256xf32>
    %cst_197 = arith.constant dense<0.000000e+00> : vector<16x256xf32>
    %406 = tpu.matmul %404, %96, %cst_197 {dimension_numbers = #tpu.dot_dimension_numbers<[1], [0], [0], [1], [0, 0, 1, 1], [], []>} : vector<16x64xf32>, vector<64x256xf32>, vector<16x256xf32> -> vector<16x256xf32>
    %407 = arith.addf %405, %406 : vector<16x256xf32>
    %408 = vector.extract_strided_slice %407 {offsets = [0, 0], sizes = [16, 64], strides = [1, 1]} : vector<16x256xf32> to vector<16x64xf32>
    %cst_198 = arith.constant 5.000000e-01 : f32
    %409 = vector.broadcast %cst_198 : f32 to vector<16x64xf32>
    %410 = arith.mulf %409, %408 : vector<16x64xf32>
    %411 = math.tanh %410 : vector<16x64xf32>
    %cst_199 = arith.constant 5.000000e-01 : f32
    %412 = vector.broadcast %cst_199 : f32 to vector<16x64xf32>
    %413 = arith.mulf %412, %411 : vector<16x64xf32>
    %cst_200 = arith.constant 5.000000e-01 : f32
    %414 = vector.broadcast %cst_200 : f32 to vector<16x64xf32>
    %415 = arith.addf %413, %414 : vector<16x64xf32>
    %416 = vector.extract_strided_slice %407 {offsets = [0, 64], sizes = [16, 64], strides = [1, 1]} : vector<16x256xf32> to vector<16x64xf32>
    %cst_201 = arith.constant 5.000000e-01 : f32
    %417 = vector.broadcast %cst_201 : f32 to vector<16x64xf32>
    %418 = arith.mulf %417, %416 : vector<16x64xf32>
    %419 = math.tanh %418 : vector<16x64xf32>
    %cst_202 = arith.constant 5.000000e-01 : f32
    %420 = vector.broadcast %cst_202 : f32 to vector<16x64xf32>
    %421 = arith.mulf %420, %419 : vector<16x64xf32>
    %cst_203 = arith.constant 5.000000e-01 : f32
    %422 = vector.broadcast %cst_203 : f32 to vector<16x64xf32>
    %423 = arith.addf %421, %422 : vector<16x64xf32>
    %424 = vector.extract_strided_slice %407 {offsets = [0, 128], sizes = [16, 64], strides = [1, 1]} : vector<16x256xf32> to vector<16x64xf32>
    %425 = math.tanh %424 : vector<16x64xf32>
    %426 = vector.extract_strided_slice %407 {offsets = [0, 192], sizes = [16, 64], strides = [1, 1]} : vector<16x256xf32> to vector<16x64xf32>
    %cst_204 = arith.constant 5.000000e-01 : f32
    %427 = vector.broadcast %cst_204 : f32 to vector<16x64xf32>
    %428 = arith.mulf %427, %426 : vector<16x64xf32>
    %429 = math.tanh %428 : vector<16x64xf32>
    %cst_205 = arith.constant 5.000000e-01 : f32
    %430 = vector.broadcast %cst_205 : f32 to vector<16x64xf32>
    %431 = arith.mulf %430, %429 : vector<16x64xf32>
    %cst_206 = arith.constant 5.000000e-01 : f32
    %432 = vector.broadcast %cst_206 : f32 to vector<16x64xf32>
    %433 = arith.addf %431, %432 : vector<16x64xf32>
    %434 = arith.mulf %423, %402 : vector<16x64xf32>
    %435 = arith.mulf %415, %425 : vector<16x64xf32>
    %436 = arith.addf %434, %435 : vector<16x64xf32>
    %437 = math.tanh %436 : vector<16x64xf32>
    %438 = arith.mulf %433, %437 : vector<16x64xf32>
    %c160_207 = arith.constant 160 : index
    %c0_208 = arith.constant 0 : index
    %439 = vector.load %arg17[%c160_207, %c0_208] : memref<208x256xf32, #tpu.memory_space<vmem>>, vector<16x256xf32>
    %cst_209 = arith.constant dense<0.000000e+00> : vector<16x256xf32>
    %440 = tpu.matmul %438, %96, %cst_209 {dimension_numbers = #tpu.dot_dimension_numbers<[1], [0], [0], [1], [0, 0, 1, 1], [], []>} : vector<16x64xf32>, vector<64x256xf32>, vector<16x256xf32> -> vector<16x256xf32>
    %441 = arith.addf %439, %440 : vector<16x256xf32>
    %442 = vector.extract_strided_slice %441 {offsets = [0, 0], sizes = [16, 64], strides = [1, 1]} : vector<16x256xf32> to vector<16x64xf32>
    %cst_210 = arith.constant 5.000000e-01 : f32
    %443 = vector.broadcast %cst_210 : f32 to vector<16x64xf32>
    %444 = arith.mulf %443, %442 : vector<16x64xf32>
    %445 = math.tanh %444 : vector<16x64xf32>
    %cst_211 = arith.constant 5.000000e-01 : f32
    %446 = vector.broadcast %cst_211 : f32 to vector<16x64xf32>
    %447 = arith.mulf %446, %445 : vector<16x64xf32>
    %cst_212 = arith.constant 5.000000e-01 : f32
    %448 = vector.broadcast %cst_212 : f32 to vector<16x64xf32>
    %449 = arith.addf %447, %448 : vector<16x64xf32>
    %450 = vector.extract_strided_slice %441 {offsets = [0, 64], sizes = [16, 64], strides = [1, 1]} : vector<16x256xf32> to vector<16x64xf32>
    %cst_213 = arith.constant 5.000000e-01 : f32
    %451 = vector.broadcast %cst_213 : f32 to vector<16x64xf32>
    %452 = arith.mulf %451, %450 : vector<16x64xf32>
    %453 = math.tanh %452 : vector<16x64xf32>
    %cst_214 = arith.constant 5.000000e-01 : f32
    %454 = vector.broadcast %cst_214 : f32 to vector<16x64xf32>
    %455 = arith.mulf %454, %453 : vector<16x64xf32>
    %cst_215 = arith.constant 5.000000e-01 : f32
    %456 = vector.broadcast %cst_215 : f32 to vector<16x64xf32>
    %457 = arith.addf %455, %456 : vector<16x64xf32>
    %458 = vector.extract_strided_slice %441 {offsets = [0, 128], sizes = [16, 64], strides = [1, 1]} : vector<16x256xf32> to vector<16x64xf32>
    %459 = math.tanh %458 : vector<16x64xf32>
    %460 = vector.extract_strided_slice %441 {offsets = [0, 192], sizes = [16, 64], strides = [1, 1]} : vector<16x256xf32> to vector<16x64xf32>
    %cst_216 = arith.constant 5.000000e-01 : f32
    %461 = vector.broadcast %cst_216 : f32 to vector<16x64xf32>
    %462 = arith.mulf %461, %460 : vector<16x64xf32>
    %463 = math.tanh %462 : vector<16x64xf32>
    %cst_217 = arith.constant 5.000000e-01 : f32
    %464 = vector.broadcast %cst_217 : f32 to vector<16x64xf32>
    %465 = arith.mulf %464, %463 : vector<16x64xf32>
    %cst_218 = arith.constant 5.000000e-01 : f32
    %466 = vector.broadcast %cst_218 : f32 to vector<16x64xf32>
    %467 = arith.addf %465, %466 : vector<16x64xf32>
    %468 = arith.mulf %457, %436 : vector<16x64xf32>
    %469 = arith.mulf %449, %459 : vector<16x64xf32>
    %470 = arith.addf %468, %469 : vector<16x64xf32>
    %471 = math.tanh %470 : vector<16x64xf32>
    %472 = arith.mulf %467, %471 : vector<16x64xf32>
    %c176_219 = arith.constant 176 : index
    %c0_220 = arith.constant 0 : index
    %473 = vector.load %arg17[%c176_219, %c0_220] : memref<208x256xf32, #tpu.memory_space<vmem>>, vector<16x256xf32>
    %cst_221 = arith.constant dense<0.000000e+00> : vector<16x256xf32>
    %474 = tpu.matmul %472, %96, %cst_221 {dimension_numbers = #tpu.dot_dimension_numbers<[1], [0], [0], [1], [0, 0, 1, 1], [], []>} : vector<16x64xf32>, vector<64x256xf32>, vector<16x256xf32> -> vector<16x256xf32>
    %475 = arith.addf %473, %474 : vector<16x256xf32>
    %476 = vector.extract_strided_slice %475 {offsets = [0, 0], sizes = [16, 64], strides = [1, 1]} : vector<16x256xf32> to vector<16x64xf32>
    %cst_222 = arith.constant 5.000000e-01 : f32
    %477 = vector.broadcast %cst_222 : f32 to vector<16x64xf32>
    %478 = arith.mulf %477, %476 : vector<16x64xf32>
    %479 = math.tanh %478 : vector<16x64xf32>
    %cst_223 = arith.constant 5.000000e-01 : f32
    %480 = vector.broadcast %cst_223 : f32 to vector<16x64xf32>
    %481 = arith.mulf %480, %479 : vector<16x64xf32>
    %cst_224 = arith.constant 5.000000e-01 : f32
    %482 = vector.broadcast %cst_224 : f32 to vector<16x64xf32>
    %483 = arith.addf %481, %482 : vector<16x64xf32>
    %484 = vector.extract_strided_slice %475 {offsets = [0, 64], sizes = [16, 64], strides = [1, 1]} : vector<16x256xf32> to vector<16x64xf32>
    %cst_225 = arith.constant 5.000000e-01 : f32
    %485 = vector.broadcast %cst_225 : f32 to vector<16x64xf32>
    %486 = arith.mulf %485, %484 : vector<16x64xf32>
    %487 = math.tanh %486 : vector<16x64xf32>
    %cst_226 = arith.constant 5.000000e-01 : f32
    %488 = vector.broadcast %cst_226 : f32 to vector<16x64xf32>
    %489 = arith.mulf %488, %487 : vector<16x64xf32>
    %cst_227 = arith.constant 5.000000e-01 : f32
    %490 = vector.broadcast %cst_227 : f32 to vector<16x64xf32>
    %491 = arith.addf %489, %490 : vector<16x64xf32>
    %492 = vector.extract_strided_slice %475 {offsets = [0, 128], sizes = [16, 64], strides = [1, 1]} : vector<16x256xf32> to vector<16x64xf32>
    %493 = math.tanh %492 : vector<16x64xf32>
    %494 = vector.extract_strided_slice %475 {offsets = [0, 192], sizes = [16, 64], strides = [1, 1]} : vector<16x256xf32> to vector<16x64xf32>
    %cst_228 = arith.constant 5.000000e-01 : f32
    %495 = vector.broadcast %cst_228 : f32 to vector<16x64xf32>
    %496 = arith.mulf %495, %494 : vector<16x64xf32>
    %497 = math.tanh %496 : vector<16x64xf32>
    %cst_229 = arith.constant 5.000000e-01 : f32
    %498 = vector.broadcast %cst_229 : f32 to vector<16x64xf32>
    %499 = arith.mulf %498, %497 : vector<16x64xf32>
    %cst_230 = arith.constant 5.000000e-01 : f32
    %500 = vector.broadcast %cst_230 : f32 to vector<16x64xf32>
    %501 = arith.addf %499, %500 : vector<16x64xf32>
    %502 = arith.mulf %491, %470 : vector<16x64xf32>
    %503 = arith.mulf %483, %493 : vector<16x64xf32>
    %504 = arith.addf %502, %503 : vector<16x64xf32>
    %505 = math.tanh %504 : vector<16x64xf32>
    %506 = arith.mulf %501, %505 : vector<16x64xf32>
    %c192_231 = arith.constant 192 : index
    %c0_232 = arith.constant 0 : index
    %507 = vector.load %arg17[%c192_231, %c0_232] : memref<208x256xf32, #tpu.memory_space<vmem>>, vector<16x256xf32>
    %cst_233 = arith.constant dense<0.000000e+00> : vector<16x256xf32>
    %508 = tpu.matmul %506, %96, %cst_233 {dimension_numbers = #tpu.dot_dimension_numbers<[1], [0], [0], [1], [0, 0, 1, 1], [], []>} : vector<16x64xf32>, vector<64x256xf32>, vector<16x256xf32> -> vector<16x256xf32>
    %509 = arith.addf %507, %508 : vector<16x256xf32>
    %510 = vector.extract_strided_slice %509 {offsets = [0, 0], sizes = [16, 64], strides = [1, 1]} : vector<16x256xf32> to vector<16x64xf32>
    %cst_234 = arith.constant 5.000000e-01 : f32
    %511 = vector.broadcast %cst_234 : f32 to vector<16x64xf32>
    %512 = arith.mulf %511, %510 : vector<16x64xf32>
    %513 = math.tanh %512 : vector<16x64xf32>
    %cst_235 = arith.constant 5.000000e-01 : f32
    %514 = vector.broadcast %cst_235 : f32 to vector<16x64xf32>
    %515 = arith.mulf %514, %513 : vector<16x64xf32>
    %cst_236 = arith.constant 5.000000e-01 : f32
    %516 = vector.broadcast %cst_236 : f32 to vector<16x64xf32>
    %517 = arith.addf %515, %516 : vector<16x64xf32>
    %518 = vector.extract_strided_slice %509 {offsets = [0, 64], sizes = [16, 64], strides = [1, 1]} : vector<16x256xf32> to vector<16x64xf32>
    %cst_237 = arith.constant 5.000000e-01 : f32
    %519 = vector.broadcast %cst_237 : f32 to vector<16x64xf32>
    %520 = arith.mulf %519, %518 : vector<16x64xf32>
    %521 = math.tanh %520 : vector<16x64xf32>
    %cst_238 = arith.constant 5.000000e-01 : f32
    %522 = vector.broadcast %cst_238 : f32 to vector<16x64xf32>
    %523 = arith.mulf %522, %521 : vector<16x64xf32>
    %cst_239 = arith.constant 5.000000e-01 : f32
    %524 = vector.broadcast %cst_239 : f32 to vector<16x64xf32>
    %525 = arith.addf %523, %524 : vector<16x64xf32>
    %526 = vector.extract_strided_slice %509 {offsets = [0, 128], sizes = [16, 64], strides = [1, 1]} : vector<16x256xf32> to vector<16x64xf32>
    %527 = math.tanh %526 : vector<16x64xf32>
    %528 = vector.extract_strided_slice %509 {offsets = [0, 192], sizes = [16, 64], strides = [1, 1]} : vector<16x256xf32> to vector<16x64xf32>
    %cst_240 = arith.constant 5.000000e-01 : f32
    %529 = vector.broadcast %cst_240 : f32 to vector<16x64xf32>
    %530 = arith.mulf %529, %528 : vector<16x64xf32>
    %531 = math.tanh %530 : vector<16x64xf32>
    %cst_241 = arith.constant 5.000000e-01 : f32
    %532 = vector.broadcast %cst_241 : f32 to vector<16x64xf32>
    %533 = arith.mulf %532, %531 : vector<16x64xf32>
    %cst_242 = arith.constant 5.000000e-01 : f32
    %534 = vector.broadcast %cst_242 : f32 to vector<16x64xf32>
    %535 = arith.addf %533, %534 : vector<16x64xf32>
    %536 = arith.mulf %525, %504 : vector<16x64xf32>
    %537 = arith.mulf %517, %527 : vector<16x64xf32>
    %538 = arith.addf %536, %537 : vector<16x64xf32>
    %539 = math.tanh %538 : vector<16x64xf32>
    %540 = arith.mulf %535, %539 : vector<16x64xf32>
    %c0_243 = arith.constant 0 : index
    %c0_244 = arith.constant 0 : index
    %541 = vector.load %arg10[%c0_243, %c0_244] : memref<64x64xf32, #tpu.memory_space<vmem>>, vector<64x64xf32>
    %cst_245 = arith.constant dense<0.000000e+00> : vector<16x64xf32>
    %542 = tpu.matmul %540, %541, %cst_245 {dimension_numbers = #tpu.dot_dimension_numbers<[1], [0], [0], [1], [0, 0, 1, 1], [], []>} : vector<16x64xf32>, vector<64x64xf32>, vector<16x64xf32> -> vector<16x64xf32>
    %c0_246 = arith.constant 0 : index
    %c0_247 = arith.constant 0 : index
    %543 = vector.load %arg11[%c0_246, %c0_247] : memref<1x64xf32, #tpu.memory_space<vmem>>, vector<1x64xf32>
    %544 = vector.broadcast %543 : vector<1x64xf32> to vector<16x64xf32>
    %545 = arith.addf %542, %544 : vector<16x64xf32>
    %cst_248 = arith.constant 0.000000e+00 : f32
    %546 = vector.broadcast %cst_248 : f32 to vector<16x64xf32>
    %547 = arith.maximumf %545, %546 : vector<16x64xf32>
    %c0_249 = arith.constant 0 : index
    %c0_250 = arith.constant 0 : index
    %548 = vector.load %arg12[%c0_249, %c0_250] : memref<1x64xf32, #tpu.memory_space<vmem>>, vector<1x64xf32>
    %549 = vector.broadcast %548 : vector<1x64xf32> to vector<16x64xf32>
    %550 = arith.mulf %547, %549 : vector<16x64xf32>
    %cst_251 = arith.constant dense<0.000000e+00> : vector<16xf32>
    %551 = vector.multi_reduction <add>, %550, %cst_251 [1] : vector<16x64xf32> to vector<16xf32>
    %552 = vector.shape_cast %551 : vector<16xf32> to vector<16x1xf32>
    %c0_252 = arith.constant 0 : index
    %c0_253 = arith.constant 0 : index
    %553 = vector.load %arg13[%c0_252, %c0_253] : memref<1x1xf32, #tpu.memory_space<vmem>>, vector<1x1xf32>
    %554 = vector.broadcast %553 : vector<1x1xf32> to vector<16x1xf32>
    %555 = arith.addf %552, %554 : vector<16x1xf32>
    %cst_254 = arith.constant 5.000000e-01 : f32
    %556 = vector.broadcast %cst_254 : f32 to vector<16x1xf32>
    %557 = arith.mulf %556, %555 : vector<16x1xf32>
    %558 = math.tanh %557 : vector<16x1xf32>
    %cst_255 = arith.constant 5.000000e-01 : f32
    %559 = vector.broadcast %cst_255 : f32 to vector<16x1xf32>
    %560 = arith.mulf %559, %558 : vector<16x1xf32>
    %cst_256 = arith.constant 5.000000e-01 : f32
    %561 = vector.broadcast %cst_256 : f32 to vector<16x1xf32>
    %562 = arith.addf %560, %561 : vector<16x1xf32>
    %c0_257 = arith.constant 0 : index
    %c0_258 = arith.constant 0 : index
    %563 = vector.load %arg14[%c0_257, %c0_258] : memref<16x1xf32, #tpu.memory_space<vmem>>, vector<16x1xf32>
    tpu.vector_store %arg14[%c0_257, %c0_258], %562 {strides = array<i32>} : memref<16x1xf32, #tpu.memory_space<vmem>>, vector<16x1xf32>,
    return
  }
  func.func @transform_0(%arg0: i32) -> (i32, i32) {
    %c0_i32 = arith.constant 0 : i32
    %c0_i32_0 = arith.constant 0 : i32
    return %arg0, %c0_i32 : i32, i32
  }
  func.func @transform_1(%arg0: i32) -> (i32, i32) {
    %c0_i32 = arith.constant 0 : i32
    %c0_i32_0 = arith.constant 0 : i32
    return %arg0, %c0_i32 : i32, i32
  }
  func.func @transform_2(%arg0: i32) -> (i32, i32) {
    %c0_i32 = arith.constant 0 : i32
    %c0_i32_0 = arith.constant 0 : i32
    %c0_i32_1 = arith.constant 0 : i32
    return %c0_i32, %c0_i32_0 : i32, i32
  }
  func.func @transform_3(%arg0: i32) -> (i32, i32) {
    %c0_i32 = arith.constant 0 : i32
    %c0_i32_0 = arith.constant 0 : i32
    %c0_i32_1 = arith.constant 0 : i32
    return %c0_i32, %c0_i32_0 : i32, i32
  }
  func.func @transform_4(%arg0: i32) -> (i32, i32) {
    %c0_i32 = arith.constant 0 : i32
    %c0_i32_0 = arith.constant 0 : i32
    %c0_i32_1 = arith.constant 0 : i32
    return %c0_i32, %c0_i32_0 : i32, i32
  }
  func.func @transform_5(%arg0: i32) -> (i32, i32) {
    %c0_i32 = arith.constant 0 : i32
    %c0_i32_0 = arith.constant 0 : i32
    %c0_i32_1 = arith.constant 0 : i32
    return %c0_i32, %c0_i32_0 : i32, i32
  }
  func.func @transform_6(%arg0: i32) -> (i32, i32) {
    %c0_i32 = arith.constant 0 : i32
    %c0_i32_0 = arith.constant 0 : i32
    %c0_i32_1 = arith.constant 0 : i32
    return %c0_i32, %c0_i32_0 : i32, i32
  }
  func.func @transform_7(%arg0: i32) -> (i32, i32) {
    %c0_i32 = arith.constant 0 : i32
    %c0_i32_0 = arith.constant 0 : i32
    %c0_i32_1 = arith.constant 0 : i32
    return %c0_i32, %c0_i32_0 : i32, i32
  }
  func.func @transform_8(%arg0: i32) -> (i32, i32) {
    %c0_i32 = arith.constant 0 : i32
    %c0_i32_0 = arith.constant 0 : i32
    %c0_i32_1 = arith.constant 0 : i32
    return %c0_i32, %c0_i32_0 : i32, i32
  }
  func.func @transform_9(%arg0: i32) -> (i32, i32) {
    %c0_i32 = arith.constant 0 : i32
    %c0_i32_0 = arith.constant 0 : i32
    %c0_i32_1 = arith.constant 0 : i32
    return %c0_i32, %c0_i32_0 : i32, i32
  }
  func.func @transform_10(%arg0: i32) -> (i32, i32) {
    %c0_i32 = arith.constant 0 : i32
    %c0_i32_0 = arith.constant 0 : i32
    %c0_i32_1 = arith.constant 0 : i32
    return %c0_i32, %c0_i32_0 : i32, i32
  }
  func.func @transform_11(%arg0: i32) -> (i32, i32) {
    %c0_i32 = arith.constant 0 : i32
    %c0_i32_0 = arith.constant 0 : i32
    %c0_i32_1 = arith.constant 0 : i32
    return %c0_i32, %c0_i32_0 : i32, i32
  }
  func.func @transform_12(%arg0: i32) -> (i32, i32) {
    %c0_i32 = arith.constant 0 : i32
    %c0_i32_0 = arith.constant 0 : i32
    %c0_i32_1 = arith.constant 0 : i32
    return %c0_i32, %c0_i32_0 : i32, i32
  }
  func.func @transform_13(%arg0: i32) -> (i32, i32) {
    %c0_i32 = arith.constant 0 : i32
    %c0_i32_0 = arith.constant 0 : i32
    return %arg0, %c0_i32 : i32, i32
  }
}

</mosaic_0001>

<bundles_post_ra>
// kernel: tpu_custom_call.1
= control target key start
LH: loop header
LB: loop body
LE: loop exit
PB: predicated region body
PF: predicated region fallthrough
CT: control target
= control target key end

     0   :  { %vm288_vm0 = vcmask 1044480   ;;  %vm107_vm1 = vcmask 39936   ;;  %vm1469_vm2 = vcmask 261120   ;;  %vm3542_vm3 = vcmask 523264   ;;  %s10410_s2 = inlined_call_operand.vmem [shape: f32[5,32], index: 2, kind: input, shape index: {}]   ;;  %s10411_s0 = inlined_call_operand.vmem [shape: f32[480,5], index: 0, kind: input, shape index: {}]   ;;  %s10412_s1 = inlined_call_operand.vmem [shape: f32[480,5], index: 1, kind: input, shape index: {}]   ;;  %s10413_s4 = inlined_call_operand.vmem [shape: f32[160,64], index: 4, kind: input, shape index: {}]   ;;  %s10414_s3 = inlined_call_operand.vmem [shape: f32[1,32], index: 3, kind: input, shape index: {}]   ;;  %s10415_s6 = inlined_call_operand.vmem [shape: f32[64,256], index: 6, kind: input, shape index: {}]   ;;  %s10416_s7 = inlined_call_operand.vmem [shape: f32[64,256], index: 7, kind: input, shape index: {}]   ;;  %s10417_s5 = inlined_call_operand.vmem [shape: f32[1,64], index: 5, kind: input, shape index: {}]   ;;  %s10418_s8 = inlined_call_operand.vmem [shape: f32[1,256], index: 8, kind: input, shape index: {}]   ;;  %s10419_s9 = inlined_call_operand.vmem [shape: f32[64,64], index: 9, kind: input, shape index: {}]   ;;  %s10420_s12 = inlined_call_operand.<no memory space> [shape: f32[1,1], index: 12, kind: input, shape index: {}]   ;;  %s10421_s10 = inlined_call_operand.vmem [shape: f32[1,64], index: 10, kind: input, shape index: {}]   ;;  %s10422_s11 = inlined_call_operand.vmem [shape: f32[1,64], index: 11, kind: input, shape index: {}]   ;;  %s10423_s13 = inlined_call_operand.vmem [shape: f32[16,1], index: 13, kind: output, shape index: {}]  }
   0x1   :  { %v46_v0 = vld [vmem:[%s10410_s2] sm:$0x1f]  ;;  %v57_v1 = vld [vmem:[%s10411_s0 + $0x50] sm:$0xff]  ;;  %v58_v2 = vld [vmem:[%s10411_s0 + $0x58] sm:$0xff]  ;;  %vm5950_vm4 = vcmask 7168  }
   0x2   :  { %7721 = vmatprep.subr.msk.mxu1 %vm288_vm0, %v46_v0  ;;  %6825 = vmatprep.mubr.msk.f32.mxu1 %vm107_vm1, %v57_v1  ;;  %v59_v3 = vld [vmem:[%s10411_s0 + $0x60] sm:$0xff]  ;;  %v60_v4 = vld [vmem:[%s10411_s0 + $0x68] sm:$0xff]  ;;  %v61_v5 = vld [vmem:[%s10411_s0 + $0x70] sm:$0xff] }
   0x3   :  { %7722 = vmatpush3.msk.msra.mxu1 %vm288_vm0, %v46_v0  ;;  %6808 = vmatprep.subr.msk.mxu0 %vm288_vm0, %v46_v0  ;;  %v62_v6 = vld [vmem:[%s10411_s0 + $0x78] sm:$0xff]  ;;  %v63_v7 = vld [vmem:[%s10411_s0 + $0x80] sm:$0xff]  ;;  %v64_v8 = vld [vmem:[%s10411_s0 + $0x88] sm:$0xff] }
   0x4   :  { %6826 = vmatmul.mubr.msk.f32.vlgmr.msra.gmra.mrb[0].mxu1 %vm107_vm1, %v58_v2  ;;  %6900 = vmatprep.subr.msk.mxu1 %vm288_vm0, %v46_v0  ;;  %v65_v9 = vld [vmem:[%s10411_s0 + $0x90] sm:$0xff]  ;;  %v66_v10 = vld [vmem:[%s10411_s0 + $0x98] sm:$0xff]  ;;  %v67_v11 = vld [vmem:[%s10411_s0 + $0xa0] sm:$0xff] }
   0x5   :  { %6901 = vmatpush3.msk.msra.mxu1 %vm288_vm0, %v46_v0  ;;  %6828 = vmatprep.mubr.msk.f32.mxu1 %vm107_vm1, %v59_v3  ;;  %v47_v12 = vld [vmem:[%s10411_s0] sm:$0xff]  ;;  %v48_v13 = vld [vmem:[%s10411_s0 + $0x8] sm:$0xff]  ;;  %v49_v14 = vld [vmem:[%s10411_s0 + $0x10] sm:$0xff] }
   0x6   :  { %6809 = vmatpush3.msk.msra.mxu0 %vm288_vm0, %v46_v0  ;;  %6810 = vmatprep.mubr.msk.f32.mxu0 %vm107_vm1, %v47_v12  ;;  %v68_v15 = vld [vmem:[%s10411_s0 + $0xa8] sm:$0xff]  ;;  %v50_v16 = vld [vmem:[%s10411_s0 + $0x18] sm:$0xff]  ;;  %v69_v17 = vld [vmem:[%s10411_s0 + $0xb0] sm:$0xff] }
   0x7   :  { %6811 = vmatmul.mubr.msk.f32.vlgmr.msra.gmra.mrb[0].mxu0 %vm107_vm1, %v48_v13  ;;  %v51_v18 = vld [vmem:[%s10411_s0 + $0x20] sm:$0xff]  ;;  %v70_v19 = vld [vmem:[%s10411_s0 + $0xb8] sm:$0xff]  ;;  %v52_v20 = vld [vmem:[%s10411_s0 + $0x28] sm:$0xff] }
   0x8   :  { %6829 = vmatmul.mubr.msk.f32.gmra.mrb[2].mxu1 %vm107_vm1, %v60_v4  ;;  %6813 = vmatprep.mubr.msk.f32.mxu0 %vm107_vm1, %v49_v14  ;;  %v71_v21 = vld [vmem:[%s10411_s0 + $0xc0] sm:$0xff]  ;;  %v53_v22 = vld [vmem:[%s10411_s0 + $0x30] sm:$0xff]  ;;  %v72_v23 = vld [vmem:[%s10411_s0 + $0xc8] sm:$0xff] }
   0x9   :  { %6831 = vmatprep.mubr.msk.f32.mxu1 %vm107_vm1, %v61_v5  ;;  %v54_v24 = vld [vmem:[%s10411_s0 + $0x38] sm:$0xff]  ;;  %v73_v25 = vld [vmem:[%s10411_s0 + $0xd0] sm:$0xff]  ;;  %v55_v26 = vld [vmem:[%s10411_s0 + $0x40] sm:$0xff] }
   0xa   :  { %v74_v27 = vld [vmem:[%s10411_s0 + $0xd8] sm:$0xff]  ;;  %v56_v28 = vld [vmem:[%s10411_s0 + $0x48] sm:$0xff]  ;;  %v75_v29 = vld [vmem:[%s10411_s0 + $0xe0] sm:$0xff] }
   0xb   :  { %6814 = vmatmul.mubr.msk.f32.gmra.mrb[2].mxu0 %vm107_vm1, %v50_v16  ;;  %v76_v30 = vld [vmem:[%s10411_s0 + $0xe8] sm:$0xff]  ;;  %v77_v31 = vld [vmem:[%s10411_s0 + $0xf0] sm:$0xff]  ;;  %v78_v32 = vld [vmem:[%s10411_s0 + $0xf8] sm:$0xff] }
   0xc   :  { %6832 = vmatmul.mubr.msk.f32.gmra.mrb[4].mxu1 %vm107_vm1, %v62_v6  ;;  %6816 = vmatprep.mubr.msk.f32.mxu0 %vm107_vm1, %v51_v18  ;;  %v79_v33 = vld [vmem:[%s10411_s0 + $0x100] sm:$0xff]  ;;  %v80_v34 = vld [vmem:[%s10411_s0 + $0x108] sm:$0xff]  ;;  %v81_v35 = vld [vmem:[%s10411_s0 + $0x110] sm:$0xff] }
   0xd   :  { %6834 = vmatprep.mubr.msk.f32.mxu1 %vm107_vm1, %v63_v7  ;;  %v82_v36 = vld [vmem:[%s10411_s0 + $0x118] sm:$0xff]  ;;  %v83_v37 = vld [vmem:[%s10411_s0 + $0x120] sm:$0xff]  ;;  %v84_v38 = vld [vmem:[%s10411_s0 + $0x128] sm:$0xff] }
   0xe   :  { %v85_v39 = vld [vmem:[%s10411_s0 + $0x130] sm:$0xff]  ;;  %v86_v40 = vld [vmem:[%s10411_s0 + $0x138] sm:$0xff]  ;;  %v87_v41 = vld [vmem:[%s10411_s0 + $0x140] sm:$0xff] }
   0xf   :  { %6817 = vmatmul.mubr.msk.f32.gmra.mrb[4].mxu0 %vm107_vm1, %v52_v20  ;;  %v88_v42 = vld [vmem:[%s10411_s0 + $0x148] sm:$0xff]  ;;  %v89_v43 = vld [vmem:[%s10411_s0 + $0x150] sm:$0xff]  ;;  %v90_v44 = vld [vmem:[%s10411_s0 + $0x158] sm:$0xff] }
  0x10   :  { %6835 = vmatmul.mubr.msk.f32.gmra.mrb[6].mxu1 %vm107_vm1, %v64_v8  ;;  %6819 = vmatprep.mubr.msk.f32.mxu0 %vm107_vm1, %v53_v22  ;;  %v91_v45 = vld [vmem:[%s10411_s0 + $0x160] sm:$0xff]  ;;  %v92_v46 = vld [vmem:[%s10411_s0 + $0x168] sm:$0xff]  ;;  %v93_v47 = vld [vmem:[%s10411_s0 + $0x170] sm:$0xff] }
  0x11   :  { %6837 = vmatprep.mubr.msk.f32.mxu1 %vm107_vm1, %v65_v9  ;;  %v94_v48 = vld [vmem:[%s10411_s0 + $0x178] sm:$0xff]  ;;  %v95_v49 = vld [vmem:[%s10411_s0 + $0x180] sm:$0xff]  ;;  %v96_v50 = vld [vmem:[%s10411_s0 + $0x188] sm:$0xff] }
  0x12   :  { %v97_v51 = vld [vmem:[%s10411_s0 + $0x190] sm:$0xff]  ;;  %v98_v52 = vld [vmem:[%s10411_s0 + $0x198] sm:$0xff]  ;;  %v99_v53 = vld [vmem:[%s10411_s0 + $0x1a0] sm:$0xff] }
  0x13   :  { %6820 = vmatmul.mubr.msk.f32.gmra.mrb[6].mxu0 %vm107_vm1, %v54_v24  ;;  %v100_v54 = vld [vmem:[%s10411_s0 + $0x1a8] sm:$0xff]  ;;  %v101_v55 = vld [vmem:[%s10411_s0 + $0x1b0] sm:$0xff]  ;;  %v102_v56 = vld [vmem:[%s10411_s0 + $0x1b8] sm:$0xff] }
  0x14   :  { %6838 = vmatmul.mubr.msk.f32.gmra.mrb[8].mxu1 %vm107_vm1, %v66_v10  ;;  %6822 = vmatprep.mubr.msk.f32.mxu0 %vm107_vm1, %v55_v26  ;;  %v103_v57 = vld [vmem:[%s10411_s0 + $0x1c0] sm:$0xff]  ;;  %v104_v58 = vld [vmem:[%s10411_s0 + $0x1c8] sm:$0xff]  ;;  %v105_v59 = vld [vmem:[%s10411_s0 + $0x1d0] sm:$0xff] }
  0x15   :  { %6840 = vmatprep.mubr.msk.f32.mxu1 %vm107_vm1, %v67_v11  ;;  %v106_v60 = vld [vmem:[%s10411_s0 + $0x1d8] sm:$0xff]  ;;  %v657_v61 = vld [vmem:[%s10412_s1] sm:$0xff]  ;;  %v658_v62 = vld [vmem:[%s10412_s1 + $0x8] sm:$0xff] }
  0x16   :  { %v659_v63 = vld [vmem:[%s10412_s1 + $0x10] sm:$0xff]  ;;  %v660_v0 = vld [vmem:[%s10412_s1 + $0x18] sm:$0xff]  ;;  %v661_v1 = vld [vmem:[%s10412_s1 + $0x20] sm:$0xff] }
  0x17   :  { %6823 = vmatmul.mubr.msk.f32.gmra.mrb[8].mxu0 %vm107_vm1, %v56_v28  ;;  %v662_v2 = vld [vmem:[%s10412_s1 + $0x28] sm:$0xff]  ;;  %v663_v3 = vld [vmem:[%s10412_s1 + $0x30] sm:$0xff]  ;;  %v664_v4 = vld [vmem:[%s10412_s1 + $0x38] sm:$0xff] }
  0x18   :  { %6841 = vmatmul.mubr.msk.f32.gmra.mrb[10].mxu1 %vm107_vm1, %v68_v15  ;;  %v665_v5 = vld [vmem:[%s10412_s1 + $0x40] sm:$0xff]  ;;  %v666_v6 = vld [vmem:[%s10412_s1 + $0x48] sm:$0xff]  ;;  %v667_v7 = vld [vmem:[%s10412_s1 + $0x50] sm:$0xff] }
  0x19   :  { %6843 = vmatprep.mubr.msk.f32.mxu1 %vm107_vm1, %v69_v17  ;;  %v668_v8 = vld [vmem:[%s10412_s1 + $0x58] sm:$0xff]  ;;  %v669_v9 = vld [vmem:[%s10412_s1 + $0x60] sm:$0xff]  ;;  %v670_v10 = vld [vmem:[%s10412_s1 + $0x68] sm:$0xff] }
  0x1a   :  { %v671_v11 = vld [vmem:[%s10412_s1 + $0x70] sm:$0xff]  ;;  %v672_v12 = vld [vmem:[%s10412_s1 + $0x78] sm:$0xff]  ;;  %v673_v13 = vld [vmem:[%s10412_s1 + $0x80] sm:$0xff] }
  0x1b   :  { %v674_v14 = vld [vmem:[%s10412_s1 + $0x88] sm:$0xff]  ;;  %v675_v15 = vld [vmem:[%s10412_s1 + $0x90] sm:$0xff]  ;;  %v676_v16 = vld [vmem:[%s10412_s1 + $0x98] sm:$0xff] }
  0x1c   :  { %6844 = vmatmul.mubr.msk.f32.gmra.mrb[12].mxu1 %vm107_vm1, %v70_v19  ;;  %v677_v17 = vld [vmem:[%s10412_s1 + $0xa0] sm:$0xff]  ;;  %v678_v18 = vld [vmem:[%s10412_s1 + $0xa8] sm:$0xff]  ;;  %v679_v19 = vld [vmem:[%s10412_s1 + $0xb0] sm:$0xff] }
  0x1d   :  { %6846 = vmatprep.mubr.msk.f32.mxu1 %vm107_vm1, %v71_v21  ;;  %v680_v20 = vld [vmem:[%s10412_s1 + $0xb8] sm:$0xff]  ;;  %v681_v21 = vld [vmem:[%s10412_s1 + $0xc0] sm:$0xff]  ;;  %v682_v22 = vld [vmem:[%s10412_s1 + $0xc8] sm:$0xff] }
  0x1e   :  { %v684_v24 = vld [vmem:[%s10412_s1 + $0xd8] sm:$0xff]  ;;  %v686_v26 = vld [vmem:[%s10412_s1 + $0xe8] sm:$0xff] }
  0x1f   :  { %v688_v28 = vld [vmem:[%s10412_s1 + $0xf8] sm:$0xff] }
  0x20   :  { %6847 = vmatmul.mubr.msk.f32.gmra.mrb[14].mxu1 %vm107_vm1, %v72_v23  ;;  %v683_v23 = vld [vmem:[%s10412_s1 + $0xd0] sm:$0xff] }
  0x21   :  { %6849 = vmatprep.mubr.msk.f32.mxu1 %vm107_vm1, %v73_v25  ;;  %v685_v25 = vld [vmem:[%s10412_s1 + $0xe0] sm:$0xff] }
  0x24   :  { %6850 = vmatmul.mubr.msk.f32.gmra.mrb[16].mxu1 %vm107_vm1, %v74_v27  ;;  %v687_v27 = vld [vmem:[%s10412_s1 + $0xf0] sm:$0xff] }
  0x25   :  { %6852 = vmatprep.mubr.msk.f32.mxu1 %vm107_vm1, %v75_v29  ;;  %v689_v29 = vld [vmem:[%s10412_s1 + $0x100] sm:$0xff] }
  0x28   :  { %6853 = vmatmul.mubr.msk.f32.gmra.mrb[18].mxu1 %vm107_vm1, %v76_v30  ;;  %v690_v30 = vld [vmem:[%s10412_s1 + $0x108] sm:$0xff] }
  0x29   :  { %6855 = vmatprep.mubr.msk.f32.mxu1 %vm107_vm1, %v77_v31  ;;  %v691_v31 = vld [vmem:[%s10412_s1 + $0x110] sm:$0xff] }
  0x2c   :  { %6856 = vmatmul.mubr.msk.f32.gmra.mrb[20].mxu1 %vm107_vm1, %v78_v32  ;;  %v692_v32 = vld [vmem:[%s10412_s1 + $0x118] sm:$0xff] }
  0x2d   :  { %6858 = vmatprep.mubr.msk.f32.mxu1 %vm107_vm1, %v79_v33  ;;  %v693_v33 = vld [vmem:[%s10412_s1 + $0x120] sm:$0xff] }
  0x30   :  { %6859 = vmatmul.mubr.msk.f32.gmra.mrb[22].mxu1 %vm107_vm1, %v80_v34  ;;  %v694_v34 = vld [vmem:[%s10412_s1 + $0x128] sm:$0xff] }
  0x31   :  { %6861 = vmatprep.mubr.msk.f32.mxu1 %vm107_vm1, %v81_v35  ;;  %v695_v35 = vld [vmem:[%s10412_s1 + $0x130] sm:$0xff] }
  0x34   :  { %6862 = vmatmul.mubr.msk.f32.gmra.mrb[24].mxu1 %vm107_vm1, %v82_v36  ;;  %v696_v36 = vld [vmem:[%s10412_s1 + $0x138] sm:$0xff] }
  0x35   :  { %6864 = vmatprep.mubr.msk.f32.mxu1 %vm107_vm1, %v83_v37  ;;  %v697_v37 = vld [vmem:[%s10412_s1 + $0x140] sm:$0xff] }
  0x38   :  { %6865 = vmatmul.mubr.msk.f32.gmra.mrb[26].mxu1 %vm107_vm1, %v84_v38  ;;  %v698_v38 = vld [vmem:[%s10412_s1 + $0x148] sm:$0xff] }
  0x39   :  { %6867 = vmatprep.mubr.msk.f32.mxu1 %vm107_vm1, %v85_v39  ;;  %v1453_v39 = vld [vmem:[%s10413_s4 + $0x20] sm:$0xff] }
  0x3c   :  { %6868 = vmatmul.mubr.msk.f32.gmra.mrb[28].mxu1 %vm107_vm1, %v86_v40  ;;  %v1454_v40 = vld [vmem:[%s10413_s4 + $0x28] sm:$0xff] }
  0x3d   :  { %6870 = vmatprep.mubr.msk.f32.mxu1 %vm107_vm1, %v87_v41  ;;  %v699_v41 = vld [vmem:[%s10412_s1 + $0x150] sm:$0xff] }
  0x40   :  { %6871 = vmatmul.mubr.msk.f32.gmra.mrb[30].mxu1 %vm107_vm1, %v88_v42  ;;  %v7441_v42 = vpack.c.bf16 %v1454_v40, %v1453_v39 }
  0x41   :  { %6873 = vmatprep.mubr.msk.f32.mxu1 %vm107_vm1, %v89_v43  ;;  %v700_v43 = vld [vmem:[%s10412_s1 + $0x158] sm:$0xff] }
  0x42   :  { %7442 = vmatprep.subr.bf16.mxu0 %v7441_v42 }
  0x43   :  { %7444 = vmatpush3.bf16.msra.mxu0 %v7441_v42 }
  0x44   :  { %6874 = vmatmul.mubr.msk.f32.gmra.mrb[32].mxu1 %vm107_vm1, %v90_v44  ;;  %v701_v44 = vld [vmem:[%s10412_s1 + $0x160] sm:$0xff] }
  0x45   :  { %6876 = vmatprep.mubr.msk.f32.mxu1 %vm107_vm1, %v91_v45  ;;  %v702_v45 = vld [vmem:[%s10412_s1 + $0x168] sm:$0xff] }
  0x48   :  { %6877 = vmatmul.mubr.msk.f32.gmra.mrb[34].mxu1 %vm107_vm1, %v92_v46  ;;  %v703_v46 = vld [vmem:[%s10412_s1 + $0x170] sm:$0xff] }
  0x49   :  { %6879 = vmatprep.mubr.msk.f32.mxu1 %vm107_vm1, %v93_v47  ;;  %v704_v47 = vld [vmem:[%s10412_s1 + $0x178] sm:$0xff] }
  0x4c   :  { %6880 = vmatmul.mubr.msk.f32.gmra.mrb[36].mxu1 %vm107_vm1, %v94_v48  ;;  %v1455_v48 = vld [vmem:[%s10413_s4 + $0x30] sm:$0xff] }
  0x4d   :  { %6882 = vmatprep.mubr.msk.f32.mxu1 %vm107_vm1, %v95_v49  ;;  %v1456_v49 = vld [vmem:[%s10413_s4 + $0x38] sm:$0xff] }
  0x50   :  { %6883 = vmatmul.mubr.msk.f32.gmra.mrb[38].mxu1 %vm107_vm1, %v96_v50  ;;  %v705_v50 = vld [vmem:[%s10412_s1 + $0x180] sm:$0xff] }
  0x51   :  { %6885 = vmatprep.mubr.msk.f32.mxu1 %vm107_vm1, %v97_v51  ;;  %v7445_v51 = vpack.c.bf16 %v1456_v49, %v1455_v48 }
  0x53   :  { %7446 = vmatprep.subr.bf16.mxu0 %v7445_v51 }
  0x54   :  { %6886 = vmatmul.mubr.msk.f32.gmra.mrb[40].mxu1 %vm107_vm1, %v98_v52  ;;  %v706_v52 = vld [vmem:[%s10412_s1 + $0x188] sm:$0xff]  ;;  %7448 = vmatpush3.bf16.msra.mxu0 %v7445_v51 }
  0x55   :  { %6888 = vmatprep.mubr.msk.f32.mxu1 %vm107_vm1, %v99_v53  ;;  %v707_v53 = vld [vmem:[%s10412_s1 + $0x190] sm:$0xff] }
  0x58   :  { %6889 = vmatmul.mubr.msk.f32.gmra.mrb[42].mxu1 %vm107_vm1, %v100_v54  ;;  %v708_v54 = vld [vmem:[%s10412_s1 + $0x198] sm:$0xff] }
  0x59   :  { %6891 = vmatprep.mubr.msk.f32.mxu1 %vm107_vm1, %v101_v55  ;;  %v709_v55 = vld [vmem:[%s10412_s1 + $0x1a0] sm:$0xff] }
  0x5c   :  { %6892 = vmatmul.mubr.msk.f32.gmra.mrb[44].mxu1 %vm107_vm1, %v102_v56  ;;  %v710_v56 = vld [vmem:[%s10412_s1 + $0x1a8] sm:$0xff] }
  0x5d   :  { %6894 = vmatprep.mubr.msk.f32.mxu1 %vm107_vm1, %v103_v57  ;;  %v1449_v57 = vld [vmem:[%s10413_s4] sm:$0xff] }
  0x60   :  { %6895 = vmatmul.mubr.msk.f32.gmra.mrb[46].mxu1 %vm107_vm1, %v104_v58  ;;  %v1450_v58 = vld [vmem:[%s10413_s4 + $0x8] sm:$0xff] }
  0x61   :  { %6897 = vmatprep.mubr.msk.f32.mxu1 %vm107_vm1, %v105_v59  ;;  %v711_v59 = vld [vmem:[%s10412_s1 + $0x1b0] sm:$0xff] }
  0x64   :  { %6898 = vmatmul.mubr.msk.f32.gmra.mrb[48].mxu1 %vm107_vm1, %v106_v60  ;;  %v8807_v60 = vpack.c.bf16 %v1450_v58, %v1449_v57 }
  0x65   :  { %6902 = vmatprep.mubr.msk.f32.mxu1 %vm107_vm1, %v657_v61  ;;  %v712_v61 = vld [vmem:[%s10412_s1 + $0x1b8] sm:$0xff] }
  0x66   :  { %7450 = vmatprep.subr.bf16.mxu0 %v8807_v60 }
  0x68   :  { %6903 = vmatmul.mubr.msk.f32.vlgmr.msra.gmra.mrb[50].mxu1 %vm107_vm1, %v658_v62  ;;  %v713_v62 = vld [vmem:[%s10412_s1 + $0x1c0] sm:$0xff] }
  0x69   :  { %6905 = vmatprep.mubr.msk.f32.mxu1 %vm107_vm1, %v659_v63  ;;  %v714_v63 = vld [vmem:[%s10412_s1 + $0x1c8] sm:$0xff] }
  0x6c   :  { %6906 = vmatmul.mubr.msk.f32.gmra.mrb[52].mxu1 %vm107_vm1, %v660_v0  ;;  %v715_v0 = vld [vmem:[%s10412_s1 + $0x1d0] sm:$0xff] }
  0x6d   :  { %6908 = vmatprep.mubr.msk.f32.mxu1 %vm107_vm1, %v661_v1 }
  0x70   :  { %6909 = vmatmul.mubr.msk.f32.gmra.mrb[54].mxu1 %vm107_vm1, %v662_v2 }
  0x71   :  { %6911 = vmatprep.mubr.msk.f32.mxu1 %vm107_vm1, %v663_v3  ;;  %v716_v3 = vld [vmem:[%s10412_s1 + $0x1d8] sm:$0xff] }
  0x74   :  { %6912 = vmatmul.mubr.msk.f32.gmra.mrb[56].mxu1 %vm107_vm1, %v664_v4 }
  0x75   :  { %6914 = vmatprep.mubr.msk.f32.mxu1 %vm107_vm1, %v665_v5 }
  0x78   :  { %6915 = vmatmul.mubr.msk.f32.gmra.mrb[58].mxu1 %vm107_vm1, %v666_v6 }
  0x79   :  { %6917 = vmatprep.mubr.msk.f32.mxu1 %vm107_vm1, %v667_v7 }
  0x7c   :  { %6918 = vmatmul.mubr.msk.f32.gmra.mrb[60].mxu1 %vm107_vm1, %v668_v8 }
  0x7d   :  { %6920 = vmatprep.mubr.msk.f32.mxu1 %vm107_vm1, %v669_v9 }
  0x80   :  { %6921 = vmatmul.mubr.msk.f32.gmra.mrb[62].mxu1 %vm107_vm1, %v670_v10 }
  0x81   :  { %6923 = vmatprep.mubr.msk.f32.mxu1 %vm107_vm1, %v671_v11 }
  0x84   :  { %6924 = vmatmul.mubr.msk.f32.gmra.mrb[64].mxu1 %vm107_vm1, %v672_v12 }
  0x85   :  { %6926 = vmatprep.mubr.msk.f32.mxu1 %vm107_vm1, %v673_v13 }
  0x88   :  { %6927 = vmatmul.mubr.msk.f32.gmra.mrb[66].mxu1 %vm107_vm1, %v674_v14 }
  0x89   :  { %6929 = vmatprep.mubr.msk.f32.mxu1 %vm107_vm1, %v675_v15 }
  0x8c   :  { %6930 = vmatmul.mubr.msk.f32.gmra.mrb[68].mxu1 %vm107_vm1, %v676_v16 }
  0x8d   :  { %6932 = vmatprep.mubr.msk.f32.mxu1 %vm107_vm1, %v677_v17 }
  0x90   :  { %6933 = vmatmul.mubr.msk.f32.gmra.mrb[70].mxu1 %vm107_vm1, %v678_v18 }
  0x91   :  { %6935 = vmatprep.mubr.msk.f32.mxu1 %vm107_vm1, %v679_v19 }
  0x94   :  { %6936 = vmatmul.mubr.msk.f32.gmra.mrb[72].mxu1 %vm107_vm1, %v680_v20 }
  0x95   :  { %6938 = vmatprep.mubr.msk.f32.mxu1 %vm107_vm1, %v681_v21 }
  0x98   :  { %6939 = vmatmul.mubr.msk.f32.gmra.mrb[74].mxu1 %vm107_vm1, %v682_v22 }
  0x99   :  { %6941 = vmatprep.mubr.msk.f32.mxu1 %vm107_vm1, %v683_v23 }
  0x9c   :  { %6942 = vmatmul.mubr.msk.f32.gmra.mrb[76].mxu1 %vm107_vm1, %v684_v24 }
  0x9d   :  { %6944 = vmatprep.mubr.msk.f32.mxu1 %vm107_vm1, %v685_v25 }
  0xa0   :  { %6945 = vmatmul.mubr.msk.f32.gmra.mrb[78].mxu1 %vm107_vm1, %v686_v26 }
  0xa1   :  { %6947 = vmatprep.mubr.msk.f32.mxu1 %vm107_vm1, %v687_v27 }
  0xa4   :  { %6948 = vmatmul.mubr.msk.f32.gmra.mrb[80].mxu1 %vm107_vm1, %v688_v28 }
  0xa5   :  { %6950 = vmatprep.mubr.msk.f32.mxu1 %vm107_vm1, %v689_v29 }
  0xa8   :  { %6951 = vmatmul.mubr.msk.f32.gmra.mrb[82].mxu1 %vm107_vm1, %v690_v30 }
  0xa9   :  { %6953 = vmatprep.mubr.msk.f32.mxu1 %vm107_vm1, %v691_v31 }
  0xac   :  { %6954 = vmatmul.mubr.msk.f32.gmra.mrb[84].mxu1 %vm107_vm1, %v692_v32 }
  0xad   :  { %6956 = vmatprep.mubr.msk.f32.mxu1 %vm107_vm1, %v693_v33 }
  0xb0   :  { %6957 = vmatmul.mubr.msk.f32.gmra.mrb[86].mxu1 %vm107_vm1, %v694_v34 }
  0xb1   :  { %6959 = vmatprep.mubr.msk.f32.mxu1 %vm107_vm1, %v695_v35 }
  0xb4   :  { %6960 = vmatmul.mubr.msk.f32.gmra.mrb[88].mxu1 %vm107_vm1, %v696_v36 }
  0xb5   :  { %6962 = vmatprep.mubr.msk.f32.mxu1 %vm107_vm1, %v697_v37 }
  0xb8   :  { %6963 = vmatmul.mubr.msk.f32.gmra.mrb[90].mxu1 %vm107_vm1, %v698_v38 }
  0xb9   :  { %6965 = vmatprep.mubr.msk.f32.mxu1 %vm107_vm1, %v699_v41 }
  0xbc   :  { %6966 = vmatmul.mubr.msk.f32.gmra.mrb[92].mxu1 %vm107_vm1, %v700_v43 }
  0xbd   :  { %6968 = vmatprep.mubr.msk.f32.mxu1 %vm107_vm1, %v701_v44 }
  0xc0   :  { %6969 = vmatmul.mubr.msk.f32.gmra.mrb[94].mxu1 %vm107_vm1, %v702_v45 }
  0xc1   :  { %6971 = vmatprep.mubr.msk.f32.mxu1 %vm107_vm1, %v703_v46 }
  0xc4   :  { %6972 = vmatmul.mubr.msk.f32.gmra.mrb[96].mxu1 %vm107_vm1, %v704_v47 }
  0xc5   :  { %6974 = vmatprep.mubr.msk.f32.mxu1 %vm107_vm1, %v705_v50 }
  0xc8   :  { %6975 = vmatmul.mubr.msk.f32.gmra.mrb[98].mxu1 %vm107_vm1, %v706_v52 }
  0xc9   :  { %6977 = vmatprep.mubr.msk.f32.mxu1 %vm107_vm1, %v707_v53 }
  0xcc   :  { %6978 = vmatmul.mubr.msk.f32.gmra.mrb[100].mxu1 %vm107_vm1, %v708_v54 }
  0xcd   :  { %6980 = vmatprep.mubr.msk.f32.mxu1 %vm107_vm1, %v709_v55 }
  0xd0   :  { %6981 = vmatmul.mubr.msk.f32.gmra.mrb[102].mxu1 %vm107_vm1, %v710_v56 }
  0xd1   :  { %6983 = vmatprep.mubr.msk.f32.mxu1 %vm107_vm1, %v711_v59 }
  0xd4   :  { %6984 = vmatmul.mubr.msk.f32.gmra.mrb[104].mxu1 %vm107_vm1, %v712_v61 }
  0xd5   :  { %6986 = vmatprep.mubr.msk.f32.mxu1 %vm107_vm1, %v713_v62 }
  0xd7   :  { %v8826_v1 = vpop.f32.mrb[0].mxu1 }
  0xd8   :  { %v8828_v2 = vpop.f32.mrb[1].mxu1  ;;  %6987 = vmatmul.mubr.msk.f32.gmra.mrb[106].mxu1 %vm107_vm1, %v714_v63 }
  0xd9   :  { %6989 = vmatprep.mubr.msk.f32.mxu1 %vm107_vm1, %v715_v0 }
  0xda   :  { %v8850_v11 = vpop.f32.mrb[0].mxu0 }
  0xdb   :  { %v8835_v4 = vpop.f32.mrb[2].mxu1  ;;  %10454 = vst [vmem:[#allocation6_spill] sm:$0xff] %v8850_v11  ;;  %v8854_v13 = vpop.f32.mrb[1].mxu0 }
  0xdc   :  { %v8837_v5 = vpop.f32.mrb[3].mxu1  ;;  %6990 = vmatmul.mubr.msk.f32.gmra.mrb[108].mxu1 %vm107_vm1, %v716_v3  ;;  %10455 = vst [vmem:[#allocation7_spill] sm:$0xff] %v8854_v13 }
  0xde   :  { %v6815_v15 = vpop.f32.mrb[2].mxu0 }
  0xdf   :  { %v8840_v6 = vpop.f32.mrb[4].mxu1  ;;  %v368_v17 = vpop.f32.mrb[3].mxu0 }
  0xe0   :  { %v8842_v7 = vpop.f32.mrb[5].mxu1 }
  0xe2   :  { %v8862_v19 = vpop.f32.mrb[4].mxu0 }
  0xe3   :  { %v8844_v8 = vpop.f32.mrb[6].mxu1  ;;  %v8866_v21 = vpop.f32.mrb[5].mxu0 }
  0xe4   :  { %v8846_v9 = vpop.f32.mrb[7].mxu1 }
  0xe6   :  { %v8870_v23 = vpop.f32.mrb[6].mxu0 }
  0xe7   :  { %v8848_v10 = vpop.f32.mrb[8].mxu1  ;;  %v8874_v25 = vpop.f32.mrb[7].mxu0 }
  0xe8   :  { %v8852_v12 = vpop.f32.mrb[9].mxu1 }
  0xea   :  { %v8878_v27 = vpop.f32.mrb[8].mxu0 }
  0xeb   :  { %v8856_v14 = vpop.f32.mrb[10].mxu1  ;;  %v8882_v29 = vpop.f32.mrb[9].mxu0 }
  0xec   :  { %v8858_v16 = vpop.f32.mrb[11].mxu1 }
  0xef   :  { %v8860_v18 = vpop.f32.mrb[12].mxu1 }
  0xf0   :  { %v8864_v20 = vpop.f32.mrb[13].mxu1 }
  0xf3   :  { %v8868_v22 = vpop.f32.mrb[14].mxu1 }
  0xf4   :  { %v8872_v24 = vpop.f32.mrb[15].mxu1 }
  0xf7   :  { %v8876_v26 = vpop.f32.mrb[16].mxu1 }
  0xf8   :  { %v8880_v28 = vpop.f32.mrb[17].mxu1 }
  0xfb   :  { %v8884_v30 = vpop.f32.mrb[18].mxu1 }
  0xfc   :  { %v8886_v31 = vpop.f32.mrb[19].mxu1 }
  0xff   :  { %v8888_v32 = vpop.f32.mrb[20].mxu1 }
 0x100   :  { %v8890_v33 = vpop.f32.mrb[21].mxu1 }
 0x103   :  { %v8892_v34 = vpop.f32.mrb[22].mxu1 }
 0x104   :  { %v8894_v35 = vpop.f32.mrb[23].mxu1 }
 0x107   :  { %v8896_v36 = vpop.f32.mrb[24].mxu1 }
 0x108   :  { %v8898_v37 = vpop.f32.mrb[25].mxu1 }
 0x10b   :  { %v8900_v38 = vpop.f32.mrb[26].mxu1 }
 0x10c   :  { %v8902_v39 = vpop.f32.mrb[27].mxu1 }
 0x10f   :  { %v8904_v40 = vpop.f32.mrb[28].mxu1 }
 0x110   :  { %v8906_v41 = vpop.f32.mrb[29].mxu1 }
 0x113   :  { %v8908_v42 = vpop.f32.mrb[30].mxu1 }
 0x114   :  { %v8910_v43 = vpop.f32.mrb[31].mxu1 }
 0x117   :  { %v8912_v44 = vpop.f32.mrb[32].mxu1 }
 0x118   :  { %v8914_v45 = vpop.f32.mrb[33].mxu1 }
 0x11b   :  { %v8916_v46 = vpop.f32.mrb[34].mxu1 }
 0x11c   :  { %v8918_v47 = vpop.f32.mrb[35].mxu1 }
 0x11f   :  { %v8920_v48 = vpop.f32.mrb[36].mxu1 }
 0x120   :  { %v8922_v49 = vpop.f32.mrb[37].mxu1 }
 0x123   :  { %v8924_v50 = vpop.f32.mrb[38].mxu1 }
 0x124   :  { %v8926_v51 = vpop.f32.mrb[39].mxu1 }
 0x127   :  { %v8928_v52 = vpop.f32.mrb[40].mxu1 }
 0x128   :  { %v8930_v53 = vpop.f32.mrb[41].mxu1 }
 0x12b   :  { %v8932_v54 = vpop.f32.mrb[42].mxu1 }
 0x12c   :  { %10456 = vst [vmem:[#allocation8_spill] sm:$0xff] %v8932_v54  ;;  %v8934_v55 = vpop.f32.mrb[43].mxu1 }
 0x12d   :  { %10457 = vst [vmem:[#allocation9_spill] sm:$0xff] %v8934_v55 }
 0x12f   :  { %v8936_v56 = vpop.f32.mrb[44].mxu1 }
 0x130   :  { %10458 = vst [vmem:[#allocation10_spill] sm:$0xff] %v8936_v56  ;;  %v8938_v57 = vpop.f32.mrb[45].mxu1  ;;  %v1451_v56 = vld [vmem:[%s10413_s4 + $0x10] sm:$0xff] }
 0x131   :  { %10459 = vst [vmem:[#allocation11_spill] sm:$0xff] %v8938_v57 }
 0x133   :  { %v8940_v58 = vpop.f32.mrb[46].mxu1 }
 0x134   :  { %10460 = vst [vmem:[#allocation12_spill] sm:$0xff] %v8940_v58  ;;  %v8942_v59 = vpop.f32.mrb[47].mxu1 }
 0x135   :  { %10461 = vst [vmem:[#allocation13_spill] sm:$0xff] %v8942_v59  ;;  %v8959_v59 = vld [vmem:[%s10414_s3] ss:$0 sm:$0xff] }
 0x137   :  { %v8944_v61 = vpop.f32.mrb[48].mxu1 }
 0x138   :  { %10462 = vst [vmem:[#allocation14_spill] sm:$0xff] %v8944_v61  ;;  %v8946_v62 = vpop.f32.mrb[49].mxu1 }
 0x139   :  { %10463 = vst [vmem:[#allocation15_spill] sm:$0xff] %v8946_v62 }
 0x13b   :  { %v8948_v63 = vpop.f32.mrb[50].mxu1 }
 0x13c   :  { %10464 = vst [vmem:[#allocation16_spill] sm:$0xff] %v8948_v63  ;;  %v8952_v3 = vpop.f32.mrb[51].mxu1 }
 0x13d   :  { %10465 = vst [vmem:[#allocation17_spill] sm:$0xff] %v8952_v3 }
 0x13f   :  { %v6907_v55 = vpop.f32.mrb[52].mxu1 }
 0x140   :  { %v1265_v57 = vmax.f32 %v6815_v15, %v6907_v55  ;;  %v973_v54 = vpop.f32.mrb[53].mxu1  ;;  %v1452_v15 = vld [vmem:[%s10413_s4 + $0x18] sm:$0xff] }
 0x141   :  { %v1264_v61 = vmax.f32 %v368_v17, %v973_v54  ;;  %v7453_v11 = vpack.c.bf16 %v1452_v15, %v1451_v56 }
 0x142   :  { %v8962_v62 = vadd.f32 %v8959_v59, %v1265_v57 }
 0x143   :  { %v8965_v58 = vadd.f32 %v8959_v59, %v1264_v61  ;;  %v6910_v0 = vpop.f32.mrb[54].mxu1 }
 0x144   :  { %v1267_v55 = vmax.f32 %v8862_v19, %v6910_v0  ;;  %v983_v63 = vpop.f32.mrb[55].mxu1  ;;  %v10435_v57 = vmax.f32 %v8962_v62, 0.0  ;;  %v1457_v19 = vld [vmem:[%s10413_s4 + $0x40] sm:$0xff] }
 0x145   :  { %v10434_v17 = vmax.f32 %v8965_v58, 0.0  ;;  %v1266_v54 = vmax.f32 %v8866_v21, %v983_v63  ;;  %v1458_v21 = vld [vmem:[%s10413_s4 + $0x48] sm:$0xff] }
 0x146   :  { %v1334_v61 = vadd.f32 %v8959_v59, %v1267_v55 }
 0x147   :  { %v1333_v3 = vadd.f32 %v8959_v59, %v1266_v54  ;;  %v6913_v13 = vpop.f32.mrb[56].mxu1  ;;  %7000 = vmatprep.mubr.msk.f32.mxu0 %vm1469_vm2, %v10434_v17  ;;  %v8999_v17 = vpack.c.bf16 %v1458_v21, %v1457_v19 }
 0x148   :  { %v1269_v63 = vmax.f32 %v8870_v23, %v6913_v13  ;;  %v993_v0 = vpop.f32.mrb[57].mxu1  ;;  %7001 = vmatmul.mubr.msk.f32.vlgmr.msra.gmra.mrb[10].mxu0 %vm1469_vm2, %v10435_v57  ;;  %v8996_v55 = vmax.f32 %v1334_v61, 0.0 }
 0x149   :  { %v8992_v56 = vmax.f32 %v1333_v3, 0.0  ;;  %v1268_v15 = vmax.f32 %v8874_v25, %v993_v0  ;;  %7452 = vmatpush3.bf16.msra.mxu0 %v8807_v60 }
 0x14a   :  { %v1336_v54 = vadd.f32 %v8959_v59, %v1269_v63  ;;  %7454 = vmatprep.subr.bf16.mxu0 %v7453_v11 }
 0x14b   :  { %v1335_v13 = vadd.f32 %v8959_v59, %v1268_v15  ;;  %v6916_v23 = vpop.f32.mrb[58].mxu1  ;;  %7003 = vmatprep.mubr.msk.f32.mxu0 %vm1469_vm2, %v8992_v56 }
 0x14c   :  { %v1271_v3 = vmax.f32 %v8878_v27, %v6916_v23  ;;  %v1003_v57 = vpop.f32.mrb[59].mxu1  ;;  %7004 = vmatmul.mubr.msk.f32.gmra.mrb[12].mxu0 %vm1469_vm2, %v8996_v55  ;;  %v9010_v61 = vmax.f32 %v1336_v54, 0.0 }
 0x14d   :  { %v9007_v60 = vmax.f32 %v1335_v13, 0.0  ;;  %v1270_v25 = vmax.f32 %v8882_v29, %v1003_v57  ;;  %7456 = vmatpush3.bf16.msra.mxu0 %v7453_v11 }
 0x14e   :  { %v1338_v19 = vadd.f32 %v8959_v59, %v1271_v3  ;;  %7458 = vmatprep.subr.bf16.mxu0 %v8999_v17 }
 0x14f   :  { %v1337_v21 = vadd.f32 %v8959_v59, %v1270_v25  ;;  %v6919_v63 = vpop.f32.mrb[60].mxu1  ;;  %7006 = vmatprep.mubr.msk.f32.mxu0 %vm1469_vm2, %v9007_v60 }
 0x150   :  { %v1273_v27 = vmax.f32 %v8826_v1, %v6919_v63  ;;  %v1013_v0 = vpop.f32.mrb[61].mxu1  ;;  %7007 = vmatmul.mubr.msk.f32.gmra.mrb[14].mxu0 %vm1469_vm2, %v9010_v61  ;;  %v9023_v57 = vmax.f32 %v1338_v19, 0.0 }
 0x151   :  { %v9020_v29 = vmax.f32 %v1337_v21, 0.0  ;;  %v1272_v11 = vmax.f32 %v8828_v2, %v1013_v0 }
 0x152   :  { %v1340_v15 = vadd.f32 %v8959_v59, %v1273_v27 }
 0x153   :  { %v1339_v54 = vadd.f32 %v8959_v59, %v1272_v11  ;;  %v6922_v13 = vpop.f32.mrb[62].mxu1  ;;  %7009 = vmatprep.mubr.msk.f32.mxu0 %vm1469_vm2, %v9020_v29 }
 0x154   :  { %v1275_v1 = vmax.f32 %v8835_v4, %v6922_v13  ;;  %v1023_v23 = vpop.f32.mrb[63].mxu1  ;;  %7010 = vmatmul.mubr.msk.f32.gmra.mrb[16].mxu0 %vm1469_vm2, %v9023_v57  ;;  %v9035_v25 = vmax.f32 %v1340_v15, 0.0 }
 0x155   :  { %v9032_v3 = vmax.f32 %v1339_v54, 0.0  ;;  %v1274_v2 = vmax.f32 %v8837_v5, %v1023_v23 }
 0x156   :  { %v1342_v19 = vadd.f32 %v8959_v59, %v1275_v1 }
 0x157   :  { %v1341_v21 = vadd.f32 %v8959_v59, %v1274_v2  ;;  %v6925_v63 = vpop.f32.mrb[64].mxu1  ;;  %7012 = vmatprep.mubr.msk.f32.mxu0 %vm1469_vm2, %v9032_v3 }
 0x158   :  { %v1277_v4 = vmax.f32 %v8840_v6, %v6925_v63  ;;  %v1033_v27 = vpop.f32.mrb[65].mxu1  ;;  %7013 = vmatmul.mubr.msk.f32.gmra.mrb[18].mxu0 %vm1469_vm2, %v9035_v25  ;;  %v9047_v11 = vmax.f32 %v1342_v19, 0.0 }
 0x159   :  { %v9044_v0 = vmax.f32 %v1341_v21, 0.0  ;;  %v1276_v5 = vmax.f32 %v8842_v7, %v1033_v27 }
 0x15a   :  { %v1344_v15 = vadd.f32 %v8959_v59, %v1277_v4 }
 0x15b   :  { %v1343_v54 = vadd.f32 %v8959_v59, %v1276_v5  ;;  %v6928_v13 = vpop.f32.mrb[66].mxu1  ;;  %7015 = vmatprep.mubr.msk.f32.mxu0 %vm1469_vm2, %v9044_v0 }
 0x15c   :  { %v1279_v6 = vmax.f32 %v8844_v8, %v6928_v13  ;;  %v1043_v1 = vpop.f32.mrb[67].mxu1  ;;  %7016 = vmatmul.mubr.msk.f32.gmra.mrb[20].mxu0 %vm1469_vm2, %v9047_v11  ;;  %v9059_v2 = vmax.f32 %v1344_v15, 0.0 }
 0x15d   :  { %v9056_v23 = vmax.f32 %v1343_v54, 0.0  ;;  %v1278_v7 = vmax.f32 %v8846_v9, %v1043_v1 }
 0x15e   :  { %v1346_v19 = vadd.f32 %v8959_v59, %v1279_v6 }
 0x15f   :  { %v1345_v21 = vadd.f32 %v8959_v59, %v1278_v7  ;;  %v6931_v63 = vpop.f32.mrb[68].mxu1  ;;  %7018 = vmatprep.mubr.msk.f32.mxu0 %vm1469_vm2, %v9056_v23 }
 0x160   :  { %v1281_v8 = vmax.f32 %v8848_v10, %v6931_v63  ;;  %v1053_v4 = vpop.f32.mrb[69].mxu1  ;;  %7019 = vmatmul.mubr.msk.f32.gmra.mrb[22].mxu0 %vm1469_vm2, %v9059_v2  ;;  %v9071_v5 = vmax.f32 %v1346_v19, 0.0 }
 0x161   :  { %v9068_v27 = vmax.f32 %v1345_v21, 0.0  ;;  %v1280_v9 = vmax.f32 %v8852_v12, %v1053_v4 }
 0x162   :  { %v1348_v15 = vadd.f32 %v8959_v59, %v1281_v8 }
 0x163   :  { %v1347_v54 = vadd.f32 %v8959_v59, %v1280_v9  ;;  %v6934_v13 = vpop.f32.mrb[70].mxu1  ;;  %7021 = vmatprep.mubr.msk.f32.mxu0 %vm1469_vm2, %v9068_v27 }
 0x164   :  { %v1283_v10 = vmax.f32 %v8856_v14, %v6934_v13  ;;  %v1063_v6 = vpop.f32.mrb[71].mxu1  ;;  %7022 = vmatmul.mubr.msk.f32.gmra.mrb[24].mxu0 %vm1469_vm2, %v9071_v5  ;;  %v9083_v7 = vmax.f32 %v1348_v15, 0.0 }
 0x165   :  { %v9080_v1 = vmax.f32 %v1347_v54, 0.0  ;;  %v1282_v12 = vmax.f32 %v8858_v16, %v1063_v6 }
 0x166   :  { %v1350_v19 = vadd.f32 %v8959_v59, %v1283_v10 }
 0x167   :  { %v1349_v21 = vadd.f32 %v8959_v59, %v1282_v12  ;;  %v6937_v63 = vpop.f32.mrb[72].mxu1  ;;  %7024 = vmatprep.mubr.msk.f32.mxu0 %vm1469_vm2, %v9080_v1 }
 0x168   :  { %v1285_v14 = vmax.f32 %v8860_v18, %v6937_v63  ;;  %v1073_v8 = vpop.f32.mrb[73].mxu1  ;;  %7025 = vmatmul.mubr.msk.f32.gmra.mrb[26].mxu0 %vm1469_vm2, %v9083_v7  ;;  %v9095_v9 = vmax.f32 %v1350_v19, 0.0 }
 0x169   :  { %v9092_v4 = vmax.f32 %v1349_v21, 0.0  ;;  %v1284_v16 = vmax.f32 %v8864_v20, %v1073_v8 }
 0x16a   :  { %v1352_v15 = vadd.f32 %v8959_v59, %v1285_v14 }
 0x16b   :  { %v1351_v54 = vadd.f32 %v8959_v59, %v1284_v16  ;;  %v6940_v13 = vpop.f32.mrb[74].mxu1  ;;  %7027 = vmatprep.mubr.msk.f32.mxu0 %vm1469_vm2, %v9092_v4 }
 0x16c   :  { %v1287_v18 = vmax.f32 %v8868_v22, %v6940_v13  ;;  %v1083_v10 = vpop.f32.mrb[75].mxu1  ;;  %7028 = vmatmul.mubr.msk.f32.gmra.mrb[28].mxu0 %vm1469_vm2, %v9095_v9  ;;  %v9107_v12 = vmax.f32 %v1352_v15, 0.0 }
 0x16d   :  { %v9104_v6 = vmax.f32 %v1351_v54, 0.0  ;;  %v1286_v20 = vmax.f32 %v8872_v24, %v1083_v10 }
 0x16e   :  { %v1354_v19 = vadd.f32 %v8959_v59, %v1287_v18 }
 0x16f   :  { %v1353_v21 = vadd.f32 %v8959_v59, %v1286_v20  ;;  %v6943_v63 = vpop.f32.mrb[76].mxu1  ;;  %7030 = vmatprep.mubr.msk.f32.mxu0 %vm1469_vm2, %v9104_v6 }
 0x170   :  { %v1289_v22 = vmax.f32 %v8876_v26, %v6943_v63  ;;  %v1093_v14 = vpop.f32.mrb[77].mxu1  ;;  %7031 = vmatmul.mubr.msk.f32.gmra.mrb[30].mxu0 %vm1469_vm2, %v9107_v12  ;;  %v9119_v16 = vmax.f32 %v1354_v19, 0.0 }
 0x171   :  { %v9116_v8 = vmax.f32 %v1353_v21, 0.0  ;;  %v1288_v24 = vmax.f32 %v8880_v28, %v1093_v14 }
 0x172   :  { %v1356_v15 = vadd.f32 %v8959_v59, %v1289_v22 }
 0x173   :  { %v1355_v54 = vadd.f32 %v8959_v59, %v1288_v24  ;;  %v6946_v13 = vpop.f32.mrb[78].mxu1  ;;  %7033 = vmatprep.mubr.msk.f32.mxu0 %vm1469_vm2, %v9116_v8 }
 0x174   :  { %v1291_v26 = vmax.f32 %v8884_v30, %v6946_v13  ;;  %v1103_v18 = vpop.f32.mrb[79].mxu1  ;;  %7034 = vmatmul.mubr.msk.f32.gmra.mrb[32].mxu0 %vm1469_vm2, %v9119_v16  ;;  %v9131_v20 = vmax.f32 %v1356_v15, 0.0 }
 0x175   :  { %v9128_v10 = vmax.f32 %v1355_v54, 0.0  ;;  %v1290_v28 = vmax.f32 %v8886_v31, %v1103_v18 }
 0x176   :  { %v1358_v19 = vadd.f32 %v8959_v59, %v1291_v26 }
 0x177   :  { %v1357_v21 = vadd.f32 %v8959_v59, %v1290_v28  ;;  %v6949_v63 = vpop.f32.mrb[80].mxu1  ;;  %7036 = vmatprep.mubr.msk.f32.mxu0 %vm1469_vm2, %v9128_v10 }
 0x178   :  { %v1293_v30 = vmax.f32 %v8888_v32, %v6949_v63  ;;  %v1113_v22 = vpop.f32.mrb[81].mxu1  ;;  %7037 = vmatmul.mubr.msk.f32.gmra.mrb[34].mxu0 %vm1469_vm2, %v9131_v20  ;;  %v9143_v24 = vmax.f32 %v1358_v19, 0.0 }
 0x179   :  { %v9140_v14 = vmax.f32 %v1357_v21, 0.0  ;;  %v1292_v31 = vmax.f32 %v8890_v33, %v1113_v22 }
 0x17a   :  { %v1360_v15 = vadd.f32 %v8959_v59, %v1293_v30 }
 0x17b   :  { %v1359_v54 = vadd.f32 %v8959_v59, %v1292_v31  ;;  %v6952_v13 = vpop.f32.mrb[82].mxu1  ;;  %7039 = vmatprep.mubr.msk.f32.mxu0 %vm1469_vm2, %v9140_v14 }
 0x17c   :  { %v1295_v32 = vmax.f32 %v8892_v34, %v6952_v13  ;;  %v1123_v26 = vpop.f32.mrb[83].mxu1  ;;  %7040 = vmatmul.mubr.msk.f32.gmra.mrb[36].mxu0 %vm1469_vm2, %v9143_v24  ;;  %v9155_v28 = vmax.f32 %v1360_v15, 0.0 }
 0x17d   :  { %v9152_v18 = vmax.f32 %v1359_v54, 0.0  ;;  %v1294_v33 = vmax.f32 %v8894_v35, %v1123_v26 }
 0x17e   :  { %v1362_v19 = vadd.f32 %v8959_v59, %v1295_v32 }
 0x17f   :  { %v1361_v21 = vadd.f32 %v8959_v59, %v1294_v33  ;;  %v6955_v63 = vpop.f32.mrb[84].mxu1  ;;  %7042 = vmatprep.mubr.msk.f32.mxu0 %vm1469_vm2, %v9152_v18 }
 0x180   :  { %v1297_v34 = vmax.f32 %v8896_v36, %v6955_v63  ;;  %v1133_v30 = vpop.f32.mrb[85].mxu1  ;;  %7043 = vmatmul.mubr.msk.f32.gmra.mrb[38].mxu0 %vm1469_vm2, %v9155_v28  ;;  %v9167_v31 = vmax.f32 %v1362_v19, 0.0 }
 0x181   :  { %v9164_v22 = vmax.f32 %v1361_v21, 0.0  ;;  %v1296_v35 = vmax.f32 %v8898_v37, %v1133_v30 }
 0x182   :  { %v1364_v15 = vadd.f32 %v8959_v59, %v1297_v34 }
 0x183   :  { %v1363_v54 = vadd.f32 %v8959_v59, %v1296_v35  ;;  %v6958_v13 = vpop.f32.mrb[86].mxu1  ;;  %7045 = vmatprep.mubr.msk.f32.mxu0 %vm1469_vm2, %v9164_v22 }
 0x184   :  { %v1299_v36 = vmax.f32 %v8900_v38, %v6958_v13  ;;  %v1143_v32 = vpop.f32.mrb[87].mxu1  ;;  %7046 = vmatmul.mubr.msk.f32.gmra.mrb[40].mxu0 %vm1469_vm2, %v9167_v31  ;;  %v9179_v33 = vmax.f32 %v1364_v15, 0.0 }
 0x185   :  { %v9176_v26 = vmax.f32 %v1363_v54, 0.0  ;;  %v1298_v37 = vmax.f32 %v8902_v39, %v1143_v32 }
 0x186   :  { %v1366_v19 = vadd.f32 %v8959_v59, %v1299_v36 }
 0x187   :  { %v1365_v21 = vadd.f32 %v8959_v59, %v1298_v37  ;;  %v6961_v63 = vpop.f32.mrb[88].mxu1  ;;  %7048 = vmatprep.mubr.msk.f32.mxu0 %vm1469_vm2, %v9176_v26 }
 0x188   :  { %v1301_v38 = vmax.f32 %v8904_v40, %v6961_v63  ;;  %v1153_v34 = vpop.f32.mrb[89].mxu1  ;;  %7049 = vmatmul.mubr.msk.f32.gmra.mrb[42].mxu0 %vm1469_vm2, %v9179_v33  ;;  %v9191_v35 = vmax.f32 %v1366_v19, 0.0 }
 0x189   :  { %v9188_v30 = vmax.f32 %v1365_v21, 0.0  ;;  %v1300_v39 = vmax.f32 %v8906_v41, %v1153_v34 }
 0x18a   :  { %v1368_v15 = vadd.f32 %v8959_v59, %v1301_v38 }
 0x18b   :  { %v1367_v54 = vadd.f32 %v8959_v59, %v1300_v39  ;;  %v6964_v13 = vpop.f32.mrb[90].mxu1  ;;  %7051 = vmatprep.mubr.msk.f32.mxu0 %vm1469_vm2, %v9188_v30 }
 0x18c   :  { %v1303_v40 = vmax.f32 %v8908_v42, %v6964_v13  ;;  %v1163_v36 = vpop.f32.mrb[91].mxu1  ;;  %7052 = vmatmul.mubr.msk.f32.gmra.mrb[44].mxu0 %vm1469_vm2, %v9191_v35  ;;  %v9203_v37 = vmax.f32 %v1368_v15, 0.0 }
 0x18d   :  { %v9200_v32 = vmax.f32 %v1367_v54, 0.0  ;;  %v1302_v41 = vmax.f32 %v8910_v43, %v1163_v36 }
 0x18e   :  { %v1370_v19 = vadd.f32 %v8959_v59, %v1303_v40 }
 0x18f   :  { %v1369_v21 = vadd.f32 %v8959_v59, %v1302_v41  ;;  %v6967_v63 = vpop.f32.mrb[92].mxu1  ;;  %7054 = vmatprep.mubr.msk.f32.mxu0 %vm1469_vm2, %v9200_v32 }
 0x190   :  { %v1305_v42 = vmax.f32 %v8912_v44, %v6967_v63  ;;  %v1173_v38 = vpop.f32.mrb[93].mxu1  ;;  %7055 = vmatmul.mubr.msk.f32.gmra.mrb[46].mxu0 %vm1469_vm2, %v9203_v37  ;;  %v9215_v39 = vmax.f32 %v1370_v19, 0.0 }
 0x191   :  { %v9212_v34 = vmax.f32 %v1369_v21, 0.0  ;;  %v1304_v43 = vmax.f32 %v8914_v45, %v1173_v38 }
 0x192   :  { %v1372_v15 = vadd.f32 %v8959_v59, %v1305_v42 }
 0x193   :  { %v1371_v54 = vadd.f32 %v8959_v59, %v1304_v43  ;;  %v6970_v13 = vpop.f32.mrb[94].mxu1  ;;  %7057 = vmatprep.mubr.msk.f32.mxu0 %vm1469_vm2, %v9212_v34 }
 0x194   :  { %v1307_v44 = vmax.f32 %v8916_v46, %v6970_v13  ;;  %v1183_v40 = vpop.f32.mrb[95].mxu1  ;;  %7058 = vmatmul.mubr.msk.f32.gmra.mrb[48].mxu0 %vm1469_vm2, %v9215_v39  ;;  %v9227_v41 = vmax.f32 %v1372_v15, 0.0 }
 0x195   :  { %v9224_v36 = vmax.f32 %v1371_v54, 0.0  ;;  %v1306_v45 = vmax.f32 %v8918_v47, %v1183_v40 }
 0x196   :  { %v1374_v19 = vadd.f32 %v8959_v59, %v1307_v44 }
 0x197   :  { %v1373_v21 = vadd.f32 %v8959_v59, %v1306_v45  ;;  %v6973_v63 = vpop.f32.mrb[96].mxu1  ;;  %7060 = vmatprep.mubr.msk.f32.mxu0 %vm1469_vm2, %v9224_v36 }
 0x198   :  { %v1309_v46 = vmax.f32 %v8920_v48, %v6973_v63  ;;  %v1193_v42 = vpop.f32.mrb[97].mxu1  ;;  %7061 = vmatmul.mubr.msk.f32.gmra.mrb[50].mxu0 %vm1469_vm2, %v9227_v41  ;;  %v9239_v43 = vmax.f32 %v1374_v19, 0.0 }
 0x199   :  { %v9236_v38 = vmax.f32 %v1373_v21, 0.0  ;;  %v1308_v47 = vmax.f32 %v8922_v49, %v1193_v42 }
 0x19a   :  { %v1376_v15 = vadd.f32 %v8959_v59, %v1309_v46 }
 0x19b   :  { %v1375_v54 = vadd.f32 %v8959_v59, %v1308_v47  ;;  %v6976_v13 = vpop.f32.mrb[98].mxu1  ;;  %7063 = vmatprep.mubr.msk.f32.mxu0 %vm1469_vm2, %v9236_v38 }
 0x19c   :  { %v1311_v48 = vmax.f32 %v8924_v50, %v6976_v13  ;;  %v1203_v44 = vpop.f32.mrb[99].mxu1  ;;  %7064 = vmatmul.mubr.msk.f32.gmra.mrb[52].mxu0 %vm1469_vm2, %v9239_v43  ;;  %v9251_v45 = vmax.f32 %v1376_v15, 0.0 }
 0x19d   :  { %v9248_v40 = vmax.f32 %v1375_v54, 0.0  ;;  %v1310_v49 = vmax.f32 %v8926_v51, %v1203_v44 }
 0x19e   :  { %10467 = vst [vmem:[#allocation19_spill] sm:$0xff] %v9251_v45  ;;  %v1378_v19 = vadd.f32 %v8959_v59, %v1311_v48  ;;  %v10470_v48 = vld [vmem:[#allocation8_spill] sm:$0xff] }
 0x19f   :  { %10466 = vst [vmem:[#allocation18_spill] sm:$0xff] %v9248_v40  ;;  %v1377_v21 = vadd.f32 %v8959_v59, %v1310_v49  ;;  %v6979_v63 = vpop.f32.mrb[100].mxu1  ;;  %7066 = vmatprep.mubr.msk.f32.mxu0 %vm1469_vm2, %v9248_v40 }
 0x1a0   :  { %v1313_v50 = vmax.f32 %v8928_v52, %v6979_v63  ;;  %v1213_v46 = vpop.f32.mrb[101].mxu1  ;;  %7067 = vmatmul.mubr.msk.f32.gmra.mrb[54].mxu0 %vm1469_vm2, %v9251_v45  ;;  %v9263_v47 = vmax.f32 %v1378_v19, 0.0 }
 0x1a1   :  { %v9260_v42 = vmax.f32 %v1377_v21, 0.0  ;;  %v1312_v51 = vmax.f32 %v8930_v53, %v1213_v46  ;;  %v10472_v21 = vld [vmem:[#allocation9_spill] sm:$0xff] }
 0x1a2   :  { %10469 = vst [vmem:[#allocation21_spill] sm:$0xff] %v9263_v47  ;;  %v1380_v15 = vadd.f32 %v8959_v59, %v1313_v50  ;;  %v10473_v50 = vld [vmem:[#allocation7_spill] sm:$0xff]  ;;  %v10474_v46 = vld [vmem:[#allocation17_spill] sm:$0xff] }
 0x1a3   :  { %10468 = vst [vmem:[#allocation20_spill] sm:$0xff] %v9260_v42  ;;  %v1379_v54 = vadd.f32 %v8959_v59, %v1312_v51  ;;  %v6982_v13 = vpop.f32.mrb[102].mxu1  ;;  %7069 = vmatprep.mubr.msk.f32.mxu0 %vm1469_vm2, %v9260_v42  ;;  %v10475_v51 = vmax.f32 %v10473_v50, %v10474_v46  ;;  %v10480_v50 = vld [vmem:[#allocation6_spill] sm:$0xff] }
 0x1a4   :  { %v1315_v52 = vmax.f32 %v10470_v48, %v6982_v13  ;;  %v1223_v44 = vpop.f32.mrb[103].mxu1  ;;  %7070 = vmatmul.mubr.msk.f32.gmra.mrb[56].mxu0 %vm1469_vm2, %v9263_v47  ;;  %v9275_v19 = vmax.f32 %v1380_v15, 0.0  ;;  %v1460_v48 = vld [vmem:[%s10413_s4 + $0x58] sm:$0xff] }
 0x1a5   :  { %v9272_v49 = vmax.f32 %v1379_v54, 0.0  ;;  %v1314_v53 = vmax.f32 %v10472_v21, %v1223_v44  ;;  %v1329_v45 = vadd.f32 %v8959_v59, %v10475_v51 }
 0x1a6   :  { %v1382_v63 = vadd.f32 %v8959_v59, %v1315_v52  ;;  %v10479_v52 = vld [vmem:[#allocation11_spill] sm:$0xff] }
 0x1a7   :  { %10471 = vst [vmem:[#allocation8_spill] sm:$0xff] %v9272_v49  ;;  %v1381_v42 = vadd.f32 %v8959_v59, %v1314_v53  ;;  %v9283_v13 = vpop.f32.mrb[104].mxu1  ;;  %7072 = vmatprep.mubr.msk.f32.mxu0 %vm1469_vm2, %v9272_v49  ;;  %v10481_v53 = vld [vmem:[#allocation16_spill] sm:$0xff]  ;;  %v1389_v49 = vmax.f32 %v1329_v45, 0.0  ;;  %v10486_v45 = vld [vmem:[#allocation13_spill] sm:$0xff] }
 0x1a8   :  { %10476 = vst [vmem:[#allocation9_spill] sm:$0xff] %v9283_v13  ;;  %v9289_v44 = vpop.f32.mrb[105].mxu1  ;;  %7073 = vmatmul.mubr.msk.f32.gmra.mrb[58].mxu0 %vm1469_vm2, %v9275_v19  ;;  %v10482_v46 = vmax.f32 %v10480_v50, %v10481_v53  ;;  %v9301_v47 = vmax.f32 %v1382_v63, 0.0  ;;  %v1462_v53 = vld [vmem:[%s10413_s4 + $0x68] sm:$0xff]  ;;  %v10492_v63 = vmax.f32 %v8962_v62, 0.0  ;;  %v10494_v62 = vld [vmem:[#allocation19_spill] sm:$0xff] }
 0x1a9   :  { %v9293_v15 = vmax.f32 %v1381_v42, 0.0  ;;  %v1459_v42 = vld [vmem:[%s10413_s4 + $0x50] sm:$0xff]  ;;  %v1466_v50 = vld [vmem:[%s10413_s4 + $0x88] sm:$0xff] }
 0x1aa   :  { %v1330_v51 = vadd.f32 %v8959_v59, %v10482_v46  ;;  %10483 = vst [vmem:[#allocation17_spill] sm:$0xff] %v9301_v47  ;;  %v7461_v13 = vpack.c.bf16 %v1460_v48, %v1459_v42 }
 0x1ab   :  { %10478 = vst [vmem:[#allocation7_spill] sm:$0xff] %v9293_v15  ;;  %v9303_v40 = vpop.f32.mrb[106].mxu1  ;;  %7075 = vmatprep.mubr.msk.f32.mxu0 %vm1469_vm2, %v9293_v15  ;;  %v1461_v15 = vld [vmem:[%s10413_s4 + $0x60] sm:$0xff] }
 0x1ac   :  { %10484 = vst [vmem:[#allocation11_spill] sm:$0xff] %v9303_v40  ;;  %v9315_v46 = vpop.f32.mrb[107].mxu1  ;;  %7076 = vmatmul.mubr.msk.f32.gmra.mrb[60].mxu0 %vm1469_vm2, %v9301_v47  ;;  %v1390_v21 = vmax.f32 %v1330_v51, 0.0  ;;  %v10491_v51 = vmax.f32 %v8965_v58, 0.0  ;;  %v7465_v42 = vpack.c.bf16 %v1462_v53, %v1461_v15  ;;  %v10493_v58 = vld [vmem:[#allocation18_spill] sm:$0xff] }
 0x1ad   :  { %7086 = vmatprep.mubr.msk.f32.mxu0 %vm1469_vm2, %v1389_v49  ;;  %v10490_v49 = vld [vmem:[#allocation15_spill] sm:$0xff]  ;;  %v3735_v40 = vld [vmem:[%s10415_s6 + $0x50] sm:$0xff] }
 0x1ae   :  { %v10497_v15 = vld [vmem:[#allocation8_spill] sm:$0xff]  ;;  %v1464_v53 = vld [vmem:[%s10413_s4 + $0x78] sm:$0xff] }
 0x1af   :  { %v9322_v54 = vpop.f32.mrb[108].mxu1 }
 0x1b0   :  { %10487 = vst [vmem:[#allocation6_spill] sm:$0xff] %v9322_v54  ;;  %v9332_v47 = vpop.f32.mrb[109].mxu1  ;;  %7087 = vmatmul.mubr.msk.f32.vlgmr.msra.gmra.mrb[10].mxu0 %vm1469_vm2, %v1390_v21  ;;  %v1463_v21 = vld [vmem:[%s10413_s4 + $0x70] sm:$0xff] }
 0x1b1   :  { %10489 = vst [vmem:[#allocation16_spill] sm:$0xff] %v9332_v47  ;;  %7089 = vmatprep.mubr.msk.f32.mxu0 %vm1469_vm2, %v10491_v51  ;;  %7460 = vmatpush3.bf16.msra.mxu0 %v8999_v17  ;;  %v10495_v17 = vld [vmem:[#allocation20_spill] sm:$0xff]  ;;  %v10503_v54 = vld [vmem:[#allocation17_spill] sm:$0xff]  ;;  %v3740_v47 = vld [vmem:[%s10415_s6 + $0x78] sm:$0xff] }
 0x1b2   :  { %7462 = vmatprep.subr.bf16.mxu0 %v7461_v13  ;;  %v1465_v51 = vld [vmem:[%s10413_s4 + $0x80] sm:$0xff] }
 0x1b3   :  { %v7473_v48 = vpack.c.bf16 %v1466_v50, %v1465_v51  ;;  %v10499_v50 = vld [vmem:[#allocation7_spill] sm:$0xff] }
 0x1b4   :  { %7090 = vmatmul.mubr.msk.f32.gmra.mrb[12].mxu0 %vm1469_vm2, %v10492_v63  ;;  %v7469_v63 = vpack.c.bf16 %v1464_v53, %v1463_v21  ;;  %v10501_v21 = vld [vmem:[#allocation9_spill] sm:$0xff] }
 0x1b5   :  { %7092 = vmatprep.mubr.msk.f32.mxu0 %vm1469_vm2, %v8992_v56  ;;  %7464 = vmatpush3.bf16.msra.mxu0 %v7461_v13  ;;  %v10496_v13 = vld [vmem:[#allocation21_spill] sm:$0xff] }
 0x1b6   :  { %7466 = vmatprep.subr.bf16.mxu0 %v7465_v42 }
 0x1b8   :  { %7093 = vmatmul.mubr.msk.f32.gmra.mrb[14].mxu0 %vm1469_vm2, %v8996_v55 }
 0x1b9   :  { %7095 = vmatprep.mubr.msk.f32.mxu0 %vm1469_vm2, %v9007_v60 }
 0x1bc   :  { %7096 = vmatmul.mubr.msk.f32.gmra.mrb[16].mxu0 %vm1469_vm2, %v9010_v61 }
 0x1bd   :  { %7098 = vmatprep.mubr.msk.f32.mxu0 %vm1469_vm2, %v9020_v29 }
 0x1c0   :  { %7099 = vmatmul.mubr.msk.f32.gmra.mrb[18].mxu0 %vm1469_vm2, %v9023_v57 }
 0x1c1   :  { %7101 = vmatprep.mubr.msk.f32.mxu0 %vm1469_vm2, %v9032_v3 }
 0x1c4   :  { %7102 = vmatmul.mubr.msk.f32.gmra.mrb[20].mxu0 %vm1469_vm2, %v9035_v25 }
 0x1c5   :  { %7104 = vmatprep.mubr.msk.f32.mxu0 %vm1469_vm2, %v9044_v0 }
 0x1c8   :  { %7105 = vmatmul.mubr.msk.f32.gmra.mrb[22].mxu0 %vm1469_vm2, %v9047_v11 }
 0x1c9   :  { %7107 = vmatprep.mubr.msk.f32.mxu0 %vm1469_vm2, %v9056_v23 }
 0x1cc   :  { %7108 = vmatmul.mubr.msk.f32.gmra.mrb[24].mxu0 %vm1469_vm2, %v9059_v2 }
 0x1cd   :  { %7110 = vmatprep.mubr.msk.f32.mxu0 %vm1469_vm2, %v9068_v27 }
 0x1d0   :  { %7111 = vmatmul.mubr.msk.f32.gmra.mrb[26].mxu0 %vm1469_vm2, %v9071_v5 }
 0x1d1   :  { %7113 = vmatprep.mubr.msk.f32.mxu0 %vm1469_vm2, %v9080_v1 }
 0x1d4   :  { %7114 = vmatmul.mubr.msk.f32.gmra.mrb[28].mxu0 %vm1469_vm2, %v9083_v7 }
 0x1d5   :  { %7116 = vmatprep.mubr.msk.f32.mxu0 %vm1469_vm2, %v9092_v4 }
 0x1d8   :  { %7117 = vmatmul.mubr.msk.f32.gmra.mrb[30].mxu0 %vm1469_vm2, %v9095_v9 }
 0x1d9   :  { %7119 = vmatprep.mubr.msk.f32.mxu0 %vm1469_vm2, %v9104_v6 }
 0x1dc   :  { %7120 = vmatmul.mubr.msk.f32.gmra.mrb[32].mxu0 %vm1469_vm2, %v9107_v12 }
 0x1dd   :  { %7122 = vmatprep.mubr.msk.f32.mxu0 %vm1469_vm2, %v9116_v8 }
 0x1e0   :  { %7123 = vmatmul.mubr.msk.f32.gmra.mrb[34].mxu0 %vm1469_vm2, %v9119_v16 }
 0x1e1   :  { %7125 = vmatprep.mubr.msk.f32.mxu0 %vm1469_vm2, %v9128_v10 }
 0x1e4   :  { %7126 = vmatmul.mubr.msk.f32.gmra.mrb[36].mxu0 %vm1469_vm2, %v9131_v20 }
 0x1e5   :  { %7128 = vmatprep.mubr.msk.f32.mxu0 %vm1469_vm2, %v9140_v14 }
 0x1e8   :  { %7129 = vmatmul.mubr.msk.f32.gmra.mrb[38].mxu0 %vm1469_vm2, %v9143_v24 }
 0x1e9   :  { %7131 = vmatprep.mubr.msk.f32.mxu0 %vm1469_vm2, %v9152_v18 }
 0x1ec   :  { %7132 = vmatmul.mubr.msk.f32.gmra.mrb[40].mxu0 %vm1469_vm2, %v9155_v28 }
 0x1ed   :  { %7134 = vmatprep.mubr.msk.f32.mxu0 %vm1469_vm2, %v9164_v22 }
 0x1f0   :  { %7135 = vmatmul.mubr.msk.f32.gmra.mrb[42].mxu0 %vm1469_vm2, %v9167_v31 }
 0x1f1   :  { %7137 = vmatprep.mubr.msk.f32.mxu0 %vm1469_vm2, %v9176_v26 }
 0x1f4   :  { %7138 = vmatmul.mubr.msk.f32.gmra.mrb[44].mxu0 %vm1469_vm2, %v9179_v33 }
 0x1f5   :  { %7140 = vmatprep.mubr.msk.f32.mxu0 %vm1469_vm2, %v9188_v30 }
 0x1f8   :  { %7141 = vmatmul.mubr.msk.f32.gmra.mrb[46].mxu0 %vm1469_vm2, %v9191_v35 }
 0x1f9   :  { %7143 = vmatprep.mubr.msk.f32.mxu0 %vm1469_vm2, %v9200_v32 }
 0x1fc   :  { %7144 = vmatmul.mubr.msk.f32.gmra.mrb[48].mxu0 %vm1469_vm2, %v9203_v37 }
 0x1fd   :  { %7146 = vmatprep.mubr.msk.f32.mxu0 %vm1469_vm2, %v9212_v34 }
 0x200   :  { %7147 = vmatmul.mubr.msk.f32.gmra.mrb[50].mxu0 %vm1469_vm2, %v9215_v39 }
 0x201   :  { %7149 = vmatprep.mubr.msk.f32.mxu0 %vm1469_vm2, %v9224_v36 }
 0x204   :  { %7150 = vmatmul.mubr.msk.f32.gmra.mrb[52].mxu0 %vm1469_vm2, %v9227_v41 }
 0x205   :  { %7152 = vmatprep.mubr.msk.f32.mxu0 %vm1469_vm2, %v9236_v38 }
 0x208   :  { %7153 = vmatmul.mubr.msk.f32.gmra.mrb[54].mxu0 %vm1469_vm2, %v9239_v43 }
 0x209   :  { %7155 = vmatprep.mubr.msk.f32.mxu0 %vm1469_vm2, %v10493_v58 }
 0x20c   :  { %7156 = vmatmul.mubr.msk.f32.gmra.mrb[56].mxu0 %vm1469_vm2, %v10494_v62 }
 0x20d   :  { %7158 = vmatprep.mubr.msk.f32.mxu0 %vm1469_vm2, %v10495_v17 }
 0x210   :  { %7159 = vmatmul.mubr.msk.f32.gmra.mrb[58].mxu0 %vm1469_vm2, %v10496_v13 }
 0x211   :  { %7161 = vmatprep.mubr.msk.f32.mxu0 %vm1469_vm2, %v10497_v15 }
 0x214   :  { %7162 = vmatmul.mubr.msk.f32.gmra.mrb[60].mxu0 %vm1469_vm2, %v9275_v19 }
 0x215   :  { %7172 = vmatprep.mubr.msk.f32.mxu0 %vm1469_vm2, %v8992_v56  ;;  %v10498_v56 = vmax.f32 %v10479_v52, %v9289_v44  ;;  %v1467_v52 = vld [vmem:[%s10413_s4 + $0x90] sm:$0xff] }
 0x218   :  { %7173 = vmatmul.mubr.msk.f32.vlgmr.msra.gmra.mrb[10].mxu0 %vm1469_vm2, %v8996_v55  ;;  %v1383_v55 = vadd.f32 %v8959_v59, %v10498_v56  ;;  %v1468_v56 = vld [vmem:[%s10413_s4 + $0x98] sm:$0xff] }
 0x219   :  { %7175 = vmatprep.mubr.msk.f32.mxu0 %vm1469_vm2, %v9007_v60  ;;  %7468 = vmatpush3.bf16.msra.mxu0 %v7465_v42  ;;  %v10500_v42 = vld [vmem:[#allocation10_spill] sm:$0xff] }
 0x21a   :  { %7470 = vmatprep.subr.bf16.mxu0 %v7469_v63  ;;  %v10502_v53 = vmax.f32 %v10500_v42, %v10501_v21  ;;  %v9558_v51 = vmax.f32 %v1383_v55, 0.0  ;;  %v7477_v55 = vpack.c.bf16 %v1468_v56, %v1467_v52  ;;  %v3727_v21 = vld [vmem:[%s10415_s6 + $0x10] sm:$0xff] }
 0x21c   :  { %7176 = vmatmul.mubr.msk.f32.gmra.mrb[12].mxu0 %vm1469_vm2, %v9010_v61 }
 0x21d   :  { %7178 = vmatprep.mubr.msk.f32.mxu0 %vm1469_vm2, %v9020_v29  ;;  %7472 = vmatpush3.bf16.msra.mxu0 %v7469_v63  ;;  %v1384_v63 = vadd.f32 %v8959_v59, %v10502_v53  ;;  %v3730_v53 = vld [vmem:[%s10415_s6 + $0x28] sm:$0xff] }
 0x21e   :  { %7474 = vmatprep.subr.bf16.mxu0 %v7473_v48 }
 0x21f   :  { %v9564_v44 = vmax.f32 %v1384_v63, 0.0  ;;  %v3732_v63 = vld [vmem:[%s10415_s6 + $0x38] sm:$0xff] }
 0x220   :  { %7179 = vmatmul.mubr.msk.f32.gmra.mrb[14].mxu0 %vm1469_vm2, %v9023_v57  ;;  %v7485_v56 = vpack.c.bf16 %v3732_v63, %v3730_v53  ;;  %v3733_v63 = vld [vmem:[%s10415_s6 + $0x40] sm:$0xff] }
 0x221   :  { %7181 = vmatprep.mubr.msk.f32.mxu0 %vm1469_vm2, %v9032_v3 }
 0x224   :  { %7182 = vmatmul.mubr.msk.f32.gmra.mrb[16].mxu0 %vm1469_vm2, %v9035_v25 }
 0x225   :  { %7184 = vmatprep.mubr.msk.f32.mxu0 %vm1469_vm2, %v9044_v0 }
 0x228   :  { %7185 = vmatmul.mubr.msk.f32.gmra.mrb[18].mxu0 %vm1469_vm2, %v9047_v11 }
 0x229   :  { %7187 = vmatprep.mubr.msk.f32.mxu0 %vm1469_vm2, %v9056_v23 }
 0x22c   :  { %7188 = vmatmul.mubr.msk.f32.gmra.mrb[20].mxu0 %vm1469_vm2, %v9059_v2 }
 0x22d   :  { %7190 = vmatprep.mubr.msk.f32.mxu0 %vm1469_vm2, %v9068_v27 }
 0x230   :  { %7191 = vmatmul.mubr.msk.f32.gmra.mrb[22].mxu0 %vm1469_vm2, %v9071_v5 }
 0x231   :  { %7193 = vmatprep.mubr.msk.f32.mxu0 %vm1469_vm2, %v9080_v1 }
 0x234   :  { %7194 = vmatmul.mubr.msk.f32.gmra.mrb[24].mxu0 %vm1469_vm2, %v9083_v7 }
 0x235   :  { %7196 = vmatprep.mubr.msk.f32.mxu0 %vm1469_vm2, %v9092_v4 }
 0x238   :  { %7197 = vmatmul.mubr.msk.f32.gmra.mrb[26].mxu0 %vm1469_vm2, %v9095_v9 }
 0x239   :  { %7199 = vmatprep.mubr.msk.f32.mxu0 %vm1469_vm2, %v9104_v6 }
 0x23c   :  { %7200 = vmatmul.mubr.msk.f32.gmra.mrb[28].mxu0 %vm1469_vm2, %v9107_v12 }
 0x23d   :  { %7202 = vmatprep.mubr.msk.f32.mxu0 %vm1469_vm2, %v9116_v8 }
 0x240   :  { %7203 = vmatmul.mubr.msk.f32.gmra.mrb[30].mxu0 %vm1469_vm2, %v9119_v16 }
 0x241   :  { %7205 = vmatprep.mubr.msk.f32.mxu0 %vm1469_vm2, %v9128_v10 }
 0x244   :  { %7206 = vmatmul.mubr.msk.f32.gmra.mrb[32].mxu0 %vm1469_vm2, %v9131_v20 }
 0x245   :  { %7208 = vmatprep.mubr.msk.f32.mxu0 %vm1469_vm2, %v9140_v14 }
 0x248   :  { %7209 = vmatmul.mubr.msk.f32.gmra.mrb[34].mxu0 %vm1469_vm2, %v9143_v24 }
 0x249   :  { %7211 = vmatprep.mubr.msk.f32.mxu0 %vm1469_vm2, %v9152_v18 }
 0x24c   :  { %7212 = vmatmul.mubr.msk.f32.gmra.mrb[36].mxu0 %vm1469_vm2, %v9155_v28 }
 0x24d   :  { %7214 = vmatprep.mubr.msk.f32.mxu0 %vm1469_vm2, %v9164_v22 }
 0x250   :  { %7215 = vmatmul.mubr.msk.f32.gmra.mrb[38].mxu0 %vm1469_vm2, %v9167_v31 }
 0x251   :  { %7217 = vmatprep.mubr.msk.f32.mxu0 %vm1469_vm2, %v9176_v26 }
 0x254   :  { %7218 = vmatmul.mubr.msk.f32.gmra.mrb[40].mxu0 %vm1469_vm2, %v9179_v33 }
 0x255   :  { %7220 = vmatprep.mubr.msk.f32.mxu0 %vm1469_vm2, %v9188_v30 }
 0x258   :  { %7221 = vmatmul.mubr.msk.f32.gmra.mrb[42].mxu0 %vm1469_vm2, %v9191_v35 }
 0x259   :  { %7223 = vmatprep.mubr.msk.f32.mxu0 %vm1469_vm2, %v9200_v32 }
 0x25c   :  { %7224 = vmatmul.mubr.msk.f32.gmra.mrb[44].mxu0 %vm1469_vm2, %v9203_v37 }
 0x25d   :  { %7226 = vmatprep.mubr.msk.f32.mxu0 %vm1469_vm2, %v9212_v34 }
 0x260   :  { %7227 = vmatmul.mubr.msk.f32.gmra.mrb[46].mxu0 %vm1469_vm2, %v9215_v39 }
 0x261   :  { %7229 = vmatprep.mubr.msk.f32.mxu0 %vm1469_vm2, %v9224_v36 }
 0x264   :  { %7230 = vmatmul.mubr.msk.f32.gmra.mrb[48].mxu0 %vm1469_vm2, %v9227_v41 }
 0x265   :  { %7232 = vmatprep.mubr.msk.f32.mxu0 %vm1469_vm2, %v9236_v38 }
 0x268   :  { %7233 = vmatmul.mubr.msk.f32.gmra.mrb[50].mxu0 %vm1469_vm2, %v9239_v43 }
 0x269   :  { %7235 = vmatprep.mubr.msk.f32.mxu0 %vm1469_vm2, %v10493_v58 }
 0x26c   :  { %7236 = vmatmul.mubr.msk.f32.gmra.mrb[52].mxu0 %vm1469_vm2, %v10494_v62 }
 0x26d   :  { %7238 = vmatprep.mubr.msk.f32.mxu0 %vm1469_vm2, %v10495_v17 }
 0x270   :  { %7239 = vmatmul.mubr.msk.f32.gmra.mrb[54].mxu0 %vm1469_vm2, %v10496_v13 }
 0x271   :  { %7241 = vmatprep.mubr.msk.f32.mxu0 %vm1469_vm2, %v10497_v15 }
 0x274   :  { %7242 = vmatmul.mubr.msk.f32.gmra.mrb[56].mxu0 %vm1469_vm2, %v9275_v19 }
 0x275   :  { %7244 = vmatprep.mubr.msk.f32.mxu0 %vm1469_vm2, %v10499_v50 }
 0x278   :  { %7245 = vmatmul.mubr.msk.f32.gmra.mrb[58].mxu0 %vm1469_vm2, %v10503_v54 }
 0x279   :  { %7247 = vmatprep.mubr.msk.f32.mxu0 %vm1469_vm2, %v9558_v51 }
 0x27c   :  { %7248 = vmatmul.mubr.msk.f32.gmra.mrb[60].mxu0 %vm1469_vm2, %v9564_v44 }
 0x27d   :  { %7258 = vmatprep.mubr.msk.f32.mxu0 %vm1469_vm2, %v9007_v60  ;;  %v3726_v60 = vld [vmem:[%s10415_s6 + $0x8] sm:$0xff] }
 0x280   :  { %7259 = vmatmul.mubr.msk.f32.vlgmr.msra.gmra.mrb[10].mxu0 %vm1469_vm2, %v9010_v61  ;;  %v3728_v61 = vld [vmem:[%s10415_s6 + $0x18] sm:$0xff] }
 0x281   :  { %7261 = vmatprep.mubr.msk.f32.mxu0 %vm1469_vm2, %v9020_v29  ;;  %7476 = vmatpush3.bf16.msra.mxu0 %v7473_v48  ;;  %v3725_v48 = vld [vmem:[%s10415_s6] sm:$0xff]  ;;  %v7481_v42 = vpack.c.bf16 %v3728_v61, %v3726_v60  ;;  %v3731_v60 = vld [vmem:[%s10415_s6 + $0x30] sm:$0xff]  ;;  %v3734_v61 = vld [vmem:[%s10415_s6 + $0x48] sm:$0xff] }
 0x282   :  { %7478 = vmatprep.subr.bf16.mxu0 %v7477_v55  ;;  %v7483_v52 = vpack.c.bf16 %v3727_v21, %v3725_v48  ;;  %v3736_v48 = vld [vmem:[%s10415_s6 + $0x58] sm:$0xff] }
 0x283   :  { %7482 = vmatprep.subr.bf16.mxu1 %v7481_v42  ;;  %v7489_v53 = vpack.c.bf16 %v3736_v48, %v3734_v61  ;;  %v3738_v42 = vld [vmem:[%s10415_s6 + $0x68] sm:$0xff] }
 0x284   :  { %7262 = vmatmul.mubr.msk.f32.gmra.mrb[12].mxu0 %vm1469_vm2, %v9023_v57  ;;  %7484 = vmatpush1.bf16.msra.mxu1 %v7483_v52  ;;  %v7491_v52 = vpack.c.bf16 %v3735_v40, %v3733_v63  ;;  %v10504_v40 = vmax.f32 %v10486_v45, %v9315_v46  ;;  %v10505_v48 = vld [vmem:[#allocation12_spill] sm:$0xff] }
 0x285   :  { %7264 = vmatprep.mubr.msk.f32.mxu0 %vm1469_vm2, %v9032_v3  ;;  %7480 = vmatpush3.bf16.msra.mxu0 %v7477_v55  ;;  %v3729_v55 = vld [vmem:[%s10415_s6 + $0x20] sm:$0xff] }
 0x286   :  { %v7487_v21 = vpack.c.bf16 %v3731_v60, %v3729_v55  ;;  %7486 = vmatprep.subr.bf16.mxu1 %v7485_v56  ;;  %v7493_v56 = vpack.c.bf16 %v3740_v47, %v3738_v42  ;;  %v3737_v55 = vld [vmem:[%s10415_s6 + $0x60] sm:$0xff]  ;;  %v3739_v60 = vld [vmem:[%s10415_s6 + $0x70] sm:$0xff]  ;;  %v1385_v47 = vadd.f32 %v8959_v59, %v10504_v40 }
 0x287   :  { %v7495_v61 = vpack.c.bf16 %v3739_v60, %v3737_v55  ;;  %v4106_v40 = vld [vmem:[%s10416_s7 + $0x10] sm:$0xff] }
 0x288   :  { %7265 = vmatmul.mubr.msk.f32.gmra.mrb[14].mxu0 %vm1469_vm2, %v9035_v25  ;;  %7488 = vmatpush1.bf16.msra.mxu1 %v7487_v21  ;;  %v10506_v21 = vld [vmem:[#allocation11_spill] sm:$0xff]  ;;  %v1445_v42 = vmax.f32 %v1385_v47, 0.0 }
 0x289   :  { %7267 = vmatprep.mubr.msk.f32.mxu0 %vm1469_vm2, %v9044_v0  ;;  %7490 = vmatprep.subr.bf16.mxu1 %v7489_v53  ;;  %v10507_v53 = vmax.f32 %v10505_v48, %v10506_v21  ;;  %v4109_v48 = vld [vmem:[%s10416_s7 + $0x28] sm:$0xff]  ;;  %v4111_v21 = vld [vmem:[%s10416_s7 + $0x38] sm:$0xff] }
 0x28b   :  { %v1386_v63 = vadd.f32 %v8959_v59, %v10507_v53  ;;  %v8249_v59 = vld [vmem:[%s10414_s3] ss:$0 sm:$0xff] }
 0x28c   :  { %7268 = vmatmul.mubr.msk.f32.gmra.mrb[16].mxu0 %vm1469_vm2, %v9047_v11  ;;  %7492 = vmatpush1.bf16.msra.mxu1 %v7491_v52 }
 0x28d   :  { %7270 = vmatprep.mubr.msk.f32.mxu0 %vm1469_vm2, %v9056_v23  ;;  %7494 = vmatprep.subr.bf16.mxu1 %v7493_v56  ;;  %v1446_v46 = vmax.f32 %v1386_v63, 0.0 }
 0x290   :  { %7271 = vmatmul.mubr.msk.f32.gmra.mrb[18].mxu0 %vm1469_vm2, %v9059_v2  ;;  %7496 = vmatpush1.bf16.msra.mxu1 %v7495_v61  ;;  %v4104_v61 = vld [vmem:[%s10416_s7] sm:$0xff] }
 0x291   :  { %7273 = vmatprep.mubr.msk.f32.mxu0 %vm1469_vm2, %v9068_v27 }
 0x294   :  { %7274 = vmatmul.mubr.msk.f32.gmra.mrb[20].mxu0 %vm1469_vm2, %v9071_v5 }
 0x295   :  { %7276 = vmatprep.mubr.msk.f32.mxu0 %vm1469_vm2, %v9080_v1 }
 0x298   :  { %7277 = vmatmul.mubr.msk.f32.gmra.mrb[22].mxu0 %vm1469_vm2, %v9083_v7 }
 0x299   :  { %7279 = vmatprep.mubr.msk.f32.mxu0 %vm1469_vm2, %v9092_v4 }
 0x29c   :  { %7280 = vmatmul.mubr.msk.f32.gmra.mrb[24].mxu0 %vm1469_vm2, %v9095_v9 }
 0x29d   :  { %7282 = vmatprep.mubr.msk.f32.mxu0 %vm1469_vm2, %v9104_v6 }
 0x2a0   :  { %7283 = vmatmul.mubr.msk.f32.gmra.mrb[26].mxu0 %vm1469_vm2, %v9107_v12 }
 0x2a1   :  { %7285 = vmatprep.mubr.msk.f32.mxu0 %vm1469_vm2, %v9116_v8 }
 0x2a4   :  { %7286 = vmatmul.mubr.msk.f32.gmra.mrb[28].mxu0 %vm1469_vm2, %v9119_v16 }
 0x2a5   :  { %7288 = vmatprep.mubr.msk.f32.mxu0 %vm1469_vm2, %v9128_v10 }
 0x2a8   :  { %7289 = vmatmul.mubr.msk.f32.gmra.mrb[30].mxu0 %vm1469_vm2, %v9131_v20 }
 0x2a9   :  { %7291 = vmatprep.mubr.msk.f32.mxu0 %vm1469_vm2, %v9140_v14 }
 0x2ac   :  { %7292 = vmatmul.mubr.msk.f32.gmra.mrb[32].mxu0 %vm1469_vm2, %v9143_v24 }
 0x2ad   :  { %7294 = vmatprep.mubr.msk.f32.mxu0 %vm1469_vm2, %v9152_v18 }
 0x2b0   :  { %7295 = vmatmul.mubr.msk.f32.gmra.mrb[34].mxu0 %vm1469_vm2, %v9155_v28 }
 0x2b1   :  { %7297 = vmatprep.mubr.msk.f32.mxu0 %vm1469_vm2, %v9164_v22 }
 0x2b4   :  { %7298 = vmatmul.mubr.msk.f32.gmra.mrb[36].mxu0 %vm1469_vm2, %v9167_v31 }
 0x2b5   :  { %7300 = vmatprep.mubr.msk.f32.mxu0 %vm1469_vm2, %v9176_v26 }
 0x2b8   :  { %7301 = vmatmul.mubr.msk.f32.gmra.mrb[38].mxu0 %vm1469_vm2, %v9179_v33 }
 0x2b9   :  { %7303 = vmatprep.mubr.msk.f32.mxu0 %vm1469_vm2, %v9188_v30 }
 0x2bc   :  { %7304 = vmatmul.mubr.msk.f32.gmra.mrb[40].mxu0 %vm1469_vm2, %v9191_v35 }
 0x2bd   :  { %7306 = vmatprep.mubr.msk.f32.mxu0 %vm1469_vm2, %v9200_v32 }
 0x2c0   :  { %7307 = vmatmul.mubr.msk.f32.gmra.mrb[42].mxu0 %vm1469_vm2, %v9203_v37 }
 0x2c1   :  { %7309 = vmatprep.mubr.msk.f32.mxu0 %vm1469_vm2, %v9212_v34 }
 0x2c4   :  { %7310 = vmatmul.mubr.msk.f32.gmra.mrb[44].mxu0 %vm1469_vm2, %v9215_v39 }
 0x2c5   :  { %7312 = vmatprep.mubr.msk.f32.mxu0 %vm1469_vm2, %v9224_v36 }
 0x2c8   :  { %7313 = vmatmul.mubr.msk.f32.gmra.mrb[46].mxu0 %vm1469_vm2, %v9227_v41 }
 0x2c9   :  { %7315 = vmatprep.mubr.msk.f32.mxu0 %vm1469_vm2, %v9236_v38 }
 0x2cc   :  { %7316 = vmatmul.mubr.msk.f32.gmra.mrb[48].mxu0 %vm1469_vm2, %v9239_v43 }
 0x2cd   :  { %7318 = vmatprep.mubr.msk.f32.mxu0 %vm1469_vm2, %v10493_v58 }
 0x2d0   :  { %7319 = vmatmul.mubr.msk.f32.gmra.mrb[50].mxu0 %vm1469_vm2, %v10494_v62 }
 0x2d1   :  { %7321 = vmatprep.mubr.msk.f32.mxu0 %vm1469_vm2, %v10495_v17 }
 0x2d4   :  { %7322 = vmatmul.mubr.msk.f32.gmra.mrb[52].mxu0 %vm1469_vm2, %v10496_v13 }
 0x2d5   :  { %7324 = vmatprep.mubr.msk.f32.mxu0 %vm1469_vm2, %v10497_v15 }
 0x2d8   :  { %7325 = vmatmul.mubr.msk.f32.gmra.mrb[54].mxu0 %vm1469_vm2, %v9275_v19 }
 0x2d9   :  { %7327 = vmatprep.mubr.msk.f32.mxu0 %vm1469_vm2, %v10499_v50 }
 0x2dc   :  { %7328 = vmatmul.mubr.msk.f32.gmra.mrb[56].mxu0 %vm1469_vm2, %v10503_v54 }
 0x2dd   :  { %7330 = vmatprep.mubr.msk.f32.mxu0 %vm1469_vm2, %v9558_v51 }
 0x2e0   :  { %7331 = vmatmul.mubr.msk.f32.gmra.mrb[58].mxu0 %vm1469_vm2, %v9564_v44 }
 0x2e1   :  { %7333 = vmatprep.mubr.msk.f32.mxu0 %vm1469_vm2, %v1445_v42 }
 0x2e4   :  { %7334 = vmatmul.mubr.msk.f32.gmra.mrb[60].mxu0 %vm1469_vm2, %v1446_v46 }
 0x2e5   :  { %7344 = vmatprep.mubr.msk.f32.mxu0 %vm1469_vm2, %v9020_v29  ;;  %v10508_v29 = vld [vmem:[#allocation16_spill] sm:$0xff] }
 0x2e8   :  { %7345 = vmatmul.mubr.msk.f32.vlgmr.msra.gmra.mrb[10].mxu0 %vm1469_vm2, %v9023_v57  ;;  %v10509_v57 = vmax.f32 %v10490_v49, %v10508_v29 }
 0x2e9   :  { %7347 = vmatprep.mubr.msk.f32.mxu0 %vm1469_vm2, %v9032_v3 }
 0x2ea   :  { %v1387_v3 = vadd.f32 %v8249_v59, %v10509_v57 }
 0x2ec   :  { %7348 = vmatmul.mubr.msk.f32.gmra.mrb[12].mxu0 %vm1469_vm2, %v9035_v25  ;;  %v10510_v25 = vld [vmem:[#allocation14_spill] sm:$0xff] }
 0x2ed   :  { %7350 = vmatprep.mubr.msk.f32.mxu0 %vm1469_vm2, %v9044_v0  ;;  %v10511_v0 = vld [vmem:[#allocation6_spill] sm:$0xff] }
 0x2f0   :  { %7351 = vmatmul.mubr.msk.f32.gmra.mrb[14].mxu0 %vm1469_vm2, %v9047_v11  ;;  %v10512_v11 = vmax.f32 %v10510_v25, %v10511_v0  ;;  %v9894_v0 = vpack.c.bf16 %v4106_v40, %v4104_v61 }
 0x2f1   :  { %7353 = vmatprep.mubr.msk.f32.mxu0 %vm1469_vm2, %v9056_v23 }
 0x2f2   :  { %v1388_v23 = vadd.f32 %v8249_v59, %v10512_v11 }
 0x2f4   :  { %7354 = vmatmul.mubr.msk.f32.gmra.mrb[16].mxu0 %vm1469_vm2, %v9059_v2  ;;  %v1447_v2 = vmax.f32 %v1387_v3, 0.0 }
 0x2f5   :  { %7356 = vmatprep.mubr.msk.f32.mxu0 %vm1469_vm2, %v9068_v27  ;;  %v1448_v27 = vmax.f32 %v1388_v23, 0.0 }
 0x2f8   :  { %7357 = vmatmul.mubr.msk.f32.gmra.mrb[18].mxu0 %vm1469_vm2, %v9071_v5  ;;  %v8250_v5 = vmov 0.0  }
 0x2f9   :  { %7359 = vmatprep.mubr.msk.f32.mxu0 %vm1469_vm2, %v9080_v1  ;;  %3895 = vmatprep.mubr.f32.mxu1 %v8250_v5  ;;  %v4105_v1 = vld [vmem:[%s10416_s7 + $0x8] sm:$0xff] }
 0x2fc   :  { %7360 = vmatmul.mubr.msk.f32.gmra.mrb[20].mxu0 %vm1469_vm2, %v9083_v7  ;;  %v4107_v7 = vld [vmem:[%s10416_s7 + $0x18] sm:$0xff] }
 0x2fd   :  { %7362 = vmatprep.mubr.msk.f32.mxu0 %vm1469_vm2, %v9092_v4  ;;  %v9848_v4 = vpack.c.bf16 %v4107_v7, %v4105_v1  ;;  %v4110_v1 = vld [vmem:[%s10416_s7 + $0x30] sm:$0xff] }
 0x2ff   :  { %7498 = vmatprep.subr.bf16.mxu1 %v9848_v4 }
 0x300   :  { %7363 = vmatmul.mubr.msk.f32.gmra.mrb[22].mxu0 %vm1469_vm2, %v9095_v9  ;;  %v9854_v9 = vld [vmem:[%s10417_s5] ss:$0 sm:$0xff] }
 0x301   :  { %7365 = vmatprep.mubr.msk.f32.mxu0 %vm1469_vm2, %v9104_v6 }
 0x304   :  { %7366 = vmatmul.mubr.msk.f32.gmra.mrb[24].mxu0 %vm1469_vm2, %v9107_v12 }
 0x305   :  { %7368 = vmatprep.mubr.msk.f32.mxu0 %vm1469_vm2, %v9116_v8 }
 0x308   :  { %7369 = vmatmul.mubr.msk.f32.gmra.mrb[26].mxu0 %vm1469_vm2, %v9119_v16 }
 0x309   :  { %7371 = vmatprep.mubr.msk.f32.mxu0 %vm1469_vm2, %v9128_v10 }
 0x30c   :  { %7372 = vmatmul.mubr.msk.f32.gmra.mrb[28].mxu0 %vm1469_vm2, %v9131_v20 }
 0x30d   :  { %7374 = vmatprep.mubr.msk.f32.mxu0 %vm1469_vm2, %v9140_v14 }
 0x310   :  { %7375 = vmatmul.mubr.msk.f32.gmra.mrb[30].mxu0 %vm1469_vm2, %v9143_v24 }
 0x311   :  { %7377 = vmatprep.mubr.msk.f32.mxu0 %vm1469_vm2, %v9152_v18 }
 0x314   :  { %7378 = vmatmul.mubr.msk.f32.gmra.mrb[32].mxu0 %vm1469_vm2, %v9155_v28 }
 0x315   :  { %7380 = vmatprep.mubr.msk.f32.mxu0 %vm1469_vm2, %v9164_v22 }
 0x318   :  { %7381 = vmatmul.mubr.msk.f32.gmra.mrb[34].mxu0 %vm1469_vm2, %v9167_v31 }
 0x319   :  { %7383 = vmatprep.mubr.msk.f32.mxu0 %vm1469_vm2, %v9176_v26 }
 0x31c   :  { %7384 = vmatmul.mubr.msk.f32.gmra.mrb[36].mxu0 %vm1469_vm2, %v9179_v33 }
 0x31d   :  { %7386 = vmatprep.mubr.msk.f32.mxu0 %vm1469_vm2, %v9188_v30 }
 0x320   :  { %7387 = vmatmul.mubr.msk.f32.gmra.mrb[38].mxu0 %vm1469_vm2, %v9191_v35 }
 0x321   :  { %7389 = vmatprep.mubr.msk.f32.mxu0 %vm1469_vm2, %v9200_v32 }
 0x324   :  { %7390 = vmatmul.mubr.msk.f32.gmra.mrb[40].mxu0 %vm1469_vm2, %v9203_v37 }
 0x325   :  { %7392 = vmatprep.mubr.msk.f32.mxu0 %vm1469_vm2, %v9212_v34 }
 0x328   :  { %7393 = vmatmul.mubr.msk.f32.gmra.mrb[42].mxu0 %vm1469_vm2, %v9215_v39 }
 0x329   :  { %7395 = vmatprep.mubr.msk.f32.mxu0 %vm1469_vm2, %v9224_v36 }
 0x32c   :  { %7396 = vmatmul.mubr.msk.f32.gmra.mrb[44].mxu0 %vm1469_vm2, %v9227_v41 }
 0x32d   :  { %7398 = vmatprep.mubr.msk.f32.mxu0 %vm1469_vm2, %v9236_v38 }
 0x330   :  { %7399 = vmatmul.mubr.msk.f32.gmra.mrb[46].mxu0 %vm1469_vm2, %v9239_v43 }
 0x331   :  { %7401 = vmatprep.mubr.msk.f32.mxu0 %vm1469_vm2, %v10493_v58 }
 0x334   :  { %7402 = vmatmul.mubr.msk.f32.gmra.mrb[48].mxu0 %vm1469_vm2, %v10494_v62 }
 0x335   :  { %7404 = vmatprep.mubr.msk.f32.mxu0 %vm1469_vm2, %v10495_v17 }
 0x338   :  { %7405 = vmatmul.mubr.msk.f32.gmra.mrb[50].mxu0 %vm1469_vm2, %v10496_v13 }
 0x339   :  { %7407 = vmatprep.mubr.msk.f32.mxu0 %vm1469_vm2, %v10497_v15 }
 0x33c   :  { %7408 = vmatmul.mubr.msk.f32.gmra.mrb[52].mxu0 %vm1469_vm2, %v9275_v19 }
 0x33d   :  { %7410 = vmatprep.mubr.msk.f32.mxu0 %vm1469_vm2, %v10499_v50 }
 0x340   :  { %7411 = vmatmul.mubr.msk.f32.gmra.mrb[54].mxu0 %vm1469_vm2, %v10503_v54 }
 0x341   :  { %7413 = vmatprep.mubr.msk.f32.mxu0 %vm1469_vm2, %v9558_v51 }
 0x344   :  { %7414 = vmatmul.mubr.msk.f32.gmra.mrb[56].mxu0 %vm1469_vm2, %v9564_v44 }
 0x345   :  { %7416 = vmatprep.mubr.msk.f32.mxu0 %vm1469_vm2, %v1445_v42 }
 0x348   :  { %7417 = vmatmul.mubr.msk.f32.gmra.mrb[58].mxu0 %vm1469_vm2, %v1446_v46 }
 0x349   :  { %7419 = vmatprep.mubr.msk.f32.mxu0 %vm1469_vm2, %v1447_v2  ;;  %v9898_v2 = vpack.c.bf16 %v4111_v21, %v4109_v48 }
 0x34c   :  { %7420 = vmatmul.mubr.msk.f32.gmra.mrb[60].mxu0 %vm1469_vm2, %v1448_v27  ;;  %v4108_v27 = vld [vmem:[%s10416_s7 + $0x20] sm:$0xff] }
 0x3bb   :  { %v7346_v6 = vpop.f32.mrb[10].mxu0 }
 0x3bc   :  { %v3439_v12 = vadd.f32 %v7346_v6, %v9854_v9  ;;  %v3120_v8 = vpop.f32.mrb[11].mxu0 }
 0x3bd   :  { %v3438_v16 = vadd.f32 %v9854_v9, %v3120_v8  ;;  %v4115_v8 = vld [vmem:[%s10416_s7 + $0x58] sm:$0xff] }
 0x3be   :  { %v3491_v10 = vmax.f32 %v3439_v12, 0.0  ;;  %v4113_v12 = vld [vmem:[%s10416_s7 + $0x48] sm:$0xff] }
 0x3bf   :  { %v3490_v20 = vmax.f32 %v3438_v16, 0.0  ;;  %v7349_v14 = vpop.f32.mrb[12].mxu0 }
 0x3c0   :  { %3544 = vst.msk [vmem:[#allocation2 + $0x8] sm:$0xff] %vm3542_vm3, %v3491_v10  ;;  %v3441_v24 = vadd.f32 %v7349_v14, %v9854_v9  ;;  %v3130_v18 = vpop.f32.mrb[13].mxu0 }
 0x3c1   :  { %3543 = vst.msk [vmem:[#allocation2] sm:$0xff] %vm3542_vm3, %v3490_v20  ;;  %v3440_v28 = vadd.f32 %v9854_v9, %v3130_v18 }
 0x3c2   :  { %v3493_v22 = vmax.f32 %v3441_v24, 0.0  ;;  %v9919_v24 = vpack.c.bf16 %v4110_v1, %v4108_v27 }
 0x3c3   :  { %v3492_v31 = vmax.f32 %v3440_v28, 0.0  ;;  %v7352_v26 = vpop.f32.mrb[14].mxu0  ;;  %v9924_v28 = vpack.c.bf16 %v4115_v8, %v4113_v12 }
 0x3c4   :  { %3546 = vst.msk [vmem:[#allocation2 + $0x18] sm:$0xff] %vm3542_vm3, %v3493_v22  ;;  %v3443_v33 = vadd.f32 %v7352_v26, %v9854_v9  ;;  %v3140_v30 = vpop.f32.mrb[15].mxu0  ;;  %v4112_v22 = vld [vmem:[%s10416_s7 + $0x40] sm:$0xff] }
 0x3c5   :  { %3545 = vst.msk [vmem:[#allocation2 + $0x10] sm:$0xff] %vm3542_vm3, %v3492_v31  ;;  %v3442_v35 = vadd.f32 %v9854_v9, %v3140_v30  ;;  %v4114_v31 = vld [vmem:[%s10416_s7 + $0x50] sm:$0xff]  ;;  %v4117_v30 = vld [vmem:[%s10416_s7 + $0x68] sm:$0xff] }
 0x3c6   :  { %v3495_v32 = vmax.f32 %v3443_v33, 0.0 }
 0x3c7   :  { %v3494_v37 = vmax.f32 %v3442_v35, 0.0  ;;  %v7355_v34 = vpop.f32.mrb[16].mxu0  ;;  %v3596_v43 = vld [vmem:[#allocation2 + $0x8] sm:$0xff]  ;;  %v4119_v35 = vld [vmem:[%s10416_s7 + $0x78] sm:$0xff] }
 0x3c8   :  { %3548 = vst.msk [vmem:[#allocation2 + $0x28] sm:$0xff] %vm3542_vm3, %v3495_v32  ;;  %v3445_v39 = vadd.f32 %v7355_v34, %v9854_v9  ;;  %v3150_v36 = vpop.f32.mrb[17].mxu0  ;;  %v3595_v49 = vld [vmem:[#allocation2] sm:$0xff] }
 0x3c9   :  { %3547 = vst.msk [vmem:[#allocation2 + $0x20] sm:$0xff] %vm3542_vm3, %v3494_v37  ;;  %v3444_v41 = vadd.f32 %v9854_v9, %v3150_v36 }
 0x3ca   :  { %v3497_v38 = vmax.f32 %v3445_v39, 0.0 }
 0x3cb   :  { %v3598_v19 = vld [vmem:[#allocation2 + $0x18] sm:$0xff]  ;;  %v3496_v54 = vmax.f32 %v3444_v41, 0.0  ;;  %v7358_v45 = vpop.f32.mrb[18].mxu0 }
 0x3cc   :  { %v3600_v58 = vmax.f32 %v3596_v43, %v3598_v19  ;;  %v3597_v62 = vld [vmem:[#allocation2 + $0x10] sm:$0xff]  ;;  %3550 = vst.msk [vmem:[#allocation2 + $0x38] sm:$0xff] %vm3542_vm3, %v3497_v38  ;;  %v3447_v17 = vadd.f32 %v7358_v45, %v9854_v9  ;;  %v3160_v13 = vpop.f32.mrb[19].mxu0 }
 0x3cd   :  { %v3599_v15 = vmax.f32 %v3595_v49, %v3597_v62  ;;  %3549 = vst.msk [vmem:[#allocation2 + $0x30] sm:$0xff] %vm3542_vm3, %v3496_v54  ;;  %v3446_v50 = vadd.f32 %v9854_v9, %v3160_v13  ;;  %v9943_v54 = vpack.c.bf16 %v4114_v31, %v4112_v22  ;;  %v4116_v62 = vld [vmem:[%s10416_s7 + $0x60] sm:$0xff] }
 0x3ce   :  { %3602 = vst.msk [vmem:[#allocation3 + $0x8] sm:$0xff] %vm3542_vm3, %v3600_v58  ;;  %v3499_v51 = vmax.f32 %v3447_v17, 0.0  ;;  %v9948_v58 = vpack.c.bf16 %v4119_v35, %v4117_v30  ;;  %v4118_v17 = vld [vmem:[%s10416_s7 + $0x70] sm:$0xff] }
 0x3cf   :  { %3601 = vst.msk [vmem:[#allocation3] sm:$0xff] %vm3542_vm3, %v3599_v15  ;;  %v3498_v44 = vmax.f32 %v3446_v50, 0.0  ;;  %v7361_v52 = vpop.f32.mrb[20].mxu0  ;;  %v3604_v53 = vld [vmem:[#allocation2 + $0x28] sm:$0xff] }
 0x3d0   :  { %3552 = vst.msk [vmem:[#allocation2 + $0x48] sm:$0xff] %vm3542_vm3, %v3499_v51  ;;  %v3449_v56 = vadd.f32 %v7361_v52, %v9854_v9  ;;  %v3170_v55 = vpop.f32.mrb[21].mxu0  ;;  %v3603_v59 = vld [vmem:[#allocation2 + $0x20] sm:$0xff] }
 0x3d1   :  { %3551 = vst.msk [vmem:[#allocation2 + $0x40] sm:$0xff] %vm3542_vm3, %v3498_v44  ;;  %v3448_v60 = vadd.f32 %v9854_v9, %v3170_v55 }
 0x3d2   :  { %v3501_v47 = vmax.f32 %v3449_v56, 0.0  ;;  %v9963_v56 = vpack.c.bf16 %v4118_v17, %v4116_v62 }
 0x3d3   :  { %v3606_v63 = vld [vmem:[#allocation2 + $0x38] sm:$0xff]  ;;  %v3500_v42 = vmax.f32 %v3448_v60, 0.0  ;;  %v7364_v46 = vpop.f32.mrb[22].mxu0 }
 0x3d4   :  { %v3608_v29 = vmax.f32 %v3604_v53, %v3606_v63  ;;  %v3605_v57 = vld [vmem:[#allocation2 + $0x30] sm:$0xff]  ;;  %3554 = vst.msk [vmem:[#allocation2 + $0x58] sm:$0xff] %vm3542_vm3, %v3501_v47  ;;  %v3451_v3 = vadd.f32 %v7364_v46, %v9854_v9  ;;  %v3180_v25 = vpop.f32.mrb[23].mxu0 }
 0x3d5   :  { %v3607_v11 = vmax.f32 %v3603_v59, %v3605_v57  ;;  %3553 = vst.msk [vmem:[#allocation2 + $0x50] sm:$0xff] %vm3542_vm3, %v3500_v42  ;;  %v3450_v23 = vadd.f32 %v9854_v9, %v3180_v25  ;;  %v3700_v33 = vld [vmem:[#allocation3 + $0x8] sm:$0xff] }
 0x3d6   :  { %3610 = vst.msk [vmem:[#allocation3 + $0x18] sm:$0xff] %vm3542_vm3, %v3608_v29  ;;  %v3503_v7 = vmax.f32 %v3451_v3, 0.0  ;;  %v3699_v6 = vld [vmem:[#allocation3] sm:$0xff] }
 0x3d7   :  { %3609 = vst.msk [vmem:[#allocation3 + $0x10] sm:$0xff] %vm3542_vm3, %v3607_v11  ;;  %v3502_v16 = vmax.f32 %v3450_v23, 0.0  ;;  %v7367_v10 = vpop.f32.mrb[24].mxu0  ;;  %6341 = vmatmul.mubr.msk.f32.vlgmr.msra.gmra.mrb[110].mxu1 %vm3542_vm3, %v3699_v6  ;;  %v3612_v32 = vld [vmem:[#allocation2 + $0x48] sm:$0xff] }
 0x3d8   :  { %3556 = vst.msk [vmem:[#allocation2 + $0x68] sm:$0xff] %vm3542_vm3, %v3503_v7  ;;  %v3453_v20 = vadd.f32 %v7367_v10, %v9854_v9  ;;  %v3190_v14 = vpop.f32.mrb[25].mxu0  ;;  %7500 = vmatpush1.bf16.msra.mxu1 %v9894_v0  ;;  %3901 = vmatprep.mubr.f32.mxu1 %v8250_v5  ;;  %v3611_v36 = vld [vmem:[#allocation2 + $0x40] sm:$0xff] }
 0x3d9   :  { %3555 = vst.msk [vmem:[#allocation2 + $0x60] sm:$0xff] %vm3542_vm3, %v3502_v16  ;;  %v3452_v18 = vadd.f32 %v9854_v9, %v3190_v14  ;;  %7502 = vmatprep.subr.bf16.mxu1 %v9898_v2 }
 0x3da   :  { %v3505_v26 = vmax.f32 %v3453_v20, 0.0 }
 0x3db   :  { %v3614_v37 = vld [vmem:[#allocation2 + $0x58] sm:$0xff]  ;;  %v3504_v34 = vmax.f32 %v3452_v18, 0.0  ;;  %v7370_v39 = vpop.f32.mrb[26].mxu0  ;;  %6342 = vmatmul.mubr.msk.f32.gmra.mrb[112].mxu1 %vm3542_vm3, %v3700_v33 }
 0x3dc   :  { %v3616_v41 = vmax.f32 %v3612_v32, %v3614_v37  ;;  %v3613_v38 = vld [vmem:[#allocation2 + $0x50] sm:$0xff]  ;;  %3558 = vst.msk [vmem:[#allocation2 + $0x78] sm:$0xff] %vm3542_vm3, %v3505_v26  ;;  %v3455_v43 = vadd.f32 %v7370_v39, %v9854_v9  ;;  %v3200_v19 = vpop.f32.mrb[27].mxu0  ;;  %3907 = vmatprep.mubr.f32.mxu1 %v8250_v5  ;;  %7504 = vmatpush1.bf16.msra.mxu1 %v9919_v24 }
 0x3dd   :  { %v3615_v45 = vmax.f32 %v3611_v36, %v3613_v38  ;;  %3557 = vst.msk [vmem:[#allocation2 + $0x70] sm:$0xff] %vm3542_vm3, %v3504_v34  ;;  %v3454_v49 = vadd.f32 %v9854_v9, %v3200_v19  ;;  %7506 = vmatprep.subr.bf16.mxu1 %v9924_v28  ;;  %v3702_v61 = vld [vmem:[#allocation3 + $0x18] sm:$0xff] }
 0x3de   :  { %3618 = vst.msk [vmem:[#allocation3 + $0x28] sm:$0xff] %vm3542_vm3, %v3616_v41  ;;  %v3507_v13 = vmax.f32 %v3455_v43, 0.0  ;;  %v3701_v15 = vld [vmem:[#allocation3 + $0x10] sm:$0xff] }
 0x3df   :  { %3617 = vst.msk [vmem:[#allocation3 + $0x20] sm:$0xff] %vm3542_vm3, %v3615_v45  ;;  %v3506_v50 = vmax.f32 %v3454_v49, 0.0  ;;  %v7373_v51 = vpop.f32.mrb[28].mxu0  ;;  %6343 = vmatmul.mubr.msk.f32.gmra.mrb[114].mxu1 %vm3542_vm3, %v3701_v15  ;;  %v3620_v40 = vld [vmem:[#allocation2 + $0x68] sm:$0xff] }
 0x3e0   :  { %3560 = vst.msk [vmem:[#allocation2 + $0x88] sm:$0xff] %vm3542_vm3, %v3507_v13  ;;  %v3457_v44 = vadd.f32 %v7373_v51, %v9854_v9  ;;  %v3210_v52 = vpop.f32.mrb[29].mxu0  ;;  %3913 = vmatprep.mubr.f32.mxu1 %v8250_v5  ;;  %7508 = vmatpush1.bf16.msra.mxu1 %v9943_v54  ;;  %v3619_v53 = vld [vmem:[#allocation2 + $0x60] sm:$0xff] }
 0x3e1   :  { %3559 = vst.msk [vmem:[#allocation2 + $0x80] sm:$0xff] %vm3542_vm3, %v3506_v50  ;;  %v3456_v55 = vadd.f32 %v9854_v9, %v3210_v52  ;;  %7510 = vmatprep.subr.bf16.mxu1 %v9948_v58 }
 0x3e2   :  { %v3509_v60 = vmax.f32 %v3457_v44, 0.0 }
 0x3e3   :  { %v3622_v47 = vld [vmem:[#allocation2 + $0x78] sm:$0xff]  ;;  %v3508_v48 = vmax.f32 %v3456_v55, 0.0  ;;  %v7376_v21 = vpop.f32.mrb[30].mxu0  ;;  %6344 = vmatmul.mubr.msk.f32.gmra.mrb[116].mxu1 %vm3542_vm3, %v3702_v61 }
 0x3e4   :  { %v3624_v63 = vmax.f32 %v3620_v40, %v3622_v47  ;;  %v3621_v42 = vld [vmem:[#allocation2 + $0x70] sm:$0xff]  ;;  %3562 = vst.msk [vmem:[#allocation2 + $0x98] sm:$0xff] %vm3542_vm3, %v3509_v60  ;;  %v3459_v46 = vadd.f32 %v7376_v21, %v9854_v9  ;;  %v3220_v59 = vpop.f32.mrb[31].mxu0  ;;  %3919 = vmatprep.mubr.f32.mxu1 %v8250_v5  ;;  %7512 = vmatpush1.bf16.msra.mxu1 %v9963_v56 }
 0x3e5   :  { %v3623_v29 = vmax.f32 %v3619_v53, %v3621_v42  ;;  %3561 = vst.msk [vmem:[#allocation2 + $0x90] sm:$0xff] %vm3542_vm3, %v3508_v48  ;;  %v3458_v57 = vadd.f32 %v9854_v9, %v3220_v59  ;;  %7514 = vmatprep.subr.bf16.mxu1 %v9848_v4  ;;  %v3704_v12 = vld [vmem:[#allocation3 + $0x28] sm:$0xff] }
 0x3e6   :  { %3626 = vst.msk [vmem:[#allocation3 + $0x38] sm:$0xff] %vm3542_vm3, %v3624_v63  ;;  %v3511_v3 = vmax.f32 %v3459_v46, 0.0  ;;  %v3703_v25 = vld [vmem:[#allocation3 + $0x20] sm:$0xff] }
 0x3e7   :  { %3625 = vst.msk [vmem:[#allocation3 + $0x30] sm:$0xff] %vm3542_vm3, %v3623_v29  ;;  %v3510_v11 = vmax.f32 %v3458_v57, 0.0  ;;  %v7379_v23 = vpop.f32.mrb[32].mxu0  ;;  %6345 = vmatmul.mubr.msk.f32.gmra.mrb[118].mxu1 %vm3542_vm3, %v3703_v25  ;;  %v3628_v8 = vld [vmem:[#allocation2 + $0x88] sm:$0xff] }
 0x3e8   :  { %3564 = vst.msk [vmem:[#allocation2 + $0xa8] sm:$0xff] %vm3542_vm3, %v3511_v3  ;;  %v3461_v27 = vadd.f32 %v7379_v23, %v9854_v9  ;;  %v3230_v1 = vpop.f32.mrb[33].mxu0  ;;  %3925 = vmatprep.mubr.f32.mxu1 %v8250_v5  ;;  %v3627_v14 = vld [vmem:[#allocation2 + $0x80] sm:$0xff] }
 0x3e9   :  { %3563 = vst.msk [vmem:[#allocation2 + $0xa0] sm:$0xff] %vm3542_vm3, %v3510_v11  ;;  %v3460_v7 = vadd.f32 %v9854_v9, %v3230_v1 }
 0x3ea   :  { %v3513_v6 = vmax.f32 %v3461_v27, 0.0 }
 0x3eb   :  { %v3630_v16 = vld [vmem:[#allocation2 + $0x98] sm:$0xff]  ;;  %v3512_v10 = vmax.f32 %v3460_v7, 0.0  ;;  %v7382_v20 = vpop.f32.mrb[34].mxu0  ;;  %6346 = vmatmul.mubr.msk.f32.gmra.mrb[120].mxu1 %vm3542_vm3, %v3704_v12 }
 0x3ec   :  { %v3632_v18 = vmax.f32 %v3628_v8, %v3630_v16  ;;  %v3629_v22 = vld [vmem:[#allocation2 + $0x90] sm:$0xff]  ;;  %3566 = vst.msk [vmem:[#allocation2 + $0xb8] sm:$0xff] %vm3542_vm3, %v3513_v6  ;;  %v3463_v31 = vadd.f32 %v7382_v20, %v9854_v9  ;;  %v3240_v26 = vpop.f32.mrb[35].mxu0  ;;  %3931 = vmatprep.mubr.f32.mxu1 %v8250_v5 }
 0x3ed   :  { %v3631_v33 = vmax.f32 %v3627_v14, %v3629_v22  ;;  %3565 = vst.msk [vmem:[#allocation2 + $0xb0] sm:$0xff] %vm3542_vm3, %v3512_v10  ;;  %v3462_v30 = vadd.f32 %v9854_v9, %v3240_v26  ;;  %v3706_v43 = vld [vmem:[#allocation3 + $0x38] sm:$0xff] }
 0x3ee   :  { %3634 = vst.msk [vmem:[#allocation3 + $0x48] sm:$0xff] %vm3542_vm3, %v3632_v18  ;;  %v3515_v35 = vmax.f32 %v3463_v31, 0.0  ;;  %v3705_v32 = vld [vmem:[#allocation3 + $0x30] sm:$0xff] }
 0x3ef   :  { %3633 = vst.msk [vmem:[#allocation3 + $0x40] sm:$0xff] %vm3542_vm3, %v3631_v33  ;;  %v3514_v37 = vmax.f32 %v3462_v30, 0.0  ;;  %v7385_v34 = vpop.f32.mrb[36].mxu0  ;;  %6347 = vmatmul.mubr.msk.f32.gmra.mrb[122].mxu1 %vm3542_vm3, %v3705_v32  ;;  %v3636_v19 = vld [vmem:[#allocation2 + $0xa8] sm:$0xff] }
 0x3f0   :  { %3568 = vst.msk [vmem:[#allocation2 + $0xc8] sm:$0xff] %vm3542_vm3, %v3515_v35  ;;  %v3465_v39 = vadd.f32 %v7385_v34, %v9854_v9  ;;  %v3250_v36 = vpop.f32.mrb[37].mxu0  ;;  %3937 = vmatprep.mubr.f32.mxu1 %v8250_v5  ;;  %v3635_v17 = vld [vmem:[#allocation2 + $0xa0] sm:$0xff] }
 0x3f1   :  { %3567 = vst.msk [vmem:[#allocation2 + $0xc0] sm:$0xff] %vm3542_vm3, %v3514_v37  ;;  %v3464_v41 = vadd.f32 %v9854_v9, %v3250_v36 }
 0x3f2   :  { %v3517_v38 = vmax.f32 %v3465_v39, 0.0 }
 0x3f3   :  { %v3638_v45 = vld [vmem:[#allocation2 + $0xb8] sm:$0xff]  ;;  %v3516_v49 = vmax.f32 %v3464_v41, 0.0  ;;  %v7388_v62 = vpop.f32.mrb[38].mxu0  ;;  %6348 = vmatmul.mubr.msk.f32.gmra.mrb[124].mxu1 %vm3542_vm3, %v3706_v43 }
 0x3f4   :  { %v3640_v13 = vmax.f32 %v3636_v19, %v3638_v45  ;;  %v3637_v15 = vld [vmem:[#allocation2 + $0xb0] sm:$0xff]  ;;  %3570 = vst.msk [vmem:[#allocation2 + $0xd8] sm:$0xff] %vm3542_vm3, %v3517_v38  ;;  %v3467_v50 = vadd.f32 %v7388_v62, %v9854_v9  ;;  %v3260_v51 = vpop.f32.mrb[39].mxu0  ;;  %3943 = vmatprep.mubr.f32.mxu1 %v8250_v5 }
 0x3f5   :  { %v3639_v44 = vmax.f32 %v3635_v17, %v3637_v15  ;;  %3569 = vst.msk [vmem:[#allocation2 + $0xd0] sm:$0xff] %vm3542_vm3, %v3516_v49  ;;  %v3466_v52 = vadd.f32 %v9854_v9, %v3260_v51  ;;  %v3708_v63 = vld [vmem:[#allocation3 + $0x48] sm:$0xff] }
 0x3f6   :  { %3642 = vst.msk [vmem:[#allocation3 + $0x58] sm:$0xff] %vm3542_vm3, %v3640_v13  ;;  %v3519_v55 = vmax.f32 %v3467_v50, 0.0  ;;  %v3707_v60 = vld [vmem:[#allocation3 + $0x40] sm:$0xff] }
 0x3f7   :  { %3641 = vst.msk [vmem:[#allocation3 + $0x50] sm:$0xff] %vm3542_vm3, %v3639_v44  ;;  %v3518_v61 = vmax.f32 %v3466_v52, 0.0  ;;  %v7391_v40 = vpop.f32.mrb[40].mxu0  ;;  %6349 = vmatmul.mubr.msk.f32.gmra.mrb[126].mxu1 %vm3542_vm3, %v3707_v60  ;;  %v3644_v42 = vld [vmem:[#allocation2 + $0xc8] sm:$0xff] }
 0x3f8   :  { %3572 = vst.msk [vmem:[#allocation2 + $0xe8] sm:$0xff] %vm3542_vm3, %v3519_v55  ;;  %v3469_v47 = vadd.f32 %v7391_v40, %v9854_v9  ;;  %v3270_v48 = vpop.f32.mrb[41].mxu0  ;;  %3949 = vmatprep.mubr.f32.mxu1 %v8250_v5  ;;  %v3643_v57 = vld [vmem:[#allocation2 + $0xc0] sm:$0xff] }
 0x3f9   :  { %3571 = vst.msk [vmem:[#allocation2 + $0xe0] sm:$0xff] %vm3542_vm3, %v3518_v61  ;;  %v3468_v21 = vadd.f32 %v9854_v9, %v3270_v48 }
 0x3fa   :  { %v3521_v53 = vmax.f32 %v3469_v47, 0.0 }
 0x3fb   :  { %v3646_v46 = vld [vmem:[#allocation2 + $0xd8] sm:$0xff]  ;;  %v3520_v59 = vmax.f32 %v3468_v21, 0.0  ;;  %v7394_v29 = vpop.f32.mrb[42].mxu0  ;;  %6350 = vmatmul.mubr.msk.f32.gmra.mrb[128].mxu1 %vm3542_vm3, %v3708_v63 }
 0x3fc   :  { %v3648_v3 = vmax.f32 %v3644_v42, %v3646_v46  ;;  %v3645_v25 = vld [vmem:[#allocation2 + $0xd0] sm:$0xff]  ;;  %3574 = vst.msk [vmem:[#allocation2 + $0xf8] sm:$0xff] %vm3542_vm3, %v3521_v53  ;;  %v3471_v11 = vadd.f32 %v7394_v29, %v9854_v9  ;;  %v3280_v23 = vpop.f32.mrb[43].mxu0  ;;  %3955 = vmatprep.mubr.f32.mxu1 %v8250_v5 }
 0x3fd   :  { %v3647_v27 = vmax.f32 %v3643_v57, %v3645_v25  ;;  %3573 = vst.msk [vmem:[#allocation2 + $0xf0] sm:$0xff] %vm3542_vm3, %v3520_v59  ;;  %v3470_v1 = vadd.f32 %v9854_v9, %v3280_v23  ;;  %v3710_v18 = vld [vmem:[#allocation3 + $0x58] sm:$0xff] }
 0x3fe   :  { %3650 = vst.msk [vmem:[#allocation3 + $0x68] sm:$0xff] %vm3542_vm3, %v3648_v3  ;;  %v3523_v7 = vmax.f32 %v3471_v11, 0.0  ;;  %v3709_v6 = vld [vmem:[#allocation3 + $0x50] sm:$0xff] }
 0x3ff   :  { %3649 = vst.msk [vmem:[#allocation3 + $0x60] sm:$0xff] %vm3542_vm3, %v3647_v27  ;;  %v3522_v12 = vmax.f32 %v3470_v1, 0.0  ;;  %v7397_v8 = vpop.f32.mrb[44].mxu0  ;;  %6351 = vmatmul.mubr.msk.f32.gmra.mrb[130].mxu1 %vm3542_vm3, %v3709_v6  ;;  %v3652_v22 = vld [vmem:[#allocation2 + $0xe8] sm:$0xff] }
 0x400   :  { %3576 = vst.msk [vmem:[#allocation2 + $0x108] sm:$0xff] %vm3542_vm3, %v3523_v7  ;;  %v3473_v16 = vadd.f32 %v7397_v8, %v9854_v9  ;;  %v3290_v10 = vpop.f32.mrb[45].mxu0  ;;  %3961 = vmatprep.mubr.f32.mxu1 %v8250_v5  ;;  %v3651_v30 = vld [vmem:[#allocation2 + $0xe0] sm:$0xff] }
 0x401   :  { %3575 = vst.msk [vmem:[#allocation2 + $0x100] sm:$0xff] %vm3542_vm3, %v3522_v12  ;;  %v3472_v20 = vadd.f32 %v9854_v9, %v3290_v10 }
 0x402   :  { %v3525_v14 = vmax.f32 %v3473_v16, 0.0 }
 0x403   :  { %v3654_v31 = vld [vmem:[#allocation2 + $0xf8] sm:$0xff]  ;;  %v3524_v26 = vmax.f32 %v3472_v20, 0.0  ;;  %v7400_v33 = vpop.f32.mrb[46].mxu0  ;;  %6352 = vmatmul.mubr.msk.f32.gmra.mrb[132].mxu1 %vm3542_vm3, %v3710_v18 }
 0x404   :  { %v3656_v35 = vmax.f32 %v3652_v22, %v3654_v31  ;;  %v3653_v32 = vld [vmem:[#allocation2 + $0xf0] sm:$0xff]  ;;  %3578 = vst.msk [vmem:[#allocation2 + $0x118] sm:$0xff] %vm3542_vm3, %v3525_v14  ;;  %v3475_v37 = vadd.f32 %v7400_v33, %v9854_v9  ;;  %v3300_v34 = vpop.f32.mrb[47].mxu0  ;;  %3967 = vmatprep.mubr.f32.mxu1 %v8250_v5 }
 0x405   :  { %v3655_v39 = vmax.f32 %v3651_v30, %v3653_v32  ;;  %3577 = vst.msk [vmem:[#allocation2 + $0x110] sm:$0xff] %vm3542_vm3, %v3524_v26  ;;  %v3474_v36 = vadd.f32 %v9854_v9, %v3300_v34  ;;  %v3712_v13 = vld [vmem:[#allocation3 + $0x68] sm:$0xff] }
 0x406   :  { %3658 = vst.msk [vmem:[#allocation3 + $0x78] sm:$0xff] %vm3542_vm3, %v3656_v35  ;;  %v3527_v41 = vmax.f32 %v3475_v37, 0.0  ;;  %v3711_v38 = vld [vmem:[#allocation3 + $0x60] sm:$0xff] }
 0x407   :  { %3657 = vst.msk [vmem:[#allocation3 + $0x70] sm:$0xff] %vm3542_vm3, %v3655_v39  ;;  %v3526_v43 = vmax.f32 %v3474_v36, 0.0  ;;  %v7403_v19 = vpop.f32.mrb[48].mxu0  ;;  %6353 = vmatmul.mubr.msk.f32.gmra.mrb[134].mxu1 %vm3542_vm3, %v3711_v38  ;;  %v3660_v15 = vld [vmem:[#allocation2 + $0x108] sm:$0xff] }
 0x408   :  { %3580 = vst.msk [vmem:[#allocation2 + $0x128] sm:$0xff] %vm3542_vm3, %v3527_v41  ;;  %v3477_v45 = vadd.f32 %v7403_v19, %v9854_v9  ;;  %v3310_v49 = vpop.f32.mrb[49].mxu0  ;;  %3973 = vmatprep.mubr.f32.mxu1 %v8250_v5  ;;  %v3659_v52 = vld [vmem:[#allocation2 + $0x100] sm:$0xff] }
 0x409   :  { %3579 = vst.msk [vmem:[#allocation2 + $0x120] sm:$0xff] %vm3542_vm3, %v3526_v43  ;;  %v3476_v62 = vadd.f32 %v9854_v9, %v3310_v49 }
 0x40a   :  { %v3529_v17 = vmax.f32 %v3477_v45, 0.0 }
 0x40b   :  { %v3662_v50 = vld [vmem:[#allocation2 + $0x118] sm:$0xff]  ;;  %v3528_v51 = vmax.f32 %v3476_v62, 0.0  ;;  %v7406_v44 = vpop.f32.mrb[50].mxu0  ;;  %6354 = vmatmul.mubr.msk.f32.gmra.mrb[136].mxu1 %vm3542_vm3, %v3712_v13 }
 0x40c   :  { %v3664_v55 = vmax.f32 %v3660_v15, %v3662_v50  ;;  %v3661_v60 = vld [vmem:[#allocation2 + $0x110] sm:$0xff]  ;;  %3582 = vst.msk [vmem:[#allocation2 + $0x138] sm:$0xff] %vm3542_vm3, %v3529_v17  ;;  %v3479_v61 = vadd.f32 %v7406_v44, %v9854_v9  ;;  %v3320_v40 = vpop.f32.mrb[51].mxu0  ;;  %3979 = vmatprep.mubr.f32.mxu1 %v8250_v5 }
 0x40d   :  { %v3663_v47 = vmax.f32 %v3659_v52, %v3661_v60  ;;  %3581 = vst.msk [vmem:[#allocation2 + $0x130] sm:$0xff] %vm3542_vm3, %v3528_v51  ;;  %v3478_v48 = vadd.f32 %v9854_v9, %v3320_v40  ;;  %v3714_v3 = vld [vmem:[#allocation3 + $0x78] sm:$0xff] }
 0x40e   :  { %3666 = vst.msk [vmem:[#allocation3 + $0x88] sm:$0xff] %vm3542_vm3, %v3664_v55  ;;  %v3531_v21 = vmax.f32 %v3479_v61, 0.0  ;;  %v3713_v53 = vld [vmem:[#allocation3 + $0x70] sm:$0xff] }
 0x40f   :  { %3665 = vst.msk [vmem:[#allocation3 + $0x80] sm:$0xff] %vm3542_vm3, %v3663_v47  ;;  %v3530_v63 = vmax.f32 %v3478_v48, 0.0  ;;  %v7409_v42 = vpop.f32.mrb[52].mxu0  ;;  %6355 = vmatmul.mubr.msk.f32.gmra.mrb[138].mxu1 %vm3542_vm3, %v3713_v53  ;;  %v3668_v25 = vld [vmem:[#allocation2 + $0x128] sm:$0xff] }
 0x410   :  { %3584 = vst.msk [vmem:[#allocation2 + $0x148] sm:$0xff] %vm3542_vm3, %v3531_v21  ;;  %v3481_v46 = vadd.f32 %v7409_v42, %v9854_v9  ;;  %v3330_v59 = vpop.f32.mrb[53].mxu0  ;;  %3985 = vmatprep.mubr.f32.mxu1 %v8250_v5  ;;  %v3667_v1 = vld [vmem:[#allocation2 + $0x120] sm:$0xff] }
 0x411   :  { %3583 = vst.msk [vmem:[#allocation2 + $0x140] sm:$0xff] %vm3542_vm3, %v3530_v63  ;;  %v3480_v29 = vadd.f32 %v9854_v9, %v3330_v59 }
 0x412   :  { %v3533_v57 = vmax.f32 %v3481_v46, 0.0 }
 0x413   :  { %v3670_v11 = vld [vmem:[#allocation2 + $0x138] sm:$0xff]  ;;  %v3532_v23 = vmax.f32 %v3480_v29, 0.0  ;;  %v7412_v27 = vpop.f32.mrb[54].mxu0  ;;  %6356 = vmatmul.mubr.msk.f32.gmra.mrb[140].mxu1 %vm3542_vm3, %v3714_v3 }
 0x414   :  { %v3672_v7 = vmax.f32 %v3668_v25, %v3670_v11  ;;  %v3669_v6 = vld [vmem:[#allocation2 + $0x130] sm:$0xff]  ;;  %3586 = vst.msk [vmem:[#allocation2 + $0x158] sm:$0xff] %vm3542_vm3, %v3533_v57  ;;  %v3483_v12 = vadd.f32 %v7412_v27, %v9854_v9  ;;  %v3340_v8 = vpop.f32.mrb[55].mxu0  ;;  %3991 = vmatprep.mubr.f32.mxu1 %v8250_v5 }
 0x415   :  { %v3671_v16 = vmax.f32 %v3667_v1, %v3669_v6  ;;  %3585 = vst.msk [vmem:[#allocation2 + $0x150] sm:$0xff] %vm3542_vm3, %v3532_v23  ;;  %v3482_v10 = vadd.f32 %v9854_v9, %v3340_v8  ;;  %v3716_v35 = vld [vmem:[#allocation3 + $0x88] sm:$0xff]  ;;  %v3743_v1 = vlaneseq }
 0x416   :  { %3674 = vst.msk [vmem:[#allocation3 + $0x98] sm:$0xff] %vm3542_vm3, %v3672_v7  ;;  %v3535_v20 = vmax.f32 %v3483_v12, 0.0  ;;  %v3715_v14 = vld [vmem:[#allocation3 + $0x80] sm:$0xff] }
 0x417   :  { %3673 = vst.msk [vmem:[#allocation3 + $0x90] sm:$0xff] %vm3542_vm3, %v3671_v16  ;;  %v3534_v18 = vmax.f32 %v3482_v10, 0.0  ;;  %v7415_v22 = vpop.f32.mrb[56].mxu0  ;;  %6357 = vmatmul.mubr.msk.f32.gmra.mrb[142].mxu1 %vm3542_vm3, %v3715_v14  ;;  %v3676_v32 = vld [vmem:[#allocation2 + $0x148] sm:$0xff]  ;;  %v3744_v7 = vshrl.u32 %v3743_v1, 7 }
 0x418   :  { %3588 = vst.msk [vmem:[#allocation2 + $0x168] sm:$0xff] %vm3542_vm3, %v3535_v20  ;;  %v3485_v31 = vadd.f32 %v7415_v22, %v9854_v9  ;;  %v3350_v26 = vpop.f32.mrb[57].mxu0  ;;  %3997 = vmatprep.mubr.f32.mxu1 %v8250_v5  ;;  %v3675_v36 = vld [vmem:[#allocation2 + $0x140] sm:$0xff] }
 0x419   :  { %3587 = vst.msk [vmem:[#allocation2 + $0x160] sm:$0xff] %vm3542_vm3, %v3534_v18  ;;  %v3484_v33 = vadd.f32 %v9854_v9, %v3350_v26  ;;  %v3745_v6 = vsub.s32 0, %v3744_v7  ;;  %v3741_v12 = vld [vmem:[%s10418_s8] sm:$0x3]  ;;  %v3749_v8 = vsub.s32 1, %v3744_v7  ;;  %s8251_s8 = smov 64  }
 0x41a   :  { %v3537_v30 = vmax.f32 %v3485_v31, 0.0 }
 0x41b   :  { %v3678_v37 = vld [vmem:[#allocation2 + $0x158] sm:$0xff]  ;;  %v3536_v34 = vmax.f32 %v3484_v33, 0.0  ;;  %v7418_v39 = vpop.f32.mrb[58].mxu0  ;;  %6358 = vmatmul.mubr.msk.f32.gmra.mrb[144].mxu1 %vm3542_vm3, %v3716_v35  ;;  %v10117_v16 = vrot.slane %v3741_v12, %v3745_v6  ;;  %v10119_v20 = vrot.slane %v3741_v12, %v3749_v8 }
 0x41c   :  { %v3680_v41 = vmax.f32 %v3676_v32, %v3678_v37  ;;  %v3677_v38 = vld [vmem:[#allocation2 + $0x150] sm:$0xff]  ;;  %3590 = vst.msk [vmem:[#allocation2 + $0x178] sm:$0xff] %vm3542_vm3, %v3537_v30  ;;  %v3487_v43 = vadd.f32 %v7418_v39, %v9854_v9  ;;  %v3360_v19 = vpop.f32.mrb[59].mxu0  ;;  %4003 = vmatprep.mubr.f32.mxu1 %v8250_v5 }
 0x41d   :  { %v3679_v45 = vmax.f32 %v3675_v36, %v3677_v38  ;;  %3589 = vst.msk [vmem:[#allocation2 + $0x170] sm:$0xff] %vm3542_vm3, %v3536_v34  ;;  %v3486_v49 = vadd.f32 %v9854_v9, %v3360_v19  ;;  %v3718_v55 = vld [vmem:[#allocation3 + $0x98] sm:$0xff] }
 0x41e   :  { %3682 = vst.msk [vmem:[#allocation3 + $0xa8] sm:$0xff] %vm3542_vm3, %v3680_v41  ;;  %v3539_v62 = vmax.f32 %v3487_v43, 0.0  ;;  %v3717_v17 = vld [vmem:[#allocation3 + $0x90] sm:$0xff] }
 0x41f   :  { %3681 = vst.msk [vmem:[#allocation3 + $0xa0] sm:$0xff] %vm3542_vm3, %v3679_v45  ;;  %v3538_v13 = vmax.f32 %v3486_v49, 0.0  ;;  %v7421_v15 = vpop.f32.mrb[60].mxu0  ;;  %6359 = vmatmul.mubr.msk.f32.gmra.mrb[146].mxu1 %vm3542_vm3, %v3717_v17  ;;  %v3684_v60 = vld [vmem:[#allocation2 + $0x168] sm:$0xff] }
 0x420   :  { %3592 = vst.msk [vmem:[#allocation2 + $0x188] sm:$0xff] %vm3542_vm3, %v3539_v62  ;;  %v3489_v50 = vadd.f32 %v7421_v15, %v9854_v9  ;;  %v3370_v51 = vpop.f32.mrb[61].mxu0  ;;  %4009 = vmatprep.mubr.f32.mxu1 %v8250_v5  ;;  %v3683_v47 = vld [vmem:[#allocation2 + $0x160] sm:$0xff] }
 0x421   :  { %3591 = vst.msk [vmem:[#allocation2 + $0x180] sm:$0xff] %vm3542_vm3, %v3538_v13  ;;  %v3488_v44 = vadd.f32 %v9854_v9, %v3370_v51 }
 0x422   :  { %v3541_v52 = vmax.f32 %v3489_v50, 0.0 }
 0x423   :  { %v3686_v61 = vld [vmem:[#allocation2 + $0x178] sm:$0xff]  ;;  %v3540_v40 = vmax.f32 %v3488_v44, 0.0  ;;  %6360 = vmatmul.mubr.msk.f32.gmra.mrb[148].mxu1 %vm3542_vm3, %v3718_v55 }
 0x424   :  { %v3688_v48 = vmax.f32 %v3684_v60, %v3686_v61  ;;  %v3685_v21 = vld [vmem:[#allocation2 + $0x170] sm:$0xff]  ;;  %3594 = vst.msk [vmem:[#allocation2 + $0x198] sm:$0xff] %vm3542_vm3, %v3541_v52  ;;  %4015 = vmatprep.mubr.f32.mxu1 %v8250_v5 }
 0x425   :  { %v3687_v53 = vmax.f32 %v3683_v47, %v3685_v21  ;;  %3593 = vst.msk [vmem:[#allocation2 + $0x190] sm:$0xff] %vm3542_vm3, %v3540_v40  ;;  %v3720_v63 = vld [vmem:[#allocation3 + $0xa8] sm:$0xff] }
 0x426   :  { %3690 = vst.msk [vmem:[#allocation3 + $0xb8] sm:$0xff] %vm3542_vm3, %v3688_v48  ;;  %v3719_v9 = vld [vmem:[#allocation3 + $0xa0] sm:$0xff] }
 0x427   :  { %3689 = vst.msk [vmem:[#allocation3 + $0xb0] sm:$0xff] %vm3542_vm3, %v3687_v53  ;;  %6361 = vmatmul.mubr.msk.f32.gmra.mrb[150].mxu1 %vm3542_vm3, %v3719_v9  ;;  %v3692_v42 = vld [vmem:[#allocation2 + $0x188] sm:$0xff] }
 0x428   :  { %4021 = vmatprep.mubr.f32.mxu1 %v8250_v5  ;;  %v3691_v59 = vld [vmem:[#allocation2 + $0x180] sm:$0xff] }
 0x42b   :  { %v3694_v46 = vld [vmem:[#allocation2 + $0x198] sm:$0xff]  ;;  %6362 = vmatmul.mubr.msk.f32.gmra.mrb[152].mxu1 %vm3542_vm3, %v3720_v63 }
 0x42c   :  { %v3696_v29 = vmax.f32 %v3692_v42, %v3694_v46  ;;  %v3693_v57 = vld [vmem:[#allocation2 + $0x190] sm:$0xff]  ;;  %4027 = vmatprep.mubr.f32.mxu1 %v8250_v5 }
 0x42d   :  { %v3695_v3 = vmax.f32 %v3691_v59, %v3693_v57  ;;  %v3722_v11 = vld [vmem:[#allocation3 + $0xb8] sm:$0xff] }
 0x42e   :  { %3698 = vst.msk [vmem:[#allocation3 + $0xc8] sm:$0xff] %vm3542_vm3, %v3696_v29  ;;  %v3721_v25 = vld [vmem:[#allocation3 + $0xb0] sm:$0xff] }
 0x42f   :  { %3697 = vst.msk [vmem:[#allocation3 + $0xc0] sm:$0xff] %vm3542_vm3, %v3695_v3  ;;  %6363 = vmatmul.mubr.msk.f32.gmra.mrb[154].mxu1 %vm3542_vm3, %v3721_v25 }
 0x430   :  { %4033 = vmatprep.mubr.f32.mxu1 %v8250_v5 }
 0x433   :  { %6364 = vmatmul.mubr.msk.f32.gmra.mrb[156].mxu1 %vm3542_vm3, %v3722_v11 }
 0x434   :  { %4039 = vmatprep.mubr.f32.mxu1 %v8250_v5 }
 0x435   :  { %v3724_v27 = vld [vmem:[#allocation3 + $0xc8] sm:$0xff] }
 0x436   :  { %v3723_v23 = vld [vmem:[#allocation3 + $0xc0] sm:$0xff] }
 0x437   :  { %6365 = vmatmul.mubr.msk.f32.gmra.mrb[158].mxu1 %vm3542_vm3, %v3723_v23 }
 0x438   :  { %4045 = vmatprep.mubr.f32.mxu1 %v8250_v5 }
 0x43b   :  { %6366 = vmatmul.mubr.msk.f32.gmra.mrb[160].mxu1 %vm3542_vm3, %v3724_v27 }
 0x43c   :  { %4191 = vmatprep.mubr.f32.mxu1 %v8250_v5 }
 0x43f   :  { %4192 = vmatmul.mubr.f32.vlgmr.msra.gmra.mrb[110].mxu1 %v8250_v5 }
 0x440   :  { %4197 = vmatprep.mubr.f32.mxu1 %v8250_v5  ;;  %7516 = vmatpush1.bf16.msra.mxu1 %v9894_v0 }
 0x441   :  { %7518 = vmatprep.subr.bf16.mxu1 %v9898_v2 }
 0x443   :  { %4198 = vmatmul.mubr.f32.gmra.mrb[112].mxu1 %v8250_v5 }
 0x444   :  { %7520 = vmatpush1.bf16.msra.mxu1 %v9919_v24  ;;  %4322 = vmatprep.mubr.f32.mxu1 %v8250_v5 }
 0x445   :  { %7522 = vmatprep.subr.bf16.mxu1 %v9924_v28 }
 0x448   :  { %7524 = vmatpush1.bf16.msra.mxu1 %v9943_v54 }
 0x449   :  { %7526 = vmatprep.subr.bf16.mxu1 %v9948_v58 }
 0x44c   :  { %7528 = vmatpush1.bf16.msra.mxu1 %v9963_v56 }
 0x44d   :  { %7530 = vmatprep.subr.bf16.mxu1 %v9848_v4 }
 0x512   :  { %v4193_v10 = vpop.f32.mrb[110].mxu1 }
 0x513   :  { %v7723_v14 = vadd.f32 %v4193_v10, %v10117_v16  ;;  %v4195_v18 = vpop.f32.mrb[111].mxu1 }
 0x514   :  { %v7724_v31 = vadd.f32 %v4195_v18, %v10119_v20 }
 0x515   :  { %v4208_v22 = vmul.f32 0.5, %v7723_v14 }
 0x516   :  { %v4199_v26 = vpop.f32.mrb[112].mxu1  ;;  %v4218_v62 = vmul.f32 0.5, %v7724_v31 }
 0x517   :  { %8037 = vtanh.f32 %v4208_v22  ;;  %v7725_v33 = vadd.f32 %v4199_v26, %v10117_v16  ;;  %v4201_v30 = vpop.f32.mrb[113].mxu1 }
 0x518   :  { %8039 = vtanh.f32 %v7724_v31  ;;  %v7726_v32 = vadd.f32 %v4201_v30, %v10119_v20 }
 0x519   :  { %v4209_v35 = vmul.f32 0.5, %v7725_v33 }
 0x51a   :  { %v4219_v17 = vmul.f32 0.5, %v7726_v32 }
 0x51b   :  { %8041 = vtanh.f32 %v4209_v35 }
 0x51c   :  { %8043 = vtanh.f32 %v7726_v32 }
 0x51d   :  { %8045 = vtanh.f32 %v4218_v62 }
 0x51e   :  { %8047 = vtanh.f32 %v4219_v17 }
 0x521   :  { %v8038_v37 = vpop.eup %8037 }
 0x522   :  { %v4212_v34 = vmul.f32 0.5, %v8038_v37  ;;  %v8040_v39 = vpop.eup %8039 }
 0x524   :  { %v4214_v36 = vadd.f32 0.5, %v4212_v34 }
 0x525   :  { %v8042_v41 = vpop.eup %8041 }
 0x526   :  { %v4213_v38 = vmul.f32 0.5, %v8042_v41  ;;  %v4228_v43 = vmul.f32 %v8040_v39, %v4214_v36  ;;  %v8044_v45 = vpop.eup %8043  ;;  %v4226_v13 = vmul.f32 0.0, %v4214_v36 }
 0x527   :  { %v8046_v52 = vpop.eup %8045 }
 0x528   :  { %v4215_v19 = vadd.f32 0.5, %v4213_v38  ;;  %4232 = vrot.lane.b32.xlu0 %v4228_v43, %s8251_s8  ;;  %v4222_v60 = vmul.f32 0.5, %v8046_v52  ;;  %v8048_v61 = vpop.eup %8047 }
 0x529   :  { %v4223_v40 = vmul.f32 0.5, %v8048_v61 }
 0x52a   :  { %v4229_v49 = vmul.f32 %v8044_v45, %v4215_v19  ;;  %v4227_v51 = vmul.f32 0.0, %v4215_v19  ;;  %v4224_v47 = vadd.f32 0.5, %v4222_v60 }
 0x52b   :  { %v4225_v53 = vadd.f32 0.5, %v4223_v40 }
 0x52c   :  { %4234 = vrot.lane.b32.xlu0 %v4229_v49, %s8251_s8 }
 0x59a   :  { %v4233_v15 = vpop.permute.xlu0 %4232 }
 0x59b   :  { %v4238_v50 = vadd.f32 %v4233_v15, %v4226_v13 }
 0x59d   :  { %8049 = vtanh.f32 %v4238_v50 }
 0x59e   :  { %v4235_v44 = vpop.permute.xlu0 %4234 }
 0x59f   :  { %v4239_v55 = vadd.f32 %v4235_v44, %v4227_v51 }
 0x5a1   :  { %8051 = vtanh.f32 %v4239_v55 }
 0x5a7   :  { %v8050_v48 = vpop.eup %8049 }
 0x5a8   :  { %v4242_v21 = vmul.f32 %v8050_v48, %v4224_v47 }
 0x5aa   :  { %4250 = vrot.lane.b32.xlu1 %v4242_v21, %s8251_s8 }
 0x5ab   :  { %v8052_v9 = vpop.eup %8051 }
 0x5ac   :  { %v4243_v63 = vmul.f32 %v8052_v9, %v4225_v53 }
 0x5ae   :  { %4252 = vrot.lane.b32.xlu1 %v4243_v63, %s8251_s8 }
 0x61c   :  { %v4251_v42 = vpop.permute.xlu1 %4250 }
 0x61d   :  { %6367 = vmatmul.mubr.msk.f32.vlgmr.msra.gmra.mrb[114].mxu1 %vm3542_vm3, %v4251_v42 }
 0x61e   :  { %4328 = vmatprep.mubr.f32.mxu1 %v8250_v5  ;;  %7532 = vmatpush1.bf16.msra.mxu1 %v9894_v0 }
 0x61f   :  { %7534 = vmatprep.subr.bf16.mxu1 %v9898_v2 }
 0x620   :  { %v4253_v46 = vpop.permute.xlu1 %4252 }
 0x621   :  { %6368 = vmatmul.mubr.msk.f32.gmra.mrb[116].mxu1 %vm3542_vm3, %v4253_v46 }
 0x622   :  { %7536 = vmatpush1.bf16.msra.mxu1 %v9919_v24  ;;  %4453 = vmatprep.mubr.f32.mxu1 %v8250_v5 }
 0x623   :  { %7538 = vmatprep.subr.bf16.mxu1 %v9924_v28 }
 0x626   :  { %7540 = vmatpush1.bf16.msra.mxu1 %v9943_v54 }
 0x627   :  { %7542 = vmatprep.subr.bf16.mxu1 %v9948_v58 }
 0x62a   :  { %7544 = vmatpush1.bf16.msra.mxu1 %v9963_v56 }
 0x62b   :  { %7546 = vmatprep.subr.bf16.mxu1 %v9848_v4 }
 0x6f0   :  { %v4324_v59 = vpop.f32.mrb[114].mxu1 }
 0x6f1   :  { %v7727_v29 = vadd.f32 %v4324_v59, %v10117_v16  ;;  %v4326_v57 = vpop.f32.mrb[115].mxu1 }
 0x6f2   :  { %v7728_v25 = vadd.f32 %v4326_v57, %v10119_v20 }
 0x6f3   :  { %v4339_v3 = vmul.f32 0.5, %v7727_v29 }
 0x6f4   :  { %v4330_v11 = vpop.f32.mrb[116].mxu1  ;;  %v4349_v30 = vmul.f32 0.5, %v7728_v25 }
 0x6f5   :  { %8053 = vtanh.f32 %v4339_v3  ;;  %v7729_v23 = vadd.f32 %v4330_v11, %v10117_v16  ;;  %v4332_v27 = vpop.f32.mrb[117].mxu1 }
 0x6f6   :  { %8055 = vtanh.f32 %v7728_v25  ;;  %v7730_v7 = vadd.f32 %v4332_v27, %v10119_v20 }
 0x6f7   :  { %v4340_v1 = vmul.f32 0.5, %v7729_v23 }
 0x6f8   :  { %v4350_v35 = vmul.f32 0.5, %v7730_v7 }
 0x6f9   :  { %8057 = vtanh.f32 %v4340_v1 }
 0x6fa   :  { %8059 = vtanh.f32 %v7730_v7 }
 0x6fb   :  { %8061 = vtanh.f32 %v4349_v30 }
 0x6fc   :  { %8063 = vtanh.f32 %v4350_v35 }
 0x6ff   :  { %v8054_v6 = vpop.eup %8053 }
 0x700   :  { %v4343_v12 = vmul.f32 0.5, %v8054_v6  ;;  %v8056_v8 = vpop.eup %8055 }
 0x702   :  { %v4345_v10 = vadd.f32 0.5, %v4343_v12 }
 0x703   :  { %v8058_v14 = vpop.eup %8057 }
 0x704   :  { %v4344_v18 = vmul.f32 0.5, %v8058_v14  ;;  %v4359_v22 = vmul.f32 %v8056_v8, %v4345_v10  ;;  %v8060_v26 = vpop.eup %8059  ;;  %v4357_v32 = vmul.f32 %v4345_v10, %v4238_v50 }
 0x705   :  { %v8062_v41 = vpop.eup %8061 }
 0x706   :  { %v4346_v31 = vadd.f32 0.5, %v4344_v18  ;;  %4363 = vrot.lane.b32.xlu0 %v4359_v22, %s8251_s8  ;;  %v4353_v43 = vmul.f32 0.5, %v8062_v41  ;;  %v8064_v19 = vpop.eup %8063 }
 0x707   :  { %v4354_v45 = vmul.f32 0.5, %v8064_v19 }
 0x708   :  { %v4360_v33 = vmul.f32 %v8060_v26, %v4346_v31  ;;  %v4358_v39 = vmul.f32 %v4346_v31, %v4239_v55  ;;  %v4355_v49 = vadd.f32 0.5, %v4353_v43 }
 0x709   :  { %v4356_v13 = vadd.f32 0.5, %v4354_v45 }
 0x70a   :  { %4365 = vrot.lane.b32.xlu1 %v4360_v33, %s8251_s8 }
 0x778   :  { %v4364_v37 = vpop.permute.xlu0 %4363 }
 0x779   :  { %v4369_v34 = vadd.f32 %v4364_v37, %v4357_v32 }
 0x77b   :  { %8065 = vtanh.f32 %v4369_v34 }
 0x77c   :  { %v4366_v36 = vpop.permute.xlu1 %4365 }
 0x77d   :  { %v4370_v38 = vadd.f32 %v4366_v36, %v4358_v39 }
 0x77f   :  { %8067 = vtanh.f32 %v4370_v38 }
 0x785   :  { %v8066_v62 = vpop.eup %8065 }
 0x786   :  { %v4373_v17 = vmul.f32 %v8066_v62, %v4355_v49 }
 0x788   :  { %4381 = vrot.lane.b32.xlu0 %v4373_v17, %s8251_s8 }
 0x789   :  { %v8068_v15 = vpop.eup %8067 }
 0x78a   :  { %v4374_v51 = vmul.f32 %v8068_v15, %v4356_v13 }
 0x78c   :  { %4383 = vrot.lane.b32.xlu1 %v4374_v51, %s8251_s8 }
 0x7fa   :  { %v4382_v50 = vpop.permute.xlu0 %4381 }
 0x7fb   :  { %6369 = vmatmul.mubr.msk.f32.vlgmr.msra.gmra.mrb[118].mxu1 %vm3542_vm3, %v4382_v50 }
 0x7fc   :  { %4459 = vmatprep.mubr.f32.mxu1 %v8250_v5  ;;  %7548 = vmatpush1.bf16.msra.mxu1 %v9894_v0 }
 0x7fd   :  { %7550 = vmatprep.subr.bf16.mxu1 %v9898_v2 }
 0x7fe   :  { %v4384_v44 = vpop.permute.xlu1 %4383 }
 0x7ff   :  { %6370 = vmatmul.mubr.msk.f32.gmra.mrb[120].mxu1 %vm3542_vm3, %v4384_v44 }
 0x800   :  { %7552 = vmatpush1.bf16.msra.mxu1 %v9919_v24  ;;  %4584 = vmatprep.mubr.f32.mxu1 %v8250_v5 }
 0x801   :  { %7554 = vmatprep.subr.bf16.mxu1 %v9924_v28 }
 0x804   :  { %7556 = vmatpush1.bf16.msra.mxu1 %v9943_v54 }
 0x805   :  { %7558 = vmatprep.subr.bf16.mxu1 %v9948_v58 }
 0x808   :  { %7560 = vmatpush1.bf16.msra.mxu1 %v9963_v56 }
 0x809   :  { %7562 = vmatprep.subr.bf16.mxu1 %v9848_v4 }
 0x8ce   :  { %v4455_v52 = vpop.f32.mrb[118].mxu1 }
 0x8cf   :  { %v7731_v55 = vadd.f32 %v4455_v52, %v10117_v16  ;;  %v4457_v60 = vpop.f32.mrb[119].mxu1 }
 0x8d0   :  { %v7732_v40 = vadd.f32 %v4457_v60, %v10119_v20 }
 0x8d1   :  { %v4470_v61 = vmul.f32 0.5, %v7731_v55 }
 0x8d2   :  { %v4461_v47 = vpop.f32.mrb[120].mxu1  ;;  %v4480_v27 = vmul.f32 0.5, %v7732_v40 }
 0x8d3   :  { %8069 = vtanh.f32 %v4470_v61  ;;  %v7733_v48 = vadd.f32 %v4461_v47, %v10117_v16  ;;  %v4463_v21 = vpop.f32.mrb[121].mxu1 }
 0x8d4   :  { %8071 = vtanh.f32 %v7732_v40  ;;  %v7734_v9 = vadd.f32 %v4463_v21, %v10119_v20 }
 0x8d5   :  { %v4471_v53 = vmul.f32 0.5, %v7733_v48 }
 0x8d6   :  { %v4481_v1 = vmul.f32 0.5, %v7734_v9 }
 0x8d7   :  { %8073 = vtanh.f32 %v4471_v53 }
 0x8d8   :  { %8075 = vtanh.f32 %v7734_v9 }
 0x8d9   :  { %8077 = vtanh.f32 %v4480_v27 }
 0x8da   :  { %8079 = vtanh.f32 %v4481_v1 }
 0x8dd   :  { %v8070_v63 = vpop.eup %8069 }
 0x8de   :  { %v4474_v42 = vmul.f32 0.5, %v8070_v63  ;;  %v8072_v46 = vpop.eup %8071 }
 0x8e0   :  { %v4476_v59 = vadd.f32 0.5, %v4474_v42 }
 0x8e1   :  { %v8074_v29 = vpop.eup %8073 }
 0x8e2   :  { %v4475_v57 = vmul.f32 0.5, %v8074_v29  ;;  %v4490_v3 = vmul.f32 %v8072_v46, %v4476_v59  ;;  %v8076_v11 = vpop.eup %8075  ;;  %v4488_v7 = vmul.f32 %v4476_v59, %v4369_v34 }
 0x8e3   :  { %v8078_v14 = vpop.eup %8077 }
 0x8e4   :  { %v4477_v25 = vadd.f32 0.5, %v4475_v57  ;;  %4494 = vrot.lane.b32.xlu0 %v4490_v3, %s8251_s8  ;;  %v4484_v22 = vmul.f32 0.5, %v8078_v14  ;;  %v8080_v31 = vpop.eup %8079 }
 0x8e5   :  { %v4485_v26 = vmul.f32 0.5, %v8080_v31 }
 0x8e6   :  { %v4491_v23 = vmul.f32 %v8076_v11, %v4477_v25  ;;  %v4489_v8 = vmul.f32 %v4477_v25, %v4370_v38  ;;  %v4486_v33 = vadd.f32 0.5, %v4484_v22 }
 0x8e7   :  { %v4487_v32 = vadd.f32 0.5, %v4485_v26 }
 0x8e8   :  { %4496 = vrot.lane.b32.xlu1 %v4491_v23, %s8251_s8 }
 0x956   :  { %v4495_v6 = vpop.permute.xlu0 %4494 }
 0x957   :  { %v4500_v12 = vadd.f32 %v4495_v6, %v4488_v7 }
 0x959   :  { %8081 = vtanh.f32 %v4500_v12 }
 0x95a   :  { %v4497_v10 = vpop.permute.xlu1 %4496 }
 0x95b   :  { %v4501_v18 = vadd.f32 %v4497_v10, %v4489_v8 }
 0x95d   :  { %8083 = vtanh.f32 %v4501_v18 }
 0x963   :  { %v8082_v30 = vpop.eup %8081 }
 0x964   :  { %v4504_v35 = vmul.f32 %v8082_v30, %v4486_v33 }
 0x966   :  { %4512 = vrot.lane.b32.xlu0 %v4504_v35, %s8251_s8 }
 0x967   :  { %v8084_v37 = vpop.eup %8083 }
 0x968   :  { %v4505_v39 = vmul.f32 %v8084_v37, %v4487_v32 }
 0x96a   :  { %4514 = vrot.lane.b32.xlu1 %v4505_v39, %s8251_s8 }
 0x9d8   :  { %v4513_v34 = vpop.permute.xlu0 %4512 }
 0x9d9   :  { %6371 = vmatmul.mubr.msk.f32.vlgmr.msra.gmra.mrb[122].mxu1 %vm3542_vm3, %v4513_v34 }
 0x9da   :  { %4590 = vmatprep.mubr.f32.mxu1 %v8250_v5  ;;  %7564 = vmatpush1.bf16.msra.mxu1 %v9894_v0 }
 0x9db   :  { %7566 = vmatprep.subr.bf16.mxu1 %v9898_v2 }
 0x9dc   :  { %v4515_v36 = vpop.permute.xlu1 %4514 }
 0x9dd   :  { %6372 = vmatmul.mubr.msk.f32.gmra.mrb[124].mxu1 %vm3542_vm3, %v4515_v36 }
 0x9de   :  { %7568 = vmatpush1.bf16.msra.mxu1 %v9919_v24  ;;  %4715 = vmatprep.mubr.f32.mxu1 %v8250_v5 }
 0x9df   :  { %7570 = vmatprep.subr.bf16.mxu1 %v9924_v28 }
 0x9e2   :  { %7572 = vmatpush1.bf16.msra.mxu1 %v9943_v54 }
 0x9e3   :  { %7574 = vmatprep.subr.bf16.mxu1 %v9948_v58 }
 0x9e6   :  { %7576 = vmatpush1.bf16.msra.mxu1 %v9963_v56 }
 0x9e7   :  { %7578 = vmatprep.subr.bf16.mxu1 %v9848_v4 }
 0xaac   :  { %v4586_v41 = vpop.f32.mrb[122].mxu1 }
 0xaad   :  { %v7735_v38 = vadd.f32 %v4586_v41, %v10117_v16  ;;  %v4588_v43 = vpop.f32.mrb[123].mxu1 }
 0xaae   :  { %v7736_v45 = vadd.f32 %v4588_v43, %v10119_v20 }
 0xaaf   :  { %v4601_v19 = vmul.f32 0.5, %v7735_v38 }
 0xab0   :  { %v4592_v49 = vpop.f32.mrb[124].mxu1  ;;  %v4611_v21 = vmul.f32 0.5, %v7736_v45 }
 0xab1   :  { %8085 = vtanh.f32 %v4601_v19  ;;  %v7737_v62 = vadd.f32 %v4592_v49, %v10117_v16  ;;  %v4594_v17 = vpop.f32.mrb[125].mxu1 }
 0xab2   :  { %8087 = vtanh.f32 %v7736_v45  ;;  %v7738_v15 = vadd.f32 %v4594_v17, %v10119_v20 }
 0xab3   :  { %v4602_v13 = vmul.f32 0.5, %v7737_v62 }
 0xab4   :  { %v4612_v53 = vmul.f32 0.5, %v7738_v15 }
 0xab5   :  { %8089 = vtanh.f32 %v4602_v13 }
 0xab6   :  { %8091 = vtanh.f32 %v7738_v15 }
 0xab7   :  { %8093 = vtanh.f32 %v4611_v21 }
 0xab8   :  { %8095 = vtanh.f32 %v4612_v53 }
 0xabb   :  { %v8086_v51 = vpop.eup %8085 }
 0xabc   :  { %v4605_v50 = vmul.f32 0.5, %v8086_v51  ;;  %v8088_v44 = vpop.eup %8087 }
 0xabe   :  { %v4607_v52 = vadd.f32 0.5, %v4605_v50 }
 0xabf   :  { %v8090_v55 = vpop.eup %8089 }
 0xac0   :  { %v4606_v60 = vmul.f32 0.5, %v8090_v55  ;;  %v4621_v61 = vmul.f32 %v8088_v44, %v4607_v52  ;;  %v8092_v47 = vpop.eup %8091  ;;  %v4619_v9 = vmul.f32 %v4607_v52, %v4500_v12 }
 0xac1   :  { %v8094_v29 = vpop.eup %8093 }
 0xac2   :  { %v4608_v40 = vadd.f32 0.5, %v4606_v60  ;;  %4625 = vrot.lane.b32.xlu0 %v4621_v61, %s8251_s8  ;;  %v4615_v3 = vmul.f32 0.5, %v8094_v29  ;;  %v8096_v25 = vpop.eup %8095 }
 0xac3   :  { %v4616_v11 = vmul.f32 0.5, %v8096_v25 }
 0xac4   :  { %v4622_v48 = vmul.f32 %v8092_v47, %v4608_v40  ;;  %v4620_v46 = vmul.f32 %v4608_v40, %v4501_v18  ;;  %v4617_v23 = vadd.f32 0.5, %v4615_v3 }
 0xac5   :  { %v4618_v7 = vadd.f32 0.5, %v4616_v11 }
 0xac6   :  { %4627 = vrot.lane.b32.xlu1 %v4622_v48, %s8251_s8 }
 0xb34   :  { %v4626_v63 = vpop.permute.xlu0 %4625 }
 0xb35   :  { %v4631_v42 = vadd.f32 %v4626_v63, %v4619_v9 }
 0xb37   :  { %8097 = vtanh.f32 %v4631_v42 }
 0xb38   :  { %v4628_v59 = vpop.permute.xlu1 %4627 }
 0xb39   :  { %v4632_v57 = vadd.f32 %v4628_v59, %v4620_v46 }
 0xb3b   :  { %8099 = vtanh.f32 %v4632_v57 }
 0xb41   :  { %v8098_v27 = vpop.eup %8097 }
 0xb42   :  { %v4635_v1 = vmul.f32 %v8098_v27, %v4617_v23 }
 0xb44   :  { %4643 = vrot.lane.b32.xlu0 %v4635_v1, %s8251_s8 }
 0xb45   :  { %v8100_v6 = vpop.eup %8099 }
 0xb46   :  { %v4636_v8 = vmul.f32 %v8100_v6, %v4618_v7 }
 0xb48   :  { %4645 = vrot.lane.b32.xlu1 %v4636_v8, %s8251_s8 }
 0xbb6   :  { %v4644_v12 = vpop.permute.xlu0 %4643 }
 0xbb7   :  { %6373 = vmatmul.mubr.msk.f32.vlgmr.msra.gmra.mrb[126].mxu1 %vm3542_vm3, %v4644_v12 }
 0xbb8   :  { %4721 = vmatprep.mubr.f32.mxu1 %v8250_v5  ;;  %7580 = vmatpush1.bf16.msra.mxu1 %v9894_v0 }
 0xbb9   :  { %7582 = vmatprep.subr.bf16.mxu1 %v9898_v2 }
 0xbba   :  { %v4646_v10 = vpop.permute.xlu1 %4645 }
 0xbbb   :  { %6374 = vmatmul.mubr.msk.f32.gmra.mrb[128].mxu1 %vm3542_vm3, %v4646_v10 }
 0xbbc   :  { %7584 = vmatpush1.bf16.msra.mxu1 %v9919_v24  ;;  %4846 = vmatprep.mubr.f32.mxu1 %v8250_v5 }
 0xbbd   :  { %7586 = vmatprep.subr.bf16.mxu1 %v9924_v28 }
 0xbc0   :  { %7588 = vmatpush1.bf16.msra.mxu1 %v9943_v54 }
 0xbc1   :  { %7590 = vmatprep.subr.bf16.mxu1 %v9948_v58 }
 0xbc4   :  { %7592 = vmatpush1.bf16.msra.mxu1 %v9963_v56 }
 0xbc5   :  { %7594 = vmatprep.subr.bf16.mxu1 %v9848_v4 }
 0xc8a   :  { %v4717_v14 = vpop.f32.mrb[126].mxu1 }
 0xc8b   :  { %v7739_v18 = vadd.f32 %v4717_v14, %v10117_v16  ;;  %v4719_v22 = vpop.f32.mrb[127].mxu1 }
 0xc8c   :  { %v7740_v26 = vadd.f32 %v4719_v22, %v10119_v20 }
 0xc8d   :  { %v4732_v31 = vmul.f32 0.5, %v7739_v18 }
 0xc8e   :  { %v4723_v33 = vpop.f32.mrb[128].mxu1  ;;  %v4742_v17 = vmul.f32 0.5, %v7740_v26 }
 0xc8f   :  { %8101 = vtanh.f32 %v4732_v31  ;;  %v7741_v30 = vadd.f32 %v4723_v33, %v10117_v16  ;;  %v4725_v35 = vpop.f32.mrb[129].mxu1 }
 0xc90   :  { %8103 = vtanh.f32 %v7740_v26  ;;  %v7742_v37 = vadd.f32 %v4725_v35, %v10119_v20 }
 0xc91   :  { %v4733_v32 = vmul.f32 0.5, %v7741_v30 }
 0xc92   :  { %v4743_v13 = vmul.f32 0.5, %v7742_v37 }
 0xc93   :  { %8105 = vtanh.f32 %v4733_v32 }
 0xc94   :  { %8107 = vtanh.f32 %v7742_v37 }
 0xc95   :  { %8109 = vtanh.f32 %v4742_v17 }
 0xc96   :  { %8111 = vtanh.f32 %v4743_v13 }
 0xc99   :  { %v8102_v39 = vpop.eup %8101 }
 0xc9a   :  { %v4736_v34 = vmul.f32 0.5, %v8102_v39  ;;  %v8104_v36 = vpop.eup %8103 }
 0xc9c   :  { %v4738_v41 = vadd.f32 0.5, %v4736_v34 }
 0xc9d   :  { %v8106_v38 = vpop.eup %8105 }
 0xc9e   :  { %v4737_v43 = vmul.f32 0.5, %v8106_v38  ;;  %v4752_v19 = vmul.f32 %v8104_v36, %v4738_v41  ;;  %v8108_v49 = vpop.eup %8107  ;;  %v4750_v15 = vmul.f32 %v4738_v41, %v4631_v42 }
 0xc9f   :  { %v8110_v55 = vpop.eup %8109 }
 0xca0   :  { %v4739_v45 = vadd.f32 0.5, %v4737_v43  ;;  %4756 = vrot.lane.b32.xlu0 %v4752_v19, %s8251_s8  ;;  %v4746_v61 = vmul.f32 0.5, %v8110_v55  ;;  %v8112_v40 = vpop.eup %8111 }
 0xca1   :  { %v4747_v47 = vmul.f32 0.5, %v8112_v40 }
 0xca2   :  { %v4753_v62 = vmul.f32 %v8108_v49, %v4739_v45  ;;  %v4751_v44 = vmul.f32 %v4739_v45, %v4632_v57  ;;  %v4748_v48 = vadd.f32 0.5, %v4746_v61 }
 0xca3   :  { %v4749_v9 = vadd.f32 0.5, %v4747_v47 }
 0xca4   :  { %4758 = vrot.lane.b32.xlu1 %v4753_v62, %s8251_s8 }
 0xd12   :  { %v4757_v51 = vpop.permute.xlu0 %4756 }
 0xd13   :  { %v4762_v50 = vadd.f32 %v4757_v51, %v4750_v15 }
 0xd15   :  { %8113 = vtanh.f32 %v4762_v50 }
 0xd16   :  { %v4759_v52 = vpop.permute.xlu1 %4758 }
 0xd17   :  { %v4763_v60 = vadd.f32 %v4759_v52, %v4751_v44 }
 0xd19   :  { %8115 = vtanh.f32 %v4763_v60 }
 0xd1f   :  { %v8114_v21 = vpop.eup %8113 }
 0xd20   :  { %v4766_v53 = vmul.f32 %v8114_v21, %v4748_v48 }
 0xd22   :  { %4774 = vrot.lane.b32.xlu0 %v4766_v53, %s8251_s8 }
 0xd23   :  { %v8116_v63 = vpop.eup %8115 }
 0xd24   :  { %v4767_v46 = vmul.f32 %v8116_v63, %v4749_v9 }
 0xd26   :  { %4776 = vrot.lane.b32.xlu1 %v4767_v46, %s8251_s8 }
 0xd94   :  { %v4775_v42 = vpop.permute.xlu0 %4774 }
 0xd95   :  { %6375 = vmatmul.mubr.msk.f32.vlgmr.msra.gmra.mrb[130].mxu1 %vm3542_vm3, %v4775_v42 }
 0xd96   :  { %4852 = vmatprep.mubr.f32.mxu1 %v8250_v5  ;;  %7596 = vmatpush1.bf16.msra.mxu1 %v9894_v0 }
 0xd97   :  { %7598 = vmatprep.subr.bf16.mxu1 %v9898_v2 }
 0xd98   :  { %v4777_v59 = vpop.permute.xlu1 %4776 }
 0xd99   :  { %6376 = vmatmul.mubr.msk.f32.gmra.mrb[132].mxu1 %vm3542_vm3, %v4777_v59 }
 0xd9a   :  { %7600 = vmatpush1.bf16.msra.mxu1 %v9919_v24  ;;  %4977 = vmatprep.mubr.f32.mxu1 %v8250_v5 }
 0xd9b   :  { %7602 = vmatprep.subr.bf16.mxu1 %v9924_v28 }
 0xd9e   :  { %7604 = vmatpush1.bf16.msra.mxu1 %v9943_v54 }
 0xd9f   :  { %7606 = vmatprep.subr.bf16.mxu1 %v9948_v58 }
 0xda2   :  { %7608 = vmatpush1.bf16.msra.mxu1 %v9963_v56 }
 0xda3   :  { %7610 = vmatprep.subr.bf16.mxu1 %v9848_v4 }
 0xe68   :  { %v4848_v29 = vpop.f32.mrb[130].mxu1 }
 0xe69   :  { %v7743_v57 = vadd.f32 %v4848_v29, %v10117_v16  ;;  %v4850_v3 = vpop.f32.mrb[131].mxu1 }
 0xe6a   :  { %v7744_v11 = vadd.f32 %v4850_v3, %v10119_v20 }
 0xe6b   :  { %v4863_v25 = vmul.f32 0.5, %v7743_v57 }
 0xe6c   :  { %v4854_v23 = vpop.f32.mrb[132].mxu1  ;;  %v4873_v35 = vmul.f32 0.5, %v7744_v11 }
 0xe6d   :  { %8117 = vtanh.f32 %v4863_v25  ;;  %v7745_v27 = vadd.f32 %v4854_v23, %v10117_v16  ;;  %v4856_v1 = vpop.f32.mrb[133].mxu1 }
 0xe6e   :  { %8119 = vtanh.f32 %v7744_v11  ;;  %v7746_v6 = vadd.f32 %v4856_v1, %v10119_v20 }
 0xe6f   :  { %v4864_v7 = vmul.f32 0.5, %v7745_v27 }
 0xe70   :  { %v4874_v32 = vmul.f32 0.5, %v7746_v6 }
 0xe71   :  { %8121 = vtanh.f32 %v4864_v7 }
 0xe72   :  { %8123 = vtanh.f32 %v7746_v6 }
 0xe73   :  { %8125 = vtanh.f32 %v4873_v35 }
 0xe74   :  { %8127 = vtanh.f32 %v4874_v32 }
 0xe77   :  { %v8118_v8 = vpop.eup %8117 }
 0xe78   :  { %v4867_v12 = vmul.f32 0.5, %v8118_v8  ;;  %v8120_v10 = vpop.eup %8119 }
 0xe7a   :  { %v4869_v14 = vadd.f32 0.5, %v4867_v12 }
 0xe7b   :  { %v8122_v18 = vpop.eup %8121 }
 0xe7c   :  { %v4868_v22 = vmul.f32 0.5, %v8122_v18  ;;  %v4883_v31 = vmul.f32 %v8120_v10, %v4869_v14  ;;  %v8124_v33 = vpop.eup %8123  ;;  %v4881_v37 = vmul.f32 %v4869_v14, %v4762_v50 }
 0xe7d   :  { %v8126_v38 = vpop.eup %8125 }
 0xe7e   :  { %v4870_v26 = vadd.f32 0.5, %v4868_v22  ;;  %4887 = vrot.lane.b32.xlu0 %v4883_v31, %s8251_s8  ;;  %v4877_v19 = vmul.f32 0.5, %v8126_v38  ;;  %v8128_v45 = vpop.eup %8127 }
 0xe7f   :  { %v4878_v49 = vmul.f32 0.5, %v8128_v45 }
 0xe80   :  { %v4884_v30 = vmul.f32 %v8124_v33, %v4870_v26  ;;  %v4882_v36 = vmul.f32 %v4870_v26, %v4763_v60  ;;  %v4879_v62 = vadd.f32 0.5, %v4877_v19 }
 0xe81   :  { %v4880_v15 = vadd.f32 0.5, %v4878_v49 }
 0xe82   :  { %4889 = vrot.lane.b32.xlu1 %v4884_v30, %s8251_s8 }
 0xef0   :  { %v4888_v39 = vpop.permute.xlu0 %4887 }
 0xef1   :  { %v4893_v34 = vadd.f32 %v4888_v39, %v4881_v37 }
 0xef3   :  { %8129 = vtanh.f32 %v4893_v34 }
 0xef4   :  { %v4890_v41 = vpop.permute.xlu1 %4889 }
 0xef5   :  { %v4894_v43 = vadd.f32 %v4890_v41, %v4882_v36 }
 0xef7   :  { %8131 = vtanh.f32 %v4894_v43 }
 0xefd   :  { %v8130_v17 = vpop.eup %8129 }
 0xefe   :  { %v4897_v13 = vmul.f32 %v8130_v17, %v4879_v62 }
 0xf00   :  { %4905 = vrot.lane.b32.xlu0 %v4897_v13, %s8251_s8 }
 0xf01   :  { %v8132_v51 = vpop.eup %8131 }
 0xf02   :  { %v4898_v44 = vmul.f32 %v8132_v51, %v4880_v15 }
 0xf04   :  { %4907 = vrot.lane.b32.xlu1 %v4898_v44, %s8251_s8 }
 0xf72   :  { %v4906_v50 = vpop.permute.xlu0 %4905 }
 0xf73   :  { %6377 = vmatmul.mubr.msk.f32.vlgmr.msra.gmra.mrb[134].mxu1 %vm3542_vm3, %v4906_v50 }
 0xf74   :  { %4983 = vmatprep.mubr.f32.mxu1 %v8250_v5  ;;  %7612 = vmatpush1.bf16.msra.mxu1 %v9894_v0 }
 0xf75   :  { %7614 = vmatprep.subr.bf16.mxu1 %v9898_v2 }
 0xf76   :  { %v4908_v52 = vpop.permute.xlu1 %4907 }
 0xf77   :  { %6378 = vmatmul.mubr.msk.f32.gmra.mrb[136].mxu1 %vm3542_vm3, %v4908_v52 }
 0xf78   :  { %7616 = vmatpush1.bf16.msra.mxu1 %v9919_v24  ;;  %5108 = vmatprep.mubr.f32.mxu1 %v8250_v5 }
 0xf79   :  { %7618 = vmatprep.subr.bf16.mxu1 %v9924_v28 }
 0xf7c   :  { %7620 = vmatpush1.bf16.msra.mxu1 %v9943_v54 }
 0xf7d   :  { %7622 = vmatprep.subr.bf16.mxu1 %v9948_v58 }
 0xf80   :  { %7624 = vmatpush1.bf16.msra.mxu1 %v9963_v56 }
 0xf81   :  { %7626 = vmatprep.subr.bf16.mxu1 %v9848_v4 }
0x1046   :  { %v4979_v55 = vpop.f32.mrb[134].mxu1 }
0x1047   :  { %v7747_v60 = vadd.f32 %v4979_v55, %v10117_v16  ;;  %v4981_v61 = vpop.f32.mrb[135].mxu1 }
0x1048   :  { %v7748_v47 = vadd.f32 %v4981_v61, %v10119_v20 }
0x1049   :  { %v4994_v40 = vmul.f32 0.5, %v7747_v60 }
0x104a   :  { %v4985_v48 = vpop.f32.mrb[136].mxu1  ;;  %v5004_v1 = vmul.f32 0.5, %v7748_v47 }
0x104b   :  { %8133 = vtanh.f32 %v4994_v40  ;;  %v7749_v21 = vadd.f32 %v4985_v48, %v10117_v16  ;;  %v4987_v53 = vpop.f32.mrb[137].mxu1 }
0x104c   :  { %8135 = vtanh.f32 %v7748_v47  ;;  %v7750_v63 = vadd.f32 %v4987_v53, %v10119_v20 }
0x104d   :  { %v4995_v9 = vmul.f32 0.5, %v7749_v21 }
0x104e   :  { %v5005_v7 = vmul.f32 0.5, %v7750_v63 }
0x104f   :  { %8137 = vtanh.f32 %v4995_v9 }
0x1050   :  { %8139 = vtanh.f32 %v7750_v63 }
0x1051   :  { %8141 = vtanh.f32 %v5004_v1 }
0x1052   :  { %8143 = vtanh.f32 %v5005_v7 }
0x1055   :  { %v8134_v46 = vpop.eup %8133 }
0x1056   :  { %v4998_v42 = vmul.f32 0.5, %v8134_v46  ;;  %v8136_v59 = vpop.eup %8135 }
0x1058   :  { %v5000_v29 = vadd.f32 0.5, %v4998_v42 }
0x1059   :  { %v8138_v57 = vpop.eup %8137 }
0x105a   :  { %v4999_v3 = vmul.f32 0.5, %v8138_v57  ;;  %v5014_v25 = vmul.f32 %v8136_v59, %v5000_v29  ;;  %v8140_v23 = vpop.eup %8139  ;;  %v5012_v6 = vmul.f32 %v5000_v29, %v4893_v34 }
0x105b   :  { %v8142_v18 = vpop.eup %8141 }
0x105c   :  { %v5001_v11 = vadd.f32 0.5, %v4999_v3  ;;  %5018 = vrot.lane.b32.xlu0 %v5014_v25, %s8251_s8  ;;  %v5008_v31 = vmul.f32 0.5, %v8142_v18  ;;  %v8144_v26 = vpop.eup %8143 }
0x105d   :  { %v5009_v33 = vmul.f32 0.5, %v8144_v26 }
0x105e   :  { %v5015_v27 = vmul.f32 %v8140_v23, %v5001_v11  ;;  %v5013_v10 = vmul.f32 %v5001_v11, %v4894_v43  ;;  %v5010_v30 = vadd.f32 0.5, %v5008_v31 }
0x105f   :  { %v5011_v37 = vadd.f32 0.5, %v5009_v33 }
0x1060   :  { %5020 = vrot.lane.b32.xlu1 %v5015_v27, %s8251_s8 }
0x10ce   :  { %v5019_v8 = vpop.permute.xlu0 %5018 }
0x10cf   :  { %v5024_v12 = vadd.f32 %v5019_v8, %v5012_v6 }
0x10d1   :  { %8145 = vtanh.f32 %v5024_v12 }
0x10d2   :  { %v5021_v14 = vpop.permute.xlu1 %5020 }
0x10d3   :  { %v5025_v22 = vadd.f32 %v5021_v14, %v5013_v10 }
0x10d5   :  { %8147 = vtanh.f32 %v5025_v22 }
0x10db   :  { %v8146_v35 = vpop.eup %8145 }
0x10dc   :  { %v5028_v32 = vmul.f32 %v8146_v35, %v5010_v30 }
0x10de   :  { %5036 = vrot.lane.b32.xlu0 %v5028_v32, %s8251_s8 }
0x10df   :  { %v8148_v39 = vpop.eup %8147 }
0x10e0   :  { %v5029_v36 = vmul.f32 %v8148_v39, %v5011_v37 }
0x10e2   :  { %5038 = vrot.lane.b32.xlu1 %v5029_v36, %s8251_s8 }
0x1150   :  { %v5037_v34 = vpop.permute.xlu0 %5036 }
0x1151   :  { %6379 = vmatmul.mubr.msk.f32.vlgmr.msra.gmra.mrb[138].mxu1 %vm3542_vm3, %v5037_v34 }
0x1152   :  { %5114 = vmatprep.mubr.f32.mxu1 %v8250_v5  ;;  %7628 = vmatpush1.bf16.msra.mxu1 %v9894_v0 }
0x1153   :  { %7630 = vmatprep.subr.bf16.mxu1 %v9898_v2 }
0x1154   :  { %v5039_v41 = vpop.permute.xlu1 %5038 }
0x1155   :  { %6380 = vmatmul.mubr.msk.f32.gmra.mrb[140].mxu1 %vm3542_vm3, %v5039_v41 }
0x1156   :  { %7632 = vmatpush1.bf16.msra.mxu1 %v9919_v24  ;;  %5239 = vmatprep.mubr.f32.mxu1 %v8250_v5 }
0x1157   :  { %7634 = vmatprep.subr.bf16.mxu1 %v9924_v28 }
0x115a   :  { %7636 = vmatpush1.bf16.msra.mxu1 %v9943_v54 }
0x115b   :  { %7638 = vmatprep.subr.bf16.mxu1 %v9948_v58 }
0x115e   :  { %7640 = vmatpush1.bf16.msra.mxu1 %v9963_v56 }
0x115f   :  { %7642 = vmatprep.subr.bf16.mxu1 %v9848_v4 }
0x1224   :  { %v5110_v38 = vpop.f32.mrb[138].mxu1 }
0x1225   :  { %v7751_v43 = vadd.f32 %v5110_v38, %v10117_v16  ;;  %v5112_v19 = vpop.f32.mrb[139].mxu1 }
0x1226   :  { %v7752_v49 = vadd.f32 %v5112_v19, %v10119_v20 }
0x1227   :  { %v5125_v45 = vmul.f32 0.5, %v7751_v43 }
0x1228   :  { %v5116_v62 = vpop.f32.mrb[140].mxu1  ;;  %v5135_v53 = vmul.f32 0.5, %v7752_v49 }
0x1229   :  { %8149 = vtanh.f32 %v5125_v45  ;;  %v7753_v17 = vadd.f32 %v5116_v62, %v10117_v16  ;;  %v5118_v13 = vpop.f32.mrb[141].mxu1 }
0x122a   :  { %8151 = vtanh.f32 %v7752_v49  ;;  %v7754_v51 = vadd.f32 %v5118_v13, %v10119_v20 }
0x122b   :  { %v5126_v15 = vmul.f32 0.5, %v7753_v17 }
0x122c   :  { %v5136_v9 = vmul.f32 0.5, %v7754_v51 }
0x122d   :  { %8153 = vtanh.f32 %v5126_v15 }
0x122e   :  { %8155 = vtanh.f32 %v7754_v51 }
0x122f   :  { %8157 = vtanh.f32 %v5135_v53 }
0x1230   :  { %8159 = vtanh.f32 %v5136_v9 }
0x1233   :  { %v8150_v44 = vpop.eup %8149 }
0x1234   :  { %v5129_v50 = vmul.f32 0.5, %v8150_v44  ;;  %v8152_v52 = vpop.eup %8151 }
0x1236   :  { %v5131_v55 = vadd.f32 0.5, %v5129_v50 }
0x1237   :  { %v8154_v60 = vpop.eup %8153 }
0x1238   :  { %v5130_v61 = vmul.f32 0.5, %v8154_v60  ;;  %v5145_v40 = vmul.f32 %v8152_v52, %v5131_v55  ;;  %v8156_v48 = vpop.eup %8155  ;;  %v5143_v63 = vmul.f32 %v5131_v55, %v5024_v12 }
0x1239   :  { %v8158_v57 = vpop.eup %8157 }
0x123a   :  { %v5132_v47 = vadd.f32 0.5, %v5130_v61  ;;  %5149 = vrot.lane.b32.xlu0 %v5145_v40, %s8251_s8  ;;  %v5139_v25 = vmul.f32 0.5, %v8158_v57  ;;  %v8160_v11 = vpop.eup %8159 }
0x123b   :  { %v5140_v23 = vmul.f32 0.5, %v8160_v11 }
0x123c   :  { %v5146_v21 = vmul.f32 %v8156_v48, %v5132_v47  ;;  %v5144_v59 = vmul.f32 %v5132_v47, %v5025_v22  ;;  %v5141_v27 = vadd.f32 0.5, %v5139_v25 }
0x123d   :  { %v5142_v6 = vadd.f32 0.5, %v5140_v23 }
0x123e   :  { %5151 = vrot.lane.b32.xlu1 %v5146_v21, %s8251_s8 }
0x12ac   :  { %v5150_v46 = vpop.permute.xlu0 %5149 }
0x12ad   :  { %v5155_v42 = vadd.f32 %v5150_v46, %v5143_v63 }
0x12af   :  { %8161 = vtanh.f32 %v5155_v42 }
0x12b0   :  { %v5152_v29 = vpop.permute.xlu1 %5151 }
0x12b1   :  { %v5156_v3 = vadd.f32 %v5152_v29, %v5144_v59 }
0x12b3   :  { %8163 = vtanh.f32 %v5156_v3 }
0x12b9   :  { %v8162_v1 = vpop.eup %8161 }
0x12ba   :  { %v5159_v7 = vmul.f32 %v8162_v1, %v5141_v27 }
0x12bc   :  { %5167 = vrot.lane.b32.xlu0 %v5159_v7, %s8251_s8 }
0x12bd   :  { %v8164_v8 = vpop.eup %8163 }
0x12be   :  { %v5160_v10 = vmul.f32 %v8164_v8, %v5142_v6 }
0x12c0   :  { %5169 = vrot.lane.b32.xlu1 %v5160_v10, %s8251_s8 }
0x132e   :  { %v5168_v12 = vpop.permute.xlu0 %5167 }
0x132f   :  { %6381 = vmatmul.mubr.msk.f32.vlgmr.msra.gmra.mrb[142].mxu1 %vm3542_vm3, %v5168_v12 }
0x1330   :  { %5245 = vmatprep.mubr.f32.mxu1 %v8250_v5  ;;  %7644 = vmatpush1.bf16.msra.mxu1 %v9894_v0 }
0x1331   :  { %7646 = vmatprep.subr.bf16.mxu1 %v9898_v2 }
0x1332   :  { %v5170_v14 = vpop.permute.xlu1 %5169 }
0x1333   :  { %6382 = vmatmul.mubr.msk.f32.gmra.mrb[144].mxu1 %vm3542_vm3, %v5170_v14 }
0x1334   :  { %7648 = vmatpush1.bf16.msra.mxu1 %v9919_v24  ;;  %5370 = vmatprep.mubr.f32.mxu1 %v8250_v5 }
0x1335   :  { %7650 = vmatprep.subr.bf16.mxu1 %v9924_v28 }
0x1338   :  { %7652 = vmatpush1.bf16.msra.mxu1 %v9943_v54 }
0x1339   :  { %7654 = vmatprep.subr.bf16.mxu1 %v9948_v58 }
0x133c   :  { %7656 = vmatpush1.bf16.msra.mxu1 %v9963_v56 }
0x133d   :  { %7658 = vmatprep.subr.bf16.mxu1 %v9848_v4 }
0x1402   :  { %v5241_v18 = vpop.f32.mrb[142].mxu1 }
0x1403   :  { %v7755_v22 = vadd.f32 %v5241_v18, %v10117_v16  ;;  %v5243_v31 = vpop.f32.mrb[143].mxu1 }
0x1404   :  { %v7756_v33 = vadd.f32 %v5243_v31, %v10119_v20 }
0x1405   :  { %v5256_v26 = vmul.f32 0.5, %v7755_v22 }
0x1406   :  { %v5247_v30 = vpop.f32.mrb[144].mxu1  ;;  %v5266_v13 = vmul.f32 0.5, %v7756_v33 }
0x1407   :  { %8165 = vtanh.f32 %v5256_v26  ;;  %v7757_v35 = vadd.f32 %v5247_v30, %v10117_v16  ;;  %v5249_v32 = vpop.f32.mrb[145].mxu1 }
0x1408   :  { %8167 = vtanh.f32 %v7756_v33  ;;  %v7758_v39 = vadd.f32 %v5249_v32, %v10119_v20 }
0x1409   :  { %v5257_v37 = vmul.f32 0.5, %v7757_v35 }
0x140a   :  { %v5267_v15 = vmul.f32 0.5, %v7758_v39 }
0x140b   :  { %8169 = vtanh.f32 %v5257_v37 }
0x140c   :  { %8171 = vtanh.f32 %v7758_v39 }
0x140d   :  { %8173 = vtanh.f32 %v5266_v13 }
0x140e   :  { %8175 = vtanh.f32 %v5267_v15 }
0x1411   :  { %v8166_v36 = vpop.eup %8165 }
0x1412   :  { %v5260_v34 = vmul.f32 0.5, %v8166_v36  ;;  %v8168_v41 = vpop.eup %8167 }
0x1414   :  { %v5262_v38 = vadd.f32 0.5, %v5260_v34 }
0x1415   :  { %v8170_v43 = vpop.eup %8169 }
0x1416   :  { %v5261_v19 = vmul.f32 0.5, %v8170_v43  ;;  %v5276_v45 = vmul.f32 %v8168_v41, %v5262_v38  ;;  %v8172_v62 = vpop.eup %8171  ;;  %v5274_v51 = vmul.f32 %v5262_v38, %v5155_v42 }
0x1417   :  { %v8174_v60 = vpop.eup %8173 }
0x1418   :  { %v5263_v49 = vadd.f32 0.5, %v5261_v19  ;;  %5280 = vrot.lane.b32.xlu0 %v5276_v45, %s8251_s8  ;;  %v5270_v40 = vmul.f32 0.5, %v8174_v60  ;;  %v8176_v47 = vpop.eup %8175 }
0x1419   :  { %v5271_v48 = vmul.f32 0.5, %v8176_v47 }
0x141a   :  { %v5277_v17 = vmul.f32 %v8172_v62, %v5263_v49  ;;  %v5275_v52 = vmul.f32 %v5263_v49, %v5156_v3  ;;  %v5272_v21 = vadd.f32 0.5, %v5270_v40 }
0x141b   :  { %v5273_v63 = vadd.f32 0.5, %v5271_v48 }
0x141c   :  { %5282 = vrot.lane.b32.xlu1 %v5277_v17, %s8251_s8 }
0x148a   :  { %v5281_v44 = vpop.permute.xlu0 %5280 }
0x148b   :  { %v5286_v50 = vadd.f32 %v5281_v44, %v5274_v51 }
0x148d   :  { %8177 = vtanh.f32 %v5286_v50 }
0x148e   :  { %v5283_v55 = vpop.permute.xlu1 %5282 }
0x148f   :  { %v5287_v61 = vadd.f32 %v5283_v55, %v5275_v52 }
0x1491   :  { %8179 = vtanh.f32 %v5287_v61 }
0x1497   :  { %v8178_v53 = vpop.eup %8177 }
0x1498   :  { %v5290_v9 = vmul.f32 %v8178_v53, %v5272_v21 }
0x149a   :  { %5298 = vrot.lane.b32.xlu0 %v5290_v9, %s8251_s8 }
0x149b   :  { %v8180_v46 = vpop.eup %8179 }
0x149c   :  { %v5291_v59 = vmul.f32 %v8180_v46, %v5273_v63 }
0x149e   :  { %5300 = vrot.lane.b32.xlu1 %v5291_v59, %s8251_s8 }
0x150c   :  { %v5299_v42 = vpop.permute.xlu0 %5298 }
0x150d   :  { %6383 = vmatmul.mubr.msk.f32.vlgmr.msra.gmra.mrb[146].mxu1 %vm3542_vm3, %v5299_v42 }
0x150e   :  { %5376 = vmatprep.mubr.f32.mxu1 %v8250_v5  ;;  %7660 = vmatpush1.bf16.msra.mxu1 %v9894_v0 }
0x150f   :  { %7662 = vmatprep.subr.bf16.mxu1 %v9898_v2 }
0x1510   :  { %v5301_v29 = vpop.permute.xlu1 %5300 }
0x1511   :  { %6384 = vmatmul.mubr.msk.f32.gmra.mrb[148].mxu1 %vm3542_vm3, %v5301_v29 }
0x1512   :  { %7664 = vmatpush1.bf16.msra.mxu1 %v9919_v24  ;;  %5501 = vmatprep.mubr.f32.mxu1 %v8250_v5 }
0x1513   :  { %7666 = vmatprep.subr.bf16.mxu1 %v9924_v28 }
0x1516   :  { %7668 = vmatpush1.bf16.msra.mxu1 %v9943_v54 }
0x1517   :  { %7670 = vmatprep.subr.bf16.mxu1 %v9948_v58 }
0x151a   :  { %7672 = vmatpush1.bf16.msra.mxu1 %v9963_v56 }
0x151b   :  { %7674 = vmatprep.subr.bf16.mxu1 %v9848_v4 }
0x15e0   :  { %v5372_v57 = vpop.f32.mrb[146].mxu1 }
0x15e1   :  { %v7759_v3 = vadd.f32 %v5372_v57, %v10117_v16  ;;  %v5374_v25 = vpop.f32.mrb[147].mxu1 }
0x15e2   :  { %v7760_v23 = vadd.f32 %v5374_v25, %v10119_v20 }
0x15e3   :  { %v5387_v11 = vmul.f32 0.5, %v7759_v3 }
0x15e4   :  { %v5378_v27 = vpop.f32.mrb[148].mxu1  ;;  %v5397_v32 = vmul.f32 0.5, %v7760_v23 }
0x15e5   :  { %8181 = vtanh.f32 %v5387_v11  ;;  %v7761_v1 = vadd.f32 %v5378_v27, %v10117_v16  ;;  %v5380_v7 = vpop.f32.mrb[149].mxu1 }
0x15e6   :  { %8183 = vtanh.f32 %v7760_v23  ;;  %v7762_v8 = vadd.f32 %v5380_v7, %v10119_v20 }
0x15e7   :  { %v5388_v6 = vmul.f32 0.5, %v7761_v1 }
0x15e8   :  { %v5398_v37 = vmul.f32 0.5, %v7762_v8 }
0x15e9   :  { %8185 = vtanh.f32 %v5388_v6 }
0x15ea   :  { %8187 = vtanh.f32 %v7762_v8 }
0x15eb   :  { %8189 = vtanh.f32 %v5397_v32 }
0x15ec   :  { %8191 = vtanh.f32 %v5398_v37 }
0x15ef   :  { %v8182_v10 = vpop.eup %8181 }
0x15f0   :  { %v5391_v12 = vmul.f32 0.5, %v8182_v10  ;;  %v8184_v14 = vpop.eup %8183 }
0x15f2   :  { %v5393_v18 = vadd.f32 0.5, %v5391_v12 }
0x15f3   :  { %v8186_v22 = vpop.eup %8185 }
0x15f4   :  { %v5392_v31 = vmul.f32 0.5, %v8186_v22  ;;  %v5407_v26 = vmul.f32 %v8184_v14, %v5393_v18  ;;  %v8188_v30 = vpop.eup %8187  ;;  %v5405_v39 = vmul.f32 %v5393_v18, %v5286_v50 }
0x15f5   :  { %v8190_v43 = vpop.eup %8189 }
0x15f6   :  { %v5394_v33 = vadd.f32 0.5, %v5392_v31  ;;  %5411 = vrot.lane.b32.xlu0 %v5407_v26, %s8251_s8  ;;  %v5401_v45 = vmul.f32 0.5, %v8190_v43  ;;  %v8192_v49 = vpop.eup %8191 }
0x15f7   :  { %v5402_v62 = vmul.f32 0.5, %v8192_v49 }
0x15f8   :  { %v5408_v35 = vmul.f32 %v8188_v30, %v5394_v33  ;;  %v5406_v41 = vmul.f32 %v5394_v33, %v5287_v61  ;;  %v5403_v17 = vadd.f32 0.5, %v5401_v45 }
0x15f9   :  { %v5404_v51 = vadd.f32 0.5, %v5402_v62 }
0x15fa   :  { %5413 = vrot.lane.b32.xlu1 %v5408_v35, %s8251_s8 }
0x1668   :  { %v5412_v36 = vpop.permute.xlu0 %5411 }
0x1669   :  { %v5417_v34 = vadd.f32 %v5412_v36, %v5405_v39 }
0x166b   :  { %8193 = vtanh.f32 %v5417_v34 }
0x166c   :  { %v5414_v38 = vpop.permute.xlu1 %5413 }
0x166d   :  { %v5418_v19 = vadd.f32 %v5414_v38, %v5406_v41 }
0x166f   :  { %8195 = vtanh.f32 %v5418_v19 }
0x1675   :  { %v8194_v13 = vpop.eup %8193 }
0x1676   :  { %v5421_v15 = vmul.f32 %v8194_v13, %v5403_v17 }
0x1678   :  { %5429 = vrot.lane.b32.xlu0 %v5421_v15, %s8251_s8 }
0x1679   :  { %v8196_v44 = vpop.eup %8195 }
0x167a   :  { %v5422_v52 = vmul.f32 %v8196_v44, %v5404_v51 }
0x167c   :  { %5431 = vrot.lane.b32.xlu1 %v5422_v52, %s8251_s8 }
0x16ea   :  { %v5430_v50 = vpop.permute.xlu0 %5429 }
0x16eb   :  { %6385 = vmatmul.mubr.msk.f32.vlgmr.msra.gmra.mrb[150].mxu1 %vm3542_vm3, %v5430_v50 }
0x16ec   :  { %5507 = vmatprep.mubr.f32.mxu1 %v8250_v5  ;;  %7676 = vmatpush1.bf16.msra.mxu1 %v9894_v0 }
0x16ed   :  { %7678 = vmatprep.subr.bf16.mxu1 %v9898_v2 }
0x16ee   :  { %v5432_v55 = vpop.permute.xlu1 %5431 }
0x16ef   :  { %6386 = vmatmul.mubr.msk.f32.gmra.mrb[152].mxu1 %vm3542_vm3, %v5432_v55 }
0x16f0   :  { %7680 = vmatpush1.bf16.msra.mxu1 %v9919_v24  ;;  %5632 = vmatprep.mubr.f32.mxu1 %v8250_v5 }
0x16f1   :  { %7682 = vmatprep.subr.bf16.mxu1 %v9924_v28 }
0x16f4   :  { %7684 = vmatpush1.bf16.msra.mxu1 %v9943_v54 }
0x16f5   :  { %7686 = vmatprep.subr.bf16.mxu1 %v9948_v58 }
0x16f8   :  { %7688 = vmatpush1.bf16.msra.mxu1 %v9963_v56 }
0x16f9   :  { %7690 = vmatprep.subr.bf16.mxu1 %v9848_v4 }
0x17be   :  { %v5503_v60 = vpop.f32.mrb[150].mxu1 }
0x17bf   :  { %v7763_v61 = vadd.f32 %v5503_v60, %v10117_v16  ;;  %v5505_v40 = vpop.f32.mrb[151].mxu1 }
0x17c0   :  { %v7764_v48 = vadd.f32 %v5505_v40, %v10119_v20 }
0x17c1   :  { %v5518_v47 = vmul.f32 0.5, %v7763_v61 }
0x17c2   :  { %v5509_v21 = vpop.f32.mrb[152].mxu1  ;;  %v5528_v1 = vmul.f32 0.5, %v7764_v48 }
0x17c3   :  { %8197 = vtanh.f32 %v5518_v47  ;;  %v7765_v53 = vadd.f32 %v5509_v21, %v10117_v16  ;;  %v5511_v9 = vpop.f32.mrb[153].mxu1 }
0x17c4   :  { %8199 = vtanh.f32 %v7764_v48  ;;  %v7766_v46 = vadd.f32 %v5511_v9, %v10119_v20 }
0x17c5   :  { %v5519_v63 = vmul.f32 0.5, %v7765_v53 }
0x17c6   :  { %v5529_v7 = vmul.f32 0.5, %v7766_v46 }
0x17c7   :  { %8201 = vtanh.f32 %v5519_v63 }
0x17c8   :  { %8203 = vtanh.f32 %v7766_v46 }
0x17c9   :  { %8205 = vtanh.f32 %v5528_v1 }
0x17ca   :  { %8207 = vtanh.f32 %v5529_v7 }
0x17cd   :  { %v8198_v59 = vpop.eup %8197 }
0x17ce   :  { %v5522_v4 = vmul.f32 0.5, %v8198_v59  ;;  %v8200_v42 = vpop.eup %8199 }
0x17d0   :  { %v5524_v29 = vadd.f32 0.5, %v5522_v4 }
0x17d1   :  { %v8202_v57 = vpop.eup %8201 }
0x17d2   :  { %v5523_v3 = vmul.f32 0.5, %v8202_v57  ;;  %v5538_v25 = vmul.f32 %v8200_v42, %v5524_v29  ;;  %v8204_v23 = vpop.eup %8203  ;;  %v5536_v6 = vmul.f32 %v5524_v29, %v5417_v34 }
0x17d3   :  { %v8206_v18 = vpop.eup %8205 }
0x17d4   :  { %v5525_v11 = vadd.f32 0.5, %v5523_v3  ;;  %5542 = vrot.lane.b32.xlu0 %v5538_v25, %s8251_s8  ;;  %v5532_v31 = vmul.f32 0.5, %v8206_v18  ;;  %v8208_v26 = vpop.eup %8207 }
0x17d5   :  { %v5533_v33 = vmul.f32 0.5, %v8208_v26 }
0x17d6   :  { %v5539_v27 = vmul.f32 %v8204_v23, %v5525_v11  ;;  %v5537_v12 = vmul.f32 %v5525_v11, %v5418_v19  ;;  %v5534_v30 = vadd.f32 0.5, %v5532_v31 }
0x17d7   :  { %v5535_v37 = vadd.f32 0.5, %v5533_v33 }
0x17d8   :  { %5544 = vrot.lane.b32.xlu1 %v5539_v27, %s8251_s8 }
0x1846   :  { %v5543_v8 = vpop.permute.xlu0 %5542 }
0x1847   :  { %v5548_v10 = vadd.f32 %v5543_v8, %v5536_v6 }
0x1849   :  { %8209 = vtanh.f32 %v5548_v10 }
0x184a   :  { %v5545_v14 = vpop.permute.xlu1 %5544 }
0x184b   :  { %v5549_v22 = vadd.f32 %v5545_v14, %v5537_v12 }
0x184d   :  { %8211 = vtanh.f32 %v5549_v22 }
0x1853   :  { %v8210_v35 = vpop.eup %8209 }
0x1854   :  { %v5552_v32 = vmul.f32 %v8210_v35, %v5534_v30 }
0x1856   :  { %5560 = vrot.lane.b32.xlu0 %v5552_v32, %s8251_s8 }
0x1857   :  { %v8212_v39 = vpop.eup %8211 }
0x1858   :  { %v5553_v36 = vmul.f32 %v8212_v39, %v5535_v37 }
0x185a   :  { %5562 = vrot.lane.b32.xlu1 %v5553_v36, %s8251_s8 }
0x18c8   :  { %v5561_v34 = vpop.permute.xlu0 %5560 }
0x18c9   :  { %6387 = vmatmul.mubr.msk.f32.vlgmr.msra.gmra.mrb[154].mxu1 %vm3542_vm3, %v5561_v34  ;;  %v5818_v34 = vld [vmem:[%s10419_s9 + $0x10] sm:$0xff] }
0x18ca   :  { %5638 = vmatprep.mubr.f32.mxu1 %v8250_v5  ;;  %7692 = vmatpush1.bf16.msra.mxu1 %v9894_v0 }
0x18cb   :  { %7694 = vmatprep.subr.bf16.mxu1 %v9898_v2 }
0x18cc   :  { %v5563_v41 = vpop.permute.xlu1 %5562 }
0x18cd   :  { %6388 = vmatmul.mubr.msk.f32.gmra.mrb[156].mxu1 %vm3542_vm3, %v5563_v41 }
0x18ce   :  { %7696 = vmatpush1.bf16.msra.mxu1 %v9919_v24  ;;  %5763 = vmatprep.mubr.f32.mxu1 %v8250_v5 }
0x18cf   :  { %7698 = vmatprep.subr.bf16.mxu1 %v9924_v28 }
0x18d2   :  { %7700 = vmatpush1.bf16.msra.mxu1 %v9943_v54 }
0x18d3   :  { %7702 = vmatprep.subr.bf16.mxu1 %v9948_v58 }
0x18d6   :  { %7704 = vmatpush1.bf16.msra.mxu1 %v9963_v56 }
0x199c   :  { %v5634_v38 = vpop.f32.mrb[154].mxu1 }
0x199d   :  { %v7767_v0 = vadd.f32 %v5634_v38, %v10117_v16  ;;  %v5636_v43 = vpop.f32.mrb[155].mxu1  ;;  %v5819_v38 = vld [vmem:[%s10419_s9 + $0x18] sm:$0xff] }
0x199e   :  { %v7768_v19 = vadd.f32 %v5636_v43, %v10119_v20  ;;  %v5820_v43 = vld [vmem:[%s10419_s9 + $0x20] sm:$0xff] }
0x199f   :  { %v5649_v2 = vmul.f32 0.5, %v7767_v0  ;;  %v7709_v0 = vpack.c.bf16 %v5819_v38, %v5818_v34 }
0x19a0   :  { %v5640_v45 = vpop.f32.mrb[156].mxu1  ;;  %v5659_v55 = vmul.f32 0.5, %v7768_v19 }
0x19a1   :  { %8213 = vtanh.f32 %v5649_v2  ;;  %v7769_v24 = vadd.f32 %v5640_v45, %v10117_v16  ;;  %v5642_v49 = vpop.f32.mrb[157].mxu1  ;;  %v5821_v2 = vld [vmem:[%s10419_s9 + $0x28] sm:$0xff] }
0x19a2   :  { %8215 = vtanh.f32 %v7768_v19  ;;  %v7770_v28 = vadd.f32 %v5642_v49, %v10119_v20  ;;  %v7713_v19 = vpack.c.bf16 %v5821_v2, %v5820_v43 }
0x19a3   :  { %v5650_v62 = vmul.f32 0.5, %v7769_v24 }
0x19a4   :  { %v5660_v60 = vmul.f32 0.5, %v7770_v28 }
0x19a5   :  { %8217 = vtanh.f32 %v5650_v62 }
0x19a6   :  { %8219 = vtanh.f32 %v7770_v28  ;;  %v5822_v28 = vld [vmem:[%s10419_s9 + $0x30] sm:$0xff] }
0x19a7   :  { %8221 = vtanh.f32 %v5659_v55 }
0x19a8   :  { %8223 = vtanh.f32 %v5660_v60 }
0x19ab   :  { %v8214_v54 = vpop.eup %8213 }
0x19ac   :  { %v5653_v58 = vmul.f32 0.5, %v8214_v54  ;;  %v8216_v56 = vpop.eup %8215  ;;  %v5823_v54 = vld [vmem:[%s10419_s9 + $0x38] sm:$0xff] }
0x19ae   :  { %v5655_v17 = vadd.f32 0.5, %v5653_v58 }
0x19af   :  { %v8218_v13 = vpop.eup %8217 }
0x19b0   :  { %v5654_v15 = vmul.f32 0.5, %v8218_v13  ;;  %v5669_v51 = vmul.f32 %v8216_v56, %v5655_v17  ;;  %v8220_v52 = vpop.eup %8219  ;;  %v5667_v61 = vmul.f32 %v5655_v17, %v5548_v10  ;;  %v7717_v56 = vpack.c.bf16 %v5823_v54, %v5822_v28 }
0x19b1   :  { %v8222_v53 = vpop.eup %8221 }
0x19b2   :  { %v5656_v44 = vadd.f32 0.5, %v5654_v15  ;;  %5673 = vrot.lane.b32.xlu0 %v5669_v51, %s8251_s8  ;;  %v5663_v63 = vmul.f32 0.5, %v8222_v53  ;;  %v8224_v46 = vpop.eup %8223 }
0x19b3   :  { %v5664_v59 = vmul.f32 0.5, %v8224_v46 }
0x19b4   :  { %v5670_v50 = vmul.f32 %v8220_v52, %v5656_v44  ;;  %v5668_v48 = vmul.f32 %v5656_v44, %v5549_v22  ;;  %v5665_v4 = vadd.f32 0.5, %v5663_v63  ;;  %v6391_v63 = vld [vmem:[%s10421_s10] ss:$0 sm:$0xff] }
0x19b5   :  { %v5666_v57 = vadd.f32 0.5, %v5664_v59 }
0x19b6   :  { %5675 = vrot.lane.b32.xlu1 %v5670_v50, %s8251_s8 }
0x1a24   :  { %v5674_v40 = vpop.permute.xlu0 %5673 }
0x1a25   :  { %v10346_v47 = vadd.f32 %v5674_v40, %v5667_v61 }
0x1a27   :  { %8225 = vtanh.f32 %v10346_v47 }
0x1a28   :  { %v5676_v21 = vpop.permute.xlu1 %5675 }
0x1a29   :  { %v10349_v9 = vadd.f32 %v5676_v21, %v5668_v48 }
0x1a2b   :  { %8227 = vtanh.f32 %v10349_v9 }
0x1a31   :  { %v8226_v42 = vpop.eup %8225 }
0x1a32   :  { %v5683_v29 = vmul.f32 %v8226_v42, %v5665_v4 }
0x1a34   :  { %5691 = vrot.lane.b32.xlu0 %v5683_v29, %s8251_s8  ;;  %v6394_v29 = vld [vmem:[%s10422_s11] ss:$0 sm:$0xff] }
0x1a35   :  { %v8228_v3 = vpop.eup %8227 }
0x1a36   :  { %v5684_v25 = vmul.f32 %v8228_v3, %v5666_v57 }
0x1a38   :  { %5693 = vrot.lane.b32.xlu1 %v5684_v25, %s8251_s8 }
0x1aa6   :  { %v5692_v11 = vpop.permute.xlu0 %5691 }
0x1aa7   :  { %6389 = vmatmul.mubr.msk.f32.vlgmr.msra.gmra.mrb[158].mxu1 %vm3542_vm3, %v5692_v11 }
0x1aa8   :  { %5769 = vmatprep.mubr.f32.mxu1 %v8250_v5 }
0x1aaa   :  { %v5694_v23 = vpop.permute.xlu1 %5693 }
0x1aab   :  { %6390 = vmatmul.mubr.msk.f32.gmra.mrb[160].mxu1 %vm3542_vm3, %v5694_v23 }
0x1b7a   :  { %v5765_v27 = vpop.f32.mrb[158].mxu1 }
0x1b7b   :  { %v7771_v1 = vadd.f32 %v5765_v27, %v10117_v16  ;;  %v5767_v7 = vpop.f32.mrb[159].mxu1 }
0x1b7c   :  { %v7772_v8 = vadd.f32 %v5767_v7, %v10119_v20 }
0x1b7d   :  { %v5780_v6 = vmul.f32 0.5, %v7771_v1 }
0x1b7e   :  { %v5771_v10 = vpop.f32.mrb[160].mxu1  ;;  %v5790_v45 = vmul.f32 0.5, %v7772_v8 }
0x1b7f   :  { %8229 = vtanh.f32 %v5780_v6  ;;  %v7773_v12 = vadd.f32 %v5771_v10, %v10117_v16  ;;  %v5773_v14 = vpop.f32.mrb[161].mxu1  ;;  %v5816_v16 = vld [vmem:[%s10419_s9] sm:$0xff] }
0x1b80   :  { %8231 = vtanh.f32 %v7772_v8  ;;  %v7774_v5 = vadd.f32 %v5773_v14, %v10119_v20  ;;  %v5817_v20 = vld [vmem:[%s10419_s9 + $0x8] sm:$0xff] }
0x1b81   :  { %v5781_v18 = vmul.f32 0.5, %v7773_v12  ;;  %v7705_v41 = vpack.c.bf16 %v5817_v20, %v5816_v16 }
0x1b82   :  { %v5791_v24 = vmul.f32 0.5, %v7774_v5 }
0x1b83   :  { %8233 = vtanh.f32 %v5781_v18  ;;  %7706 = vmatprep.subr.bf16.mxu1 %v7705_v41 }
0x1b84   :  { %8235 = vtanh.f32 %v7774_v5  ;;  %7708 = vmatpush3.bf16.msra.mxu1 %v7705_v41 }
0x1b85   :  { %7710 = vmatprep.subr.bf16.mxu1 %v7709_v0  ;;  %8237 = vtanh.f32 %v5790_v45 }
0x1b86   :  { %8239 = vtanh.f32 %v5791_v24 }
0x1b88   :  { %7712 = vmatpush3.bf16.msra.mxu1 %v7709_v0 }
0x1b89   :  { %v8230_v22 = vpop.eup %8229  ;;  %7714 = vmatprep.subr.bf16.mxu1 %v7713_v19 }
0x1b8a   :  { %v5784_v31 = vmul.f32 0.5, %v8230_v22  ;;  %v8232_v26 = vpop.eup %8231 }
0x1b8c   :  { %v5786_v33 = vadd.f32 0.5, %v5784_v31  ;;  %7716 = vmatpush3.bf16.msra.mxu1 %v7713_v19 }
0x1b8d   :  { %v8234_v30 = vpop.eup %8233  ;;  %7718 = vmatprep.subr.bf16.mxu1 %v7717_v56 }
0x1b8e   :  { %v5785_v35 = vmul.f32 0.5, %v8234_v30  ;;  %v5800_v32 = vmul.f32 %v8232_v26, %v5786_v33  ;;  %v8236_v39 = vpop.eup %8235  ;;  %v5798_v49 = vmul.f32 %v5786_v33, %v10346_v47 }
0x1b8f   :  { %v8238_v15 = vpop.eup %8237 }
0x1b90   :  { %v5787_v37 = vadd.f32 0.5, %v5785_v35  ;;  %5804 = vrot.lane.b32.xlu0 %v5800_v32, %s8251_s8  ;;  %7720 = vmatpush3.bf16.msra.mxu1 %v7717_v56  ;;  %v5794_v44 = vmul.f32 0.5, %v8238_v15  ;;  %v8240_v52 = vpop.eup %8239 }
0x1b91   :  { %v5795_v50 = vmul.f32 0.5, %v8240_v52 }
0x1b92   :  { %v5801_v36 = vmul.f32 %v8236_v39, %v5787_v37  ;;  %v5799_v17 = vmul.f32 %v5787_v37, %v10349_v9  ;;  %v5796_v55 = vadd.f32 0.5, %v5794_v44  ;;  %v18_v9 = vstv %s10420_s12 }
0x1b93   :  { %v5797_v40 = vadd.f32 0.5, %v5795_v50  ;;  %19 = vst [vmem:[#allocation5] sm:$0x1] %v18_v9 }
0x1b94   :  { %5806 = vrot.lane.b32.xlu1 %v5801_v36, %s8251_s8 }
0x1b9a   :  { %v6395_v1 = vld [vmem:[#allocation5] ss:$0 sm:$0xff] }
0x1c02   :  { %v5805_v62 = vpop.permute.xlu0 %5804 }
0x1c03   :  { %v5810_v58 = vadd.f32 %v5805_v62, %v5798_v49 }
0x1c05   :  { %8241 = vtanh.f32 %v5810_v58 }
0x1c06   :  { %v5807_v13 = vpop.permute.xlu1 %5806 }
0x1c07   :  { %v5811_v51 = vadd.f32 %v5807_v13, %v5799_v17 }
0x1c09   :  { %8243 = vtanh.f32 %v5811_v51 }
0x1c0f   :  { %v8242_v60 = vpop.eup %8241 }
0x1c10   :  { %v5814_v61 = vmul.f32 %v8242_v60, %v5796_v55 }
0x1c12   :  { %5833 = vrot.lane.b32.xlu0 %v5814_v61, %s8251_s8 }
0x1c13   :  { %v8244_v47 = vpop.eup %8243 }
0x1c14   :  { %v5815_v48 = vmul.f32 %v8244_v47, %v5797_v40 }
0x1c16   :  { %5835 = vrot.lane.b32.xlu1 %v5815_v48, %s8251_s8 }
0x1c84   :  { %v5834_v21 = vpop.permute.xlu0 %5833 }
0x1c85   :  { %7438 = vmatprep.mubr.msk.f32.mxu1 %vm3542_vm3, %v5834_v21 }
0x1c88   :  { %v5836_v53 = vpop.permute.xlu1 %5835 }
0x1c89   :  { %7439 = vmatmul.mubr.msk.f32.vlgmr.msra.gmra.mrb[162].mxu1 %vm3542_vm3, %v5836_v53 }
0x1d5c   :  { %v7440_v46 = vpop.f32.mrb[162].mxu1 }
0x1d5d   :  { %v5913_v59 = vadd.f32 %v7440_v46, %v6391_v63  ;;  %v5907_v4 = vpop.f32.mrb[163].mxu1 }
0x1d5e   :  { %v5908_v42 = vadd.f32 %v6391_v63, %v5907_v4 }
0x1d5f   :  { %v5917_v57 = vmax.f32 %v5913_v59, 0.0 }
0x1d60   :  { %v5916_v3 = vmax.f32 %v5908_v42, 0.0 }
0x1d61   :  { %v5926_v25 = vmul.f32 %v6394_v29, %v5917_v57 }
0x1d62   :  { %v5925_v11 = vmul.f32 %v6394_v29, %v5916_v3 }
0x1d63   :  { %v5930_v23 = vsel %vm3542_vm3, %v5926_v25, 0.0 }
0x1d64   :  { %5931 = vadd.xlane.f32.xlu1 %v5930_v23  ;;  %v5927_v27 = vsel %vm3542_vm3, %v5925_v11, 0.0 }
0x1d65   :  { %5928 = vadd.xlane.f32.xlu0 %v5927_v27 }
0x1df1   :  { %v5932_v7 = vpop.xlane.xlu1 %5931 }
0x1df2   :  { %v5941_v6 = vadd.f32 %v6395_v1, %v5932_v7  ;;  %v5929_v8 = vpop.xlane.xlu0 %5928 }
0x1df3   :  { %v5940_v10 = vadd.f32 %v6395_v1, %v5929_v8 }
0x1df4   :  { %v5943_v12 = vmul.f32 0.5, %v5941_v6 }
0x1df5   :  { %v5942_v14 = vmul.f32 0.5, %v5940_v10 }
0x1df6   :  { %8245 = vtanh.f32 %v5943_v12 }
0x1df7   :  { %8247 = vtanh.f32 %v5942_v14 }
0x1e00   :  { %v8246_v18 = vpop.eup %8245 }
0x1e01   :  { %v8248_v5 = vpop.eup %8247  ;;  %v5947_v22 = vmul.f32 0.5, %v8246_v18 }
0x1e02   :  { %v5946_v31 = vmul.f32 0.5, %v8248_v5 }
0x1e03   :  { %v5949_v26 = vadd.f32 0.5, %v5947_v22 }
0x1e04   :  { %v5948_v33 = vadd.f32 0.5, %v5946_v31 }
0x1e05   :  { %5952 = vst.msk [vmem:[%s10423_s13 + $0x8] sm:$0xff] %vm5950_vm4, %v5949_v26 }
0x1e06   :  { %5951 = vst.msk [vmem:[%s10423_s13] sm:$0xff] %vm5950_vm4, %v5948_v33 }

</bundles_post_ra>
